<compile_context>
chip_gen: v5e
topology: v5e:2x2
jax: 0.10.0
libtpu: 0.0.40
codegen_flags: <defaults>
</compile_context>

<pallas_src>
import functools

import jax
import jax.numpy as jnp
from jax.experimental import pallas as pl
from jax.experimental.pallas import tpu as pltpu

LANE = 128


def _round_up(x, m):
    return (x + m - 1) // m * m


# -----------------------------------------------------------------------------
# Pallas kernel: time recurrence of one bidirectional layer (both directions)
# -----------------------------------------------------------------------------
def _lstm_layer_kernel(gx_f_ref, gx_b_ref, whh_f_ref, whh_b_ref,
                       out_f_ref, out_b_ref,
                       h_f_scr, c_f_scr, h_b_scr, c_b_scr,
                       *, chunk, batch, hp, t_real):
    """grid = (n_chunks,), time is sequential ("arbitrary").

    gx_*_ref : (chunk*batch, 4*hp) f32  hoisted x-projection (+bias) for this chunk
               (forward gets chunk c, backward gets chunk n_chunks-1-c)
    whh_*_ref: (hp, 4*hp) bf16          recurrent weights, transposed
    out_*_ref: (chunk*batch, hp) f32    hidden outputs, forward-time order
    *_scr    : (batch, hp) f32          recurrent state, carried across grid steps
    """
    c = pl.program_id(0)
    n_chunks = pl.num_programs(0)

    @pl.when(c == 0)
    def _():
        h_f_scr[...] = jnp.zeros_like(h_f_scr)
        c_f_scr[...] = jnp.zeros_like(c_f_scr)
        h_b_scr[...] = jnp.zeros_like(h_b_scr)
        c_b_scr[...] = jnp.zeros_like(c_b_scr)

    t0_bwd = (n_chunks - 1 - c) * chunk   # global start time of the bwd chunk

    def sigmoid(x):
        # one EUP transcendental (tanh) instead of exp + reciprocal
        return 0.5 * jnp.tanh(0.5 * x) + 0.5

    def cell(gates, c_prev):
        i_g = sigmoid(gates[:, 0 * hp:1 * hp])
        f_g = sigmoid(gates[:, 1 * hp:2 * hp])
        g_g = jnp.tanh(gates[:, 2 * hp:3 * hp])
        o_g = sigmoid(gates[:, 3 * hp:4 * hp])
        c_new = f_g * c_prev + i_g * g_g
        h_new = o_g * jnp.tanh(c_new)
        return h_new, c_new

    # Static Python loop -> all row offsets are compile-time constants (no
    # dynamic unaligned sublane slices).  TODO(synk): for very large chunks,
    # switch to lax.fori_loop(..., unroll=2..4) to bound code size / vregs.
    for s in range(chunk):
        # ---- forward direction: in-chunk step s (global time c*chunk + s) ----
        rf = s * batch
        gates_f = gx_f_ref[rf:rf + batch, :] + jnp.dot(
            h_f_scr[...].astype(jnp.bfloat16), whh_f_ref[...],
            preferred_element_type=jnp.float32)
        h_f, c_f = cell(gates_f, c_f_scr[...])
        # (padded-tail forward steps only write rows >= t_real*batch, which the
        #  wrapper discards, and their state is never consumed afterwards)
        h_f_scr[...] = h_f
        c_f_scr[...] = c_f
        out_f_ref[rf:rf + batch, :] = h_f

        # ---- backward direction: in-chunk step chunk-1-s (decreasing time) ----
        sb = chunk - 1 - s
        rb = sb * batch
        gates_b = gx_b_ref[rb:rb + batch, :] + jnp.dot(
            h_b_scr[...].astype(jnp.bfloat16), whh_b_ref[...],
            preferred_element_type=jnp.float32)
        h_b, c_b = cell(gates_b, c_b_scr[...])
        valid = (t0_bwd + sb) < t_real    # padded-time steps must not touch state
        h_b_scr[...] = jnp.where(valid, h_b, h_b_scr[...])
        c_b_scr[...] = jnp.where(valid, c_b, c_b_scr[...])
        out_b_ref[rb:rb + batch, :] = h_b


# -----------------------------------------------------------------------------
# Per-layer pallas_call wrapper
# -----------------------------------------------------------------------------
def _run_layer(gx_f, gx_b, whh_f, whh_b, *, batch, chunk, hp, t_real, n_chunks):
    rows = gx_f.shape[0]                 # Tp * B
    block_rows = chunk * batch           # multiple of 8 by construction

    fwd_map = lambda c: (c, 0)
    bwd_map = lambda c: (n_chunks - 1 - c, 0)
    whh_map = lambda c: (0, 0)           # constant block -> DMA'd once
    # TODO(synk): on v7x add pipeline_mode=pl.Buffered(1) to the W_hh specs to
    # drop the second pipeline buffer (VMEM budget is 64 MiB there).

    kernel = functools.partial(_lstm_layer_kernel, chunk=chunk, batch=batch,
                               hp=hp, t_real=t_real)

    return pl.pallas_call(
        kernel,
        grid=(n_chunks,),
        in_specs=[
            pl.BlockSpec((block_rows, 4 * hp), fwd_map),   # gx forward chunk
            pl.BlockSpec((block_rows, 4 * hp), bwd_map),   # gx backward chunk
            pl.BlockSpec((hp, 4 * hp), whh_map),           # W_hh^T forward (bf16)
            pl.BlockSpec((hp, 4 * hp), whh_map),           # W_hh^T backward (bf16)
        ],
        out_specs=[
            pl.BlockSpec((block_rows, hp), fwd_map),
            pl.BlockSpec((block_rows, hp), bwd_map),
        ],
        out_shape=[
            jax.ShapeDtypeStruct((rows, hp), jnp.float32),
            jax.ShapeDtypeStruct((rows, hp), jnp.float32),
        ],
        scratch_shapes=[
            pltpu.VMEM((batch, hp), jnp.float32),   # h forward
            pltpu.VMEM((batch, hp), jnp.float32),   # c forward
            pltpu.VMEM((batch, hp), jnp.float32),   # h backward
            pltpu.VMEM((batch, hp), jnp.float32),   # c backward
        ],
        compiler_params=pltpu.CompilerParams(
            dimension_semantics=("arbitrary",),     # time is sequential
            vmem_limit_bytes=48 * 1024 * 1024,
        ),
    )(gx_f, gx_b, whh_f, whh_b)


# -----------------------------------------------------------------------------
# Weight preparation (gate-block padding H -> Hp, lane aligned)
# -----------------------------------------------------------------------------
def _pad_gate_rows(w, h, hp):
    """(4h, din) -> (4hp, din): zero-pad each of the 4 gate blocks from h to hp."""
    din = w.shape[1]
    return jnp.pad(w.reshape(4, h, din),
                   ((0, 0), (0, hp - h), (0, 0))).reshape(4 * hp, din)


def _recur_weight(w, h, hp):
    """(4h, h) -> (hp, 4hp) bf16, both sides zero-padded to hp."""
    wp = _pad_gate_rows(w, h, hp)              # (4hp, h)
    wp = jnp.pad(wp, ((0, 0), (0, hp - h)))    # (4hp, hp)
    return wp.T.astype(jnp.bfloat16)           # (hp, 4hp)


# -----------------------------------------------------------------------------
# Full model forward (eval mode)
# -----------------------------------------------------------------------------
def lstm_model_forward(x, lstm_params, fc_w, fc_b, *, chunk_rows_target=256):
    """x: (B, T, input_size) batch_first  ->  (B, 1)."""
    bsz, t_real, _ = x.shape
    hid = lstm_params[0][0][1].shape[1]        # w_hh: (4H, H)
    hp = _round_up(hid, LANE)

    # timesteps per grid step: multiple of 8 so chunk*B rows stay sublane-aligned
    chunk = max(8, (chunk_rows_target // (8 * bsz)) * 8)
    chunk = min(chunk, _round_up(t_real, 8))
    t_pad = _round_up(t_real, chunk)
    n_chunks = t_pad // chunk

    # time-major, (time, batch) flattened into dense rows, zero-padded time
    x_flat = jnp.transpose(x, (1, 0, 2)).reshape(t_real * bsz, -1)
    x_flat = jnp.pad(x_flat, ((0, (t_pad - t_real) * bsz), (0, 0)))

    out_f = out_b = None
    for li, layer_params in enumerate(lstm_params):
        gxs, whhs = [], []
        for (w_ih, w_hh, b_ih, b_hh) in layer_params:          # [fwd, bwd]
            bias = jnp.pad((b_ih + b_hh).reshape(4, hid),
                           ((0, 0), (0, hp - hid))).reshape(4 * hp)
            whhs.append(_recur_weight(w_hh, hid, hp))
            if li == 0:
                wih_t = _pad_gate_rows(w_ih, hid, hp).T.astype(jnp.bfloat16)
                gx = jnp.dot(x_flat.astype(jnp.bfloat16), wih_t,
                             preferred_element_type=jnp.float32)
            else:
                # consume the previous layer's fwd/bwd outputs separately via
                # split (padded) W_ih halves -> no (T*B, 2H) concat round-trip.
                w_from_f = _recur_weight(w_ih[:, :hid], hid, hp)   # (hp, 4hp)
                w_from_b = _recur_weight(w_ih[:, hid:], hid, hp)
                gx = (jnp.dot(out_f.astype(jnp.bfloat16), w_from_f,
                              preferred_element_type=jnp.float32)
                      + jnp.dot(out_b.astype(jnp.bfloat16), w_from_b,
                                preferred_element_type=jnp.float32))
            gxs.append(gx + bias)

        out_f, out_b = _run_layer(gxs[0], gxs[1], whhs[0], whhs[1],
                                  batch=bsz, chunk=chunk, hp=hp,
                                  t_real=t_real, n_chunks=n_chunks)
        # inter-layer dropout: identity in eval mode
        # TODO(synk): training-mode dropout not implemented (module run in eval).

    # out[:, -1, :] == [h_fwd(T-1), h_bwd(T-1)]
    last = slice((t_real - 1) * bsz, t_real * bsz)
    feats = jnp.concatenate([out_f[last, :hid], out_b[last, :hid]], axis=-1)
    # final dropout: identity in eval mode; tiny fc stays in XLA
    return feats @ fc_w.T + fc_b


# -----------------------------------------------------------------------------
# Pure-JAX references (PyTorch math); bf16_matmuls mirrors the kernel numerics
# -----------------------------------------------------------------------------
def _ref_cell_scan(x_seq, w_ih, w_hh, b_ih, b_hh, bf16_matmuls):
    H = w_hh.shape[1]
    B = x_seq.shape[1]
    if bf16_matmuls:
        mm = lambda a, b: jnp.dot(a.astype(jnp.bfloat16), b.astype(jnp.bfloat16),
                                  preferred_element_type=jnp.float32)
    else:
        mm = lambda a, b: jnp.dot(a, b, precision=jax.lax.Precision.HIGHEST)
    wih_t, whh_t, bias = w_ih.T, w_hh.T, b_ih + b_hh

    def step(carry, x_t):
        h, c = carry
        gates = mm(x_t, wih_t) + bias + mm(h, whh_t)
        i = jax.nn.sigmoid(gates[:, 0 * H:1 * H])
        f = jax.nn.sigmoid(gates[:, 1 * H:2 * H])
        g = jnp.tanh(gates[:, 2 * H:3 * H])
        o = jax.nn.sigmoid(gates[:, 3 * H:4 * H])
        c_new = f * c + i * g
        h_new = o * jnp.tanh(c_new)
        return (h_new, c_new), h_new

    init = (jnp.zeros((B, H), jnp.float32), jnp.zeros((B, H), jnp.float32))
    _, h_seq = jax.lax.scan(step, init, x_seq)
    return h_seq


def ref_forward(x, lstm_params, fc_w, fc_b, *, bf16_matmuls):
    h_in = jnp.transpose(x, (1, 0, 2))
    for layer_params in lstm_params:
        outs = []
        for direction, (w_ih, w_hh, b_ih, b_hh) in enumerate(layer_params):
            seq = h_in if direction == 0 else h_in[::-1]
            h_seq = _ref_cell_scan(seq, w_ih, w_hh, b_ih, b_hh, bf16_matmuls)
            if direction == 1:
                h_seq = h_seq[::-1]
            outs.append(h_seq)
        h_in = jnp.concatenate(outs, axis=-1)
    last = h_in[-1]
    return last @ fc_w.T + fc_b


# -----------------------------------------------------------------------------
# Deterministic parameter init (PyTorch-style uniform(-1/sqrt(H), 1/sqrt(H)))
# -----------------------------------------------------------------------------
def init_params(key, input_size, hidden_size, num_layers):
    bound = 1.0 / jnp.sqrt(jnp.float32(hidden_size))
    lstm_params = []
    for layer in range(num_layers):
        in_sz = input_size if layer == 0 else 2 * hidden_size
        layer_params = []
        for _ in range(2):  # directions
            key, k1, k2, k3, k4 = jax.random.split(key, 5)
            w_ih = jax.random.uniform(k1, (4 * hidden_size, in_sz),
                                      jnp.float32, -bound, bound)
            w_hh = jax.random.uniform(k2, (4 * hidden_size, hidden_size),
                                      jnp.float32, -bound, bound)
            b_ih = jax.random.uniform(k3, (4 * hidden_size,),
                                      jnp.float32, -bound, bound)
            b_hh = jax.random.uniform(k4, (4 * hidden_size,),
                                      jnp.float32, -bound, bound)
            layer_params.append((w_ih, w_hh, b_ih, b_hh))
        lstm_params.append(layer_params)
    key, kw, kb = jax.random.split(key, 3)
    fc_in = 2 * hidden_size
    fc_bound = 1.0 / jnp.sqrt(jnp.float32(fc_in))
    fc_w = jax.random.uniform(kw, (1, fc_in), jnp.float32, -fc_bound, fc_bound)
    fc_b = jax.random.uniform(kb, (1,), jnp.float32, -fc_bound, fc_bound)
    return lstm_params, fc_w, fc_b


# -----------------------------------------------------------------------------
if __name__ == "__main__":
    def run_case(batch, seq, input_size, hidden_size, num_layers, seed,
                 chunk_rows_target=256):
        key = jax.random.PRNGKey(seed)
        key, kx = jax.random.split(key)
        x = jax.random.normal(kx, (batch, seq, input_size), jnp.float32)
        lstm_params, fc_w, fc_b = init_params(key, input_size, hidden_size,
                                              num_layers)

        fwd = jax.jit(functools.partial(lstm_model_forward,
                                        chunk_rows_target=chunk_rows_target))
        out = jax.block_until_ready(fwd(x, lstm_params, fc_w, fc_b))

        ref_bf16 = jax.block_until_ready(
            ref_forward(x, lstm_params, fc_w, fc_b, bf16_matmuls=True))
        ref_f32 = jax.block_until_ready(
            ref_forward(x, lstm_params, fc_w, fc_b, bf16_matmuls=False))

        assert out.shape == (batch, 1), out.shape
        # tight check vs a reference using the same bf16-operand matmul numerics
        assert jnp.allclose(out, ref_bf16, atol=2e-3, rtol=2e-3), (out, ref_bf16)
        # loose check vs full-f32 spec math (bf16 MXU operands => small drift)
        assert jnp.allclose(out, ref_f32, atol=5e-2, rtol=5e-2), (out, ref_f32)

    # shapes implied by the module: batch_first (B, T, input_size)
    run_case(batch=2, seq=8, input_size=4, hidden_size=32, num_layers=2, seed=0)
    # T not a multiple of the chunk -> exercises padded-time masking
    run_case(batch=2, seq=9, input_size=4, hidden_size=32, num_layers=2, seed=1)
    # multi-chunk grid (n_chunks=3), odd batch, padded time, single layer
    run_case(batch=3, seq=20, input_size=5, hidden_size=24, num_layers=1, seed=2,
             chunk_rows_target=8)

    print("KERNEL_OK")
</pallas_src>

<mosaic_0001>
module attributes {stable_mosaic.version = 11 : i64} {
  func.func @_lstm_layer_kernel(%arg0: i32, %arg1: memref<16x512xf32, #tpu.memory_space<vmem>>, %arg2: memref<16x512xf32, #tpu.memory_space<vmem>>, %arg3: memref<128x512xbf16, #tpu.memory_space<vmem>>, %arg4: memref<128x512xbf16, #tpu.memory_space<vmem>>, %arg5: memref<16x128xf32, #tpu.memory_space<vmem>>, %arg6: memref<16x128xf32, #tpu.memory_space<vmem>>, %arg7: memref<2x128xf32, #tpu.memory_space<vmem>>, %arg8: memref<2x128xf32, #tpu.memory_space<vmem>>, %arg9: memref<2x128xf32, #tpu.memory_space<vmem>>, %arg10: memref<2x128xf32, #tpu.memory_space<vmem>>) attributes {dimension_semantics = [#tpu.dimension_semantics<arbitrary>], iteration_bounds = array<i64: 1>, scalar_prefetch = 0 : i64, scratch_operands = 4 : i64, tpu.core_type = #tpu.core_type<tc>, window_params = [{transform_indices = @transform_0, window_bounds = array<i64: 16, 512>}, {transform_indices = @transform_1, window_bounds = array<i64: 16, 512>}, {pipeline_mode = #tpu.pipeline_mode<synchronous>, transform_indices = @transform_2, window_bounds = array<i64: 128, 512>}, {pipeline_mode = #tpu.pipeline_mode<synchronous>, transform_indices = @transform_3, window_bounds = array<i64: 128, 512>}, {transform_indices = @transform_4, window_bounds = array<i64: 16, 128>}, {transform_indices = @transform_5, window_bounds = array<i64: 16, 128>}]} {
    %c0_i32 = arith.constant 0 : i32
    %0 = arith.cmpi eq, %arg0, %c0_i32 : i32
    %1 = arith.extui %0 : i1 to i32
    %c0_i32_0 = arith.constant 0 : i32
    %2 = arith.cmpi ne, %1, %c0_i32_0 : i32
    scf.if %2 {
      %cst_418 = arith.constant 0.000000e+00 : f32
      %709 = vector.broadcast %cst_418 : f32 to vector<2x128xf32>
      %c0_419 = arith.constant 0 : index
      %c0_420 = arith.constant 0 : index
      %710 = vector.load %arg7[%c0_419, %c0_420] : memref<2x128xf32, #tpu.memory_space<vmem>>, vector<2x128xf32>
      tpu.vector_store %arg7[%c0_419, %c0_420], %709 {strides = array<i32>} : memref<2x128xf32, #tpu.memory_space<vmem>>, vector<2x128xf32>,
      %cst_421 = arith.constant 0.000000e+00 : f32
      %711 = vector.broadcast %cst_421 : f32 to vector<2x128xf32>
      %c0_422 = arith.constant 0 : index
      %c0_423 = arith.constant 0 : index
      %712 = vector.load %arg8[%c0_422, %c0_423] : memref<2x128xf32, #tpu.memory_space<vmem>>, vector<2x128xf32>
      tpu.vector_store %arg8[%c0_422, %c0_423], %711 {strides = array<i32>} : memref<2x128xf32, #tpu.memory_space<vmem>>, vector<2x128xf32>,
      %cst_424 = arith.constant 0.000000e+00 : f32
      %713 = vector.broadcast %cst_424 : f32 to vector<2x128xf32>
      %c0_425 = arith.constant 0 : index
      %c0_426 = arith.constant 0 : index
      %714 = vector.load %arg9[%c0_425, %c0_426] : memref<2x128xf32, #tpu.memory_space<vmem>>, vector<2x128xf32>
      tpu.vector_store %arg9[%c0_425, %c0_426], %713 {strides = array<i32>} : memref<2x128xf32, #tpu.memory_space<vmem>>, vector<2x128xf32>,
      %cst_427 = arith.constant 0.000000e+00 : f32
      %715 = vector.broadcast %cst_427 : f32 to vector<2x128xf32>
      %c0_428 = arith.constant 0 : index
      %c0_429 = arith.constant 0 : index
      %716 = vector.load %arg10[%c0_428, %c0_429] : memref<2x128xf32, #tpu.memory_space<vmem>>, vector<2x128xf32>
      tpu.vector_store %arg10[%c0_428, %c0_429], %715 {strides = array<i32>} : memref<2x128xf32, #tpu.memory_space<vmem>>, vector<2x128xf32>,
    } else {
    }
    %c0_i32_1 = arith.constant 0 : i32
    %3 = arith.subi %c0_i32_1, %arg0 : i32
    %c8_i32 = arith.constant 8 : i32
    %4 = arith.muli %3, %c8_i32 : i32
    %c0 = arith.constant 0 : index
    %c0_2 = arith.constant 0 : index
    %5 = vector.load %arg1[%c0, %c0_2] : memref<16x512xf32, #tpu.memory_space<vmem>>, vector<2x512xf32>
    %c0_3 = arith.constant 0 : index
    %c0_4 = arith.constant 0 : index
    %6 = vector.load %arg7[%c0_3, %c0_4] : memref<2x128xf32, #tpu.memory_space<vmem>>, vector<2x128xf32>
    %7 = arith.truncf %6 : vector<2x128xf32> to vector<2x128xbf16>
    %c0_5 = arith.constant 0 : index
    %c0_6 = arith.constant 0 : index
    %8 = vector.load %arg3[%c0_5, %c0_6] : memref<128x512xbf16, #tpu.memory_space<vmem>>, vector<128x512xbf16>
    %cst = arith.constant dense<0.000000e+00> : vector<2x512xf32>
    %9 = tpu.matmul %7, %8, %cst {dimension_numbers = #tpu.dot_dimension_numbers<[1], [0], [0], [1], [0, 0, 1, 1], [], []>} : vector<2x128xbf16>, vector<128x512xbf16>, vector<2x512xf32> -> vector<2x512xf32>
    %10 = arith.addf %5, %9 : vector<2x512xf32>
    %c0_7 = arith.constant 0 : index
    %c0_8 = arith.constant 0 : index
    %11 = vector.load %arg8[%c0_7, %c0_8] : memref<2x128xf32, #tpu.memory_space<vmem>>, vector<2x128xf32>
    %12 = vector.extract_strided_slice %10 {offsets = [0, 0], sizes = [2, 128], strides = [1, 1]} : vector<2x512xf32> to vector<2x128xf32>
    %cst_9 = arith.constant 5.000000e-01 : f32
    %13 = vector.broadcast %cst_9 : f32 to vector<2x128xf32>
    %14 = arith.mulf %13, %12 : vector<2x128xf32>
    %15 = math.tanh %14 : vector<2x128xf32>
    %cst_10 = arith.constant 5.000000e-01 : f32
    %16 = vector.broadcast %cst_10 : f32 to vector<2x128xf32>
    %17 = arith.mulf %16, %15 : vector<2x128xf32>
    %cst_11 = arith.constant 5.000000e-01 : f32
    %18 = vector.broadcast %cst_11 : f32 to vector<2x128xf32>
    %19 = arith.addf %17, %18 : vector<2x128xf32>
    %20 = vector.extract_strided_slice %10 {offsets = [0, 128], sizes = [2, 128], strides = [1, 1]} : vector<2x512xf32> to vector<2x128xf32>
    %cst_12 = arith.constant 5.000000e-01 : f32
    %21 = vector.broadcast %cst_12 : f32 to vector<2x128xf32>
    %22 = arith.mulf %21, %20 : vector<2x128xf32>
    %23 = math.tanh %22 : vector<2x128xf32>
    %cst_13 = arith.constant 5.000000e-01 : f32
    %24 = vector.broadcast %cst_13 : f32 to vector<2x128xf32>
    %25 = arith.mulf %24, %23 : vector<2x128xf32>
    %cst_14 = arith.constant 5.000000e-01 : f32
    %26 = vector.broadcast %cst_14 : f32 to vector<2x128xf32>
    %27 = arith.addf %25, %26 : vector<2x128xf32>
    %28 = vector.extract_strided_slice %10 {offsets = [0, 256], sizes = [2, 128], strides = [1, 1]} : vector<2x512xf32> to vector<2x128xf32>
    %29 = math.tanh %28 : vector<2x128xf32>
    %30 = vector.extract_strided_slice %10 {offsets = [0, 384], sizes = [2, 128], strides = [1, 1]} : vector<2x512xf32> to vector<2x128xf32>
    %cst_15 = arith.constant 5.000000e-01 : f32
    %31 = vector.broadcast %cst_15 : f32 to vector<2x128xf32>
    %32 = arith.mulf %31, %30 : vector<2x128xf32>
    %33 = math.tanh %32 : vector<2x128xf32>
    %cst_16 = arith.constant 5.000000e-01 : f32
    %34 = vector.broadcast %cst_16 : f32 to vector<2x128xf32>
    %35 = arith.mulf %34, %33 : vector<2x128xf32>
    %cst_17 = arith.constant 5.000000e-01 : f32
    %36 = vector.broadcast %cst_17 : f32 to vector<2x128xf32>
    %37 = arith.addf %35, %36 : vector<2x128xf32>
    %38 = arith.mulf %27, %11 : vector<2x128xf32>
    %39 = arith.mulf %19, %29 : vector<2x128xf32>
    %40 = arith.addf %38, %39 : vector<2x128xf32>
    %41 = math.tanh %40 : vector<2x128xf32>
    %42 = arith.mulf %37, %41 : vector<2x128xf32>
    %c0_18 = arith.constant 0 : index
    %c0_19 = arith.constant 0 : index
    %43 = vector.load %arg7[%c0_18, %c0_19] : memref<2x128xf32, #tpu.memory_space<vmem>>, vector<2x128xf32>
    tpu.vector_store %arg7[%c0_18, %c0_19], %42 {strides = array<i32>} : memref<2x128xf32, #tpu.memory_space<vmem>>, vector<2x128xf32>,
    %c0_20 = arith.constant 0 : index
    %c0_21 = arith.constant 0 : index
    %44 = vector.load %arg8[%c0_20, %c0_21] : memref<2x128xf32, #tpu.memory_space<vmem>>, vector<2x128xf32>
    tpu.vector_store %arg8[%c0_20, %c0_21], %40 {strides = array<i32>} : memref<2x128xf32, #tpu.memory_space<vmem>>, vector<2x128xf32>,
    %c0_22 = arith.constant 0 : index
    %c0_23 = arith.constant 0 : index
    %45 = vector.load %arg5[%c0_22, %c0_23] : memref<16x128xf32, #tpu.memory_space<vmem>>, vector<2x128xf32>
    tpu.vector_store %arg5[%c0_22, %c0_23], %42 {strides = array<i32>} : memref<16x128xf32, #tpu.memory_space<vmem>>, vector<2x128xf32>,
    %c14 = arith.constant 14 : index
    %c0_24 = arith.constant 0 : index
    %46 = vector.load %arg2[%c14, %c0_24] : memref<16x512xf32, #tpu.memory_space<vmem>>, vector<2x512xf32>
    %c0_25 = arith.constant 0 : index
    %c0_26 = arith.constant 0 : index
    %47 = vector.load %arg9[%c0_25, %c0_26] : memref<2x128xf32, #tpu.memory_space<vmem>>, vector<2x128xf32>
    %48 = arith.truncf %47 : vector<2x128xf32> to vector<2x128xbf16>
    %c0_27 = arith.constant 0 : index
    %c0_28 = arith.constant 0 : index
    %49 = vector.load %arg4[%c0_27, %c0_28] : memref<128x512xbf16, #tpu.memory_space<vmem>>, vector<128x512xbf16>
    %cst_29 = arith.constant dense<0.000000e+00> : vector<2x512xf32>
    %50 = tpu.matmul %48, %49, %cst_29 {dimension_numbers = #tpu.dot_dimension_numbers<[1], [0], [0], [1], [0, 0, 1, 1], [], []>} : vector<2x128xbf16>, vector<128x512xbf16>, vector<2x512xf32> -> vector<2x512xf32>
    %51 = arith.addf %46, %50 : vector<2x512xf32>
    %c0_30 = arith.constant 0 : index
    %c0_31 = arith.constant 0 : index
    %52 = vector.load %arg10[%c0_30, %c0_31] : memref<2x128xf32, #tpu.memory_space<vmem>>, vector<2x128xf32>
    %53 = vector.extract_strided_slice %51 {offsets = [0, 0], sizes = [2, 128], strides = [1, 1]} : vector<2x512xf32> to vector<2x128xf32>
    %cst_32 = arith.constant 5.000000e-01 : f32
    %54 = vector.broadcast %cst_32 : f32 to vector<2x128xf32>
    %55 = arith.mulf %54, %53 : vector<2x128xf32>
    %56 = math.tanh %55 : vector<2x128xf32>
    %cst_33 = arith.constant 5.000000e-01 : f32
    %57 = vector.broadcast %cst_33 : f32 to vector<2x128xf32>
    %58 = arith.mulf %57, %56 : vector<2x128xf32>
    %cst_34 = arith.constant 5.000000e-01 : f32
    %59 = vector.broadcast %cst_34 : f32 to vector<2x128xf32>
    %60 = arith.addf %58, %59 : vector<2x128xf32>
    %61 = vector.extract_strided_slice %51 {offsets = [0, 128], sizes = [2, 128], strides = [1, 1]} : vector<2x512xf32> to vector<2x128xf32>
    %cst_35 = arith.constant 5.000000e-01 : f32
    %62 = vector.broadcast %cst_35 : f32 to vector<2x128xf32>
    %63 = arith.mulf %62, %61 : vector<2x128xf32>
    %64 = math.tanh %63 : vector<2x128xf32>
    %cst_36 = arith.constant 5.000000e-01 : f32
    %65 = vector.broadcast %cst_36 : f32 to vector<2x128xf32>
    %66 = arith.mulf %65, %64 : vector<2x128xf32>
    %cst_37 = arith.constant 5.000000e-01 : f32
    %67 = vector.broadcast %cst_37 : f32 to vector<2x128xf32>
    %68 = arith.addf %66, %67 : vector<2x128xf32>
    %69 = vector.extract_strided_slice %51 {offsets = [0, 256], sizes = [2, 128], strides = [1, 1]} : vector<2x512xf32> to vector<2x128xf32>
    %70 = math.tanh %69 : vector<2x128xf32>
    %71 = vector.extract_strided_slice %51 {offsets = [0, 384], sizes = [2, 128], strides = [1, 1]} : vector<2x512xf32> to vector<2x128xf32>
    %cst_38 = arith.constant 5.000000e-01 : f32
    %72 = vector.broadcast %cst_38 : f32 to vector<2x128xf32>
    %73 = arith.mulf %72, %71 : vector<2x128xf32>
    %74 = math.tanh %73 : vector<2x128xf32>
    %cst_39 = arith.constant 5.000000e-01 : f32
    %75 = vector.broadcast %cst_39 : f32 to vector<2x128xf32>
    %76 = arith.mulf %75, %74 : vector<2x128xf32>
    %cst_40 = arith.constant 5.000000e-01 : f32
    %77 = vector.broadcast %cst_40 : f32 to vector<2x128xf32>
    %78 = arith.addf %76, %77 : vector<2x128xf32>
    %79 = arith.mulf %68, %52 : vector<2x128xf32>
    %80 = arith.mulf %60, %70 : vector<2x128xf32>
    %81 = arith.addf %79, %80 : vector<2x128xf32>
    %82 = math.tanh %81 : vector<2x128xf32>
    %83 = arith.mulf %78, %82 : vector<2x128xf32>
    %c7_i32 = arith.constant 7 : i32
    %84 = arith.addi %4, %c7_i32 : i32
    %c8_i32_41 = arith.constant 8 : i32
    %85 = arith.cmpi slt, %84, %c8_i32_41 : i32
    %c0_42 = arith.constant 0 : index
    %c0_43 = arith.constant 0 : index
    %86 = vector.load %arg9[%c0_42, %c0_43] : memref<2x128xf32, #tpu.memory_space<vmem>>, vector<2x128xf32>
    %87 = arith.select %85, %83, %86 : vector<2x128xf32>
    %c0_44 = arith.constant 0 : index
    %c0_45 = arith.constant 0 : index
    %88 = vector.load %arg9[%c0_44, %c0_45] : memref<2x128xf32, #tpu.memory_space<vmem>>, vector<2x128xf32>
    tpu.vector_store %arg9[%c0_44, %c0_45], %87 {strides = array<i32>} : memref<2x128xf32, #tpu.memory_space<vmem>>, vector<2x128xf32>,
    %c0_46 = arith.constant 0 : index
    %c0_47 = arith.constant 0 : index
    %89 = vector.load %arg10[%c0_46, %c0_47] : memref<2x128xf32, #tpu.memory_space<vmem>>, vector<2x128xf32>
    %90 = arith.select %85, %81, %89 : vector<2x128xf32>
    %c0_48 = arith.constant 0 : index
    %c0_49 = arith.constant 0 : index
    %91 = vector.load %arg10[%c0_48, %c0_49] : memref<2x128xf32, #tpu.memory_space<vmem>>, vector<2x128xf32>
    tpu.vector_store %arg10[%c0_48, %c0_49], %90 {strides = array<i32>} : memref<2x128xf32, #tpu.memory_space<vmem>>, vector<2x128xf32>,
    %c14_50 = arith.constant 14 : index
    %c0_51 = arith.constant 0 : index
    %92 = vector.load %arg6[%c14_50, %c0_51] : memref<16x128xf32, #tpu.memory_space<vmem>>, vector<2x128xf32>
    tpu.vector_store %arg6[%c14_50, %c0_51], %83 {strides = array<i32>} : memref<16x128xf32, #tpu.memory_space<vmem>>, vector<2x128xf32>,
    %c2 = arith.constant 2 : index
    %c0_52 = arith.constant 0 : index
    %93 = vector.load %arg1[%c2, %c0_52] : memref<16x512xf32, #tpu.memory_space<vmem>>, vector<2x512xf32>
    %c0_53 = arith.constant 0 : index
    %c0_54 = arith.constant 0 : index
    %94 = vector.load %arg7[%c0_53, %c0_54] : memref<2x128xf32, #tpu.memory_space<vmem>>, vector<2x128xf32>
    %95 = arith.truncf %94 : vector<2x128xf32> to vector<2x128xbf16>
    %c0_55 = arith.constant 0 : index
    %c0_56 = arith.constant 0 : index
    %96 = vector.load %arg3[%c0_55, %c0_56] : memref<128x512xbf16, #tpu.memory_space<vmem>>, vector<128x512xbf16>
    %cst_57 = arith.constant dense<0.000000e+00> : vector<2x512xf32>
    %97 = tpu.matmul %95, %96, %cst_57 {dimension_numbers = #tpu.dot_dimension_numbers<[1], [0], [0], [1], [0, 0, 1, 1], [], []>} : vector<2x128xbf16>, vector<128x512xbf16>, vector<2x512xf32> -> vector<2x512xf32>
    %98 = arith.addf %93, %97 : vector<2x512xf32>
    %c0_58 = arith.constant 0 : index
    %c0_59 = arith.constant 0 : index
    %99 = vector.load %arg8[%c0_58, %c0_59] : memref<2x128xf32, #tpu.memory_space<vmem>>, vector<2x128xf32>
    %100 = vector.extract_strided_slice %98 {offsets = [0, 0], sizes = [2, 128], strides = [1, 1]} : vector<2x512xf32> to vector<2x128xf32>
    %cst_60 = arith.constant 5.000000e-01 : f32
    %101 = vector.broadcast %cst_60 : f32 to vector<2x128xf32>
    %102 = arith.mulf %101, %100 : vector<2x128xf32>
    %103 = math.tanh %102 : vector<2x128xf32>
    %cst_61 = arith.constant 5.000000e-01 : f32
    %104 = vector.broadcast %cst_61 : f32 to vector<2x128xf32>
    %105 = arith.mulf %104, %103 : vector<2x128xf32>
    %cst_62 = arith.constant 5.000000e-01 : f32
    %106 = vector.broadcast %cst_62 : f32 to vector<2x128xf32>
    %107 = arith.addf %105, %106 : vector<2x128xf32>
    %108 = vector.extract_strided_slice %98 {offsets = [0, 128], sizes = [2, 128], strides = [1, 1]} : vector<2x512xf32> to vector<2x128xf32>
    %cst_63 = arith.constant 5.000000e-01 : f32
    %109 = vector.broadcast %cst_63 : f32 to vector<2x128xf32>
    %110 = arith.mulf %109, %108 : vector<2x128xf32>
    %111 = math.tanh %110 : vector<2x128xf32>
    %cst_64 = arith.constant 5.000000e-01 : f32
    %112 = vector.broadcast %cst_64 : f32 to vector<2x128xf32>
    %113 = arith.mulf %112, %111 : vector<2x128xf32>
    %cst_65 = arith.constant 5.000000e-01 : f32
    %114 = vector.broadcast %cst_65 : f32 to vector<2x128xf32>
    %115 = arith.addf %113, %114 : vector<2x128xf32>
    %116 = vector.extract_strided_slice %98 {offsets = [0, 256], sizes = [2, 128], strides = [1, 1]} : vector<2x512xf32> to vector<2x128xf32>
    %117 = math.tanh %116 : vector<2x128xf32>
    %118 = vector.extract_strided_slice %98 {offsets = [0, 384], sizes = [2, 128], strides = [1, 1]} : vector<2x512xf32> to vector<2x128xf32>
    %cst_66 = arith.constant 5.000000e-01 : f32
    %119 = vector.broadcast %cst_66 : f32 to vector<2x128xf32>
    %120 = arith.mulf %119, %118 : vector<2x128xf32>
    %121 = math.tanh %120 : vector<2x128xf32>
    %cst_67 = arith.constant 5.000000e-01 : f32
    %122 = vector.broadcast %cst_67 : f32 to vector<2x128xf32>
    %123 = arith.mulf %122, %121 : vector<2x128xf32>
    %cst_68 = arith.constant 5.000000e-01 : f32
    %124 = vector.broadcast %cst_68 : f32 to vector<2x128xf32>
    %125 = arith.addf %123, %124 : vector<2x128xf32>
    %126 = arith.mulf %115, %99 : vector<2x128xf32>
    %127 = arith.mulf %107, %117 : vector<2x128xf32>
    %128 = arith.addf %126, %127 : vector<2x128xf32>
    %129 = math.tanh %128 : vector<2x128xf32>
    %130 = arith.mulf %125, %129 : vector<2x128xf32>
    %c0_69 = arith.constant 0 : index
    %c0_70 = arith.constant 0 : index
    %131 = vector.load %arg7[%c0_69, %c0_70] : memref<2x128xf32, #tpu.memory_space<vmem>>, vector<2x128xf32>
    tpu.vector_store %arg7[%c0_69, %c0_70], %130 {strides = array<i32>} : memref<2x128xf32, #tpu.memory_space<vmem>>, vector<2x128xf32>,
    %c0_71 = arith.constant 0 : index
    %c0_72 = arith.constant 0 : index
    %132 = vector.load %arg8[%c0_71, %c0_72] : memref<2x128xf32, #tpu.memory_space<vmem>>, vector<2x128xf32>
    tpu.vector_store %arg8[%c0_71, %c0_72], %128 {strides = array<i32>} : memref<2x128xf32, #tpu.memory_space<vmem>>, vector<2x128xf32>,
    %c2_73 = arith.constant 2 : index
    %c0_74 = arith.constant 0 : index
    %133 = vector.load %arg5[%c2_73, %c0_74] : memref<16x128xf32, #tpu.memory_space<vmem>>, vector<2x128xf32>
    tpu.vector_store %arg5[%c2_73, %c0_74], %130 {strides = array<i32>} : memref<16x128xf32, #tpu.memory_space<vmem>>, vector<2x128xf32>,
    %c12 = arith.constant 12 : index
    %c0_75 = arith.constant 0 : index
    %134 = vector.load %arg2[%c12, %c0_75] : memref<16x512xf32, #tpu.memory_space<vmem>>, vector<2x512xf32>
    %c0_76 = arith.constant 0 : index
    %c0_77 = arith.constant 0 : index
    %135 = vector.load %arg9[%c0_76, %c0_77] : memref<2x128xf32, #tpu.memory_space<vmem>>, vector<2x128xf32>
    %136 = arith.truncf %135 : vector<2x128xf32> to vector<2x128xbf16>
    %c0_78 = arith.constant 0 : index
    %c0_79 = arith.constant 0 : index
    %137 = vector.load %arg4[%c0_78, %c0_79] : memref<128x512xbf16, #tpu.memory_space<vmem>>, vector<128x512xbf16>
    %cst_80 = arith.constant dense<0.000000e+00> : vector<2x512xf32>
    %138 = tpu.matmul %136, %137, %cst_80 {dimension_numbers = #tpu.dot_dimension_numbers<[1], [0], [0], [1], [0, 0, 1, 1], [], []>} : vector<2x128xbf16>, vector<128x512xbf16>, vector<2x512xf32> -> vector<2x512xf32>
    %139 = arith.addf %134, %138 : vector<2x512xf32>
    %c0_81 = arith.constant 0 : index
    %c0_82 = arith.constant 0 : index
    %140 = vector.load %arg10[%c0_81, %c0_82] : memref<2x128xf32, #tpu.memory_space<vmem>>, vector<2x128xf32>
    %141 = vector.extract_strided_slice %139 {offsets = [0, 0], sizes = [2, 128], strides = [1, 1]} : vector<2x512xf32> to vector<2x128xf32>
    %cst_83 = arith.constant 5.000000e-01 : f32
    %142 = vector.broadcast %cst_83 : f32 to vector<2x128xf32>
    %143 = arith.mulf %142, %141 : vector<2x128xf32>
    %144 = math.tanh %143 : vector<2x128xf32>
    %cst_84 = arith.constant 5.000000e-01 : f32
    %145 = vector.broadcast %cst_84 : f32 to vector<2x128xf32>
    %146 = arith.mulf %145, %144 : vector<2x128xf32>
    %cst_85 = arith.constant 5.000000e-01 : f32
    %147 = vector.broadcast %cst_85 : f32 to vector<2x128xf32>
    %148 = arith.addf %146, %147 : vector<2x128xf32>
    %149 = vector.extract_strided_slice %139 {offsets = [0, 128], sizes = [2, 128], strides = [1, 1]} : vector<2x512xf32> to vector<2x128xf32>
    %cst_86 = arith.constant 5.000000e-01 : f32
    %150 = vector.broadcast %cst_86 : f32 to vector<2x128xf32>
    %151 = arith.mulf %150, %149 : vector<2x128xf32>
    %152 = math.tanh %151 : vector<2x128xf32>
    %cst_87 = arith.constant 5.000000e-01 : f32
    %153 = vector.broadcast %cst_87 : f32 to vector<2x128xf32>
    %154 = arith.mulf %153, %152 : vector<2x128xf32>
    %cst_88 = arith.constant 5.000000e-01 : f32
    %155 = vector.broadcast %cst_88 : f32 to vector<2x128xf32>
    %156 = arith.addf %154, %155 : vector<2x128xf32>
    %157 = vector.extract_strided_slice %139 {offsets = [0, 256], sizes = [2, 128], strides = [1, 1]} : vector<2x512xf32> to vector<2x128xf32>
    %158 = math.tanh %157 : vector<2x128xf32>
    %159 = vector.extract_strided_slice %139 {offsets = [0, 384], sizes = [2, 128], strides = [1, 1]} : vector<2x512xf32> to vector<2x128xf32>
    %cst_89 = arith.constant 5.000000e-01 : f32
    %160 = vector.broadcast %cst_89 : f32 to vector<2x128xf32>
    %161 = arith.mulf %160, %159 : vector<2x128xf32>
    %162 = math.tanh %161 : vector<2x128xf32>
    %cst_90 = arith.constant 5.000000e-01 : f32
    %163 = vector.broadcast %cst_90 : f32 to vector<2x128xf32>
    %164 = arith.mulf %163, %162 : vector<2x128xf32>
    %cst_91 = arith.constant 5.000000e-01 : f32
    %165 = vector.broadcast %cst_91 : f32 to vector<2x128xf32>
    %166 = arith.addf %164, %165 : vector<2x128xf32>
    %167 = arith.mulf %156, %140 : vector<2x128xf32>
    %168 = arith.mulf %148, %158 : vector<2x128xf32>
    %169 = arith.addf %167, %168 : vector<2x128xf32>
    %170 = math.tanh %169 : vector<2x128xf32>
    %171 = arith.mulf %166, %170 : vector<2x128xf32>
    %c6_i32 = arith.constant 6 : i32
    %172 = arith.addi %4, %c6_i32 : i32
    %c8_i32_92 = arith.constant 8 : i32
    %173 = arith.cmpi slt, %172, %c8_i32_92 : i32
    %c0_93 = arith.constant 0 : index
    %c0_94 = arith.constant 0 : index
    %174 = vector.load %arg9[%c0_93, %c0_94] : memref<2x128xf32, #tpu.memory_space<vmem>>, vector<2x128xf32>
    %175 = arith.select %173, %171, %174 : vector<2x128xf32>
    %c0_95 = arith.constant 0 : index
    %c0_96 = arith.constant 0 : index
    %176 = vector.load %arg9[%c0_95, %c0_96] : memref<2x128xf32, #tpu.memory_space<vmem>>, vector<2x128xf32>
    tpu.vector_store %arg9[%c0_95, %c0_96], %175 {strides = array<i32>} : memref<2x128xf32, #tpu.memory_space<vmem>>, vector<2x128xf32>,
    %c0_97 = arith.constant 0 : index
    %c0_98 = arith.constant 0 : index
    %177 = vector.load %arg10[%c0_97, %c0_98] : memref<2x128xf32, #tpu.memory_space<vmem>>, vector<2x128xf32>
    %178 = arith.select %173, %169, %177 : vector<2x128xf32>
    %c0_99 = arith.constant 0 : index
    %c0_100 = arith.constant 0 : index
    %179 = vector.load %arg10[%c0_99, %c0_100] : memref<2x128xf32, #tpu.memory_space<vmem>>, vector<2x128xf32>
    tpu.vector_store %arg10[%c0_99, %c0_100], %178 {strides = array<i32>} : memref<2x128xf32, #tpu.memory_space<vmem>>, vector<2x128xf32>,
    %c12_101 = arith.constant 12 : index
    %c0_102 = arith.constant 0 : index
    %180 = vector.load %arg6[%c12_101, %c0_102] : memref<16x128xf32, #tpu.memory_space<vmem>>, vector<2x128xf32>
    tpu.vector_store %arg6[%c12_101, %c0_102], %171 {strides = array<i32>} : memref<16x128xf32, #tpu.memory_space<vmem>>, vector<2x128xf32>,
    %c4 = arith.constant 4 : index
    %c0_103 = arith.constant 0 : index
    %181 = vector.load %arg1[%c4, %c0_103] : memref<16x512xf32, #tpu.memory_space<vmem>>, vector<2x512xf32>
    %c0_104 = arith.constant 0 : index
    %c0_105 = arith.constant 0 : index
    %182 = vector.load %arg7[%c0_104, %c0_105] : memref<2x128xf32, #tpu.memory_space<vmem>>, vector<2x128xf32>
    %183 = arith.truncf %182 : vector<2x128xf32> to vector<2x128xbf16>
    %c0_106 = arith.constant 0 : index
    %c0_107 = arith.constant 0 : index
    %184 = vector.load %arg3[%c0_106, %c0_107] : memref<128x512xbf16, #tpu.memory_space<vmem>>, vector<128x512xbf16>
    %cst_108 = arith.constant dense<0.000000e+00> : vector<2x512xf32>
    %185 = tpu.matmul %183, %184, %cst_108 {dimension_numbers = #tpu.dot_dimension_numbers<[1], [0], [0], [1], [0, 0, 1, 1], [], []>} : vector<2x128xbf16>, vector<128x512xbf16>, vector<2x512xf32> -> vector<2x512xf32>
    %186 = arith.addf %181, %185 : vector<2x512xf32>
    %c0_109 = arith.constant 0 : index
    %c0_110 = arith.constant 0 : index
    %187 = vector.load %arg8[%c0_109, %c0_110] : memref<2x128xf32, #tpu.memory_space<vmem>>, vector<2x128xf32>
    %188 = vector.extract_strided_slice %186 {offsets = [0, 0], sizes = [2, 128], strides = [1, 1]} : vector<2x512xf32> to vector<2x128xf32>
    %cst_111 = arith.constant 5.000000e-01 : f32
    %189 = vector.broadcast %cst_111 : f32 to vector<2x128xf32>
    %190 = arith.mulf %189, %188 : vector<2x128xf32>
    %191 = math.tanh %190 : vector<2x128xf32>
    %cst_112 = arith.constant 5.000000e-01 : f32
    %192 = vector.broadcast %cst_112 : f32 to vector<2x128xf32>
    %193 = arith.mulf %192, %191 : vector<2x128xf32>
    %cst_113 = arith.constant 5.000000e-01 : f32
    %194 = vector.broadcast %cst_113 : f32 to vector<2x128xf32>
    %195 = arith.addf %193, %194 : vector<2x128xf32>
    %196 = vector.extract_strided_slice %186 {offsets = [0, 128], sizes = [2, 128], strides = [1, 1]} : vector<2x512xf32> to vector<2x128xf32>
    %cst_114 = arith.constant 5.000000e-01 : f32
    %197 = vector.broadcast %cst_114 : f32 to vector<2x128xf32>
    %198 = arith.mulf %197, %196 : vector<2x128xf32>
    %199 = math.tanh %198 : vector<2x128xf32>
    %cst_115 = arith.constant 5.000000e-01 : f32
    %200 = vector.broadcast %cst_115 : f32 to vector<2x128xf32>
    %201 = arith.mulf %200, %199 : vector<2x128xf32>
    %cst_116 = arith.constant 5.000000e-01 : f32
    %202 = vector.broadcast %cst_116 : f32 to vector<2x128xf32>
    %203 = arith.addf %201, %202 : vector<2x128xf32>
    %204 = vector.extract_strided_slice %186 {offsets = [0, 256], sizes = [2, 128], strides = [1, 1]} : vector<2x512xf32> to vector<2x128xf32>
    %205 = math.tanh %204 : vector<2x128xf32>
    %206 = vector.extract_strided_slice %186 {offsets = [0, 384], sizes = [2, 128], strides = [1, 1]} : vector<2x512xf32> to vector<2x128xf32>
    %cst_117 = arith.constant 5.000000e-01 : f32
    %207 = vector.broadcast %cst_117 : f32 to vector<2x128xf32>
    %208 = arith.mulf %207, %206 : vector<2x128xf32>
    %209 = math.tanh %208 : vector<2x128xf32>
    %cst_118 = arith.constant 5.000000e-01 : f32
    %210 = vector.broadcast %cst_118 : f32 to vector<2x128xf32>
    %211 = arith.mulf %210, %209 : vector<2x128xf32>
    %cst_119 = arith.constant 5.000000e-01 : f32
    %212 = vector.broadcast %cst_119 : f32 to vector<2x128xf32>
    %213 = arith.addf %211, %212 : vector<2x128xf32>
    %214 = arith.mulf %203, %187 : vector<2x128xf32>
    %215 = arith.mulf %195, %205 : vector<2x128xf32>
    %216 = arith.addf %214, %215 : vector<2x128xf32>
    %217 = math.tanh %216 : vector<2x128xf32>
    %218 = arith.mulf %213, %217 : vector<2x128xf32>
    %c0_120 = arith.constant 0 : index
    %c0_121 = arith.constant 0 : index
    %219 = vector.load %arg7[%c0_120, %c0_121] : memref<2x128xf32, #tpu.memory_space<vmem>>, vector<2x128xf32>
    tpu.vector_store %arg7[%c0_120, %c0_121], %218 {strides = array<i32>} : memref<2x128xf32, #tpu.memory_space<vmem>>, vector<2x128xf32>,
    %c0_122 = arith.constant 0 : index
    %c0_123 = arith.constant 0 : index
    %220 = vector.load %arg8[%c0_122, %c0_123] : memref<2x128xf32, #tpu.memory_space<vmem>>, vector<2x128xf32>
    tpu.vector_store %arg8[%c0_122, %c0_123], %216 {strides = array<i32>} : memref<2x128xf32, #tpu.memory_space<vmem>>, vector<2x128xf32>,
    %c4_124 = arith.constant 4 : index
    %c0_125 = arith.constant 0 : index
    %221 = vector.load %arg5[%c4_124, %c0_125] : memref<16x128xf32, #tpu.memory_space<vmem>>, vector<2x128xf32>
    tpu.vector_store %arg5[%c4_124, %c0_125], %218 {strides = array<i32>} : memref<16x128xf32, #tpu.memory_space<vmem>>, vector<2x128xf32>,
    %c10 = arith.constant 10 : index
    %c0_126 = arith.constant 0 : index
    %222 = vector.load %arg2[%c10, %c0_126] : memref<16x512xf32, #tpu.memory_space<vmem>>, vector<2x512xf32>
    %c0_127 = arith.constant 0 : index
    %c0_128 = arith.constant 0 : index
    %223 = vector.load %arg9[%c0_127, %c0_128] : memref<2x128xf32, #tpu.memory_space<vmem>>, vector<2x128xf32>
    %224 = arith.truncf %223 : vector<2x128xf32> to vector<2x128xbf16>
    %c0_129 = arith.constant 0 : index
    %c0_130 = arith.constant 0 : index
    %225 = vector.load %arg4[%c0_129, %c0_130] : memref<128x512xbf16, #tpu.memory_space<vmem>>, vector<128x512xbf16>
    %cst_131 = arith.constant dense<0.000000e+00> : vector<2x512xf32>
    %226 = tpu.matmul %224, %225, %cst_131 {dimension_numbers = #tpu.dot_dimension_numbers<[1], [0], [0], [1], [0, 0, 1, 1], [], []>} : vector<2x128xbf16>, vector<128x512xbf16>, vector<2x512xf32> -> vector<2x512xf32>
    %227 = arith.addf %222, %226 : vector<2x512xf32>
    %c0_132 = arith.constant 0 : index
    %c0_133 = arith.constant 0 : index
    %228 = vector.load %arg10[%c0_132, %c0_133] : memref<2x128xf32, #tpu.memory_space<vmem>>, vector<2x128xf32>
    %229 = vector.extract_strided_slice %227 {offsets = [0, 0], sizes = [2, 128], strides = [1, 1]} : vector<2x512xf32> to vector<2x128xf32>
    %cst_134 = arith.constant 5.000000e-01 : f32
    %230 = vector.broadcast %cst_134 : f32 to vector<2x128xf32>
    %231 = arith.mulf %230, %229 : vector<2x128xf32>
    %232 = math.tanh %231 : vector<2x128xf32>
    %cst_135 = arith.constant 5.000000e-01 : f32
    %233 = vector.broadcast %cst_135 : f32 to vector<2x128xf32>
    %234 = arith.mulf %233, %232 : vector<2x128xf32>
    %cst_136 = arith.constant 5.000000e-01 : f32
    %235 = vector.broadcast %cst_136 : f32 to vector<2x128xf32>
    %236 = arith.addf %234, %235 : vector<2x128xf32>
    %237 = vector.extract_strided_slice %227 {offsets = [0, 128], sizes = [2, 128], strides = [1, 1]} : vector<2x512xf32> to vector<2x128xf32>
    %cst_137 = arith.constant 5.000000e-01 : f32
    %238 = vector.broadcast %cst_137 : f32 to vector<2x128xf32>
    %239 = arith.mulf %238, %237 : vector<2x128xf32>
    %240 = math.tanh %239 : vector<2x128xf32>
    %cst_138 = arith.constant 5.000000e-01 : f32
    %241 = vector.broadcast %cst_138 : f32 to vector<2x128xf32>
    %242 = arith.mulf %241, %240 : vector<2x128xf32>
    %cst_139 = arith.constant 5.000000e-01 : f32
    %243 = vector.broadcast %cst_139 : f32 to vector<2x128xf32>
    %244 = arith.addf %242, %243 : vector<2x128xf32>
    %245 = vector.extract_strided_slice %227 {offsets = [0, 256], sizes = [2, 128], strides = [1, 1]} : vector<2x512xf32> to vector<2x128xf32>
    %246 = math.tanh %245 : vector<2x128xf32>
    %247 = vector.extract_strided_slice %227 {offsets = [0, 384], sizes = [2, 128], strides = [1, 1]} : vector<2x512xf32> to vector<2x128xf32>
    %cst_140 = arith.constant 5.000000e-01 : f32
    %248 = vector.broadcast %cst_140 : f32 to vector<2x128xf32>
    %249 = arith.mulf %248, %247 : vector<2x128xf32>
    %250 = math.tanh %249 : vector<2x128xf32>
    %cst_141 = arith.constant 5.000000e-01 : f32
    %251 = vector.broadcast %cst_141 : f32 to vector<2x128xf32>
    %252 = arith.mulf %251, %250 : vector<2x128xf32>
    %cst_142 = arith.constant 5.000000e-01 : f32
    %253 = vector.broadcast %cst_142 : f32 to vector<2x128xf32>
    %254 = arith.addf %252, %253 : vector<2x128xf32>
    %255 = arith.mulf %244, %228 : vector<2x128xf32>
    %256 = arith.mulf %236, %246 : vector<2x128xf32>
    %257 = arith.addf %255, %256 : vector<2x128xf32>
    %258 = math.tanh %257 : vector<2x128xf32>
    %259 = arith.mulf %254, %258 : vector<2x128xf32>
    %c5_i32 = arith.constant 5 : i32
    %260 = arith.addi %4, %c5_i32 : i32
    %c8_i32_143 = arith.constant 8 : i32
    %261 = arith.cmpi slt, %260, %c8_i32_143 : i32
    %c0_144 = arith.constant 0 : index
    %c0_145 = arith.constant 0 : index
    %262 = vector.load %arg9[%c0_144, %c0_145] : memref<2x128xf32, #tpu.memory_space<vmem>>, vector<2x128xf32>
    %263 = arith.select %261, %259, %262 : vector<2x128xf32>
    %c0_146 = arith.constant 0 : index
    %c0_147 = arith.constant 0 : index
    %264 = vector.load %arg9[%c0_146, %c0_147] : memref<2x128xf32, #tpu.memory_space<vmem>>, vector<2x128xf32>
    tpu.vector_store %arg9[%c0_146, %c0_147], %263 {strides = array<i32>} : memref<2x128xf32, #tpu.memory_space<vmem>>, vector<2x128xf32>,
    %c0_148 = arith.constant 0 : index
    %c0_149 = arith.constant 0 : index
    %265 = vector.load %arg10[%c0_148, %c0_149] : memref<2x128xf32, #tpu.memory_space<vmem>>, vector<2x128xf32>
    %266 = arith.select %261, %257, %265 : vector<2x128xf32>
    %c0_150 = arith.constant 0 : index
    %c0_151 = arith.constant 0 : index
    %267 = vector.load %arg10[%c0_150, %c0_151] : memref<2x128xf32, #tpu.memory_space<vmem>>, vector<2x128xf32>
    tpu.vector_store %arg10[%c0_150, %c0_151], %266 {strides = array<i32>} : memref<2x128xf32, #tpu.memory_space<vmem>>, vector<2x128xf32>,
    %c10_152 = arith.constant 10 : index
    %c0_153 = arith.constant 0 : index
    %268 = vector.load %arg6[%c10_152, %c0_153] : memref<16x128xf32, #tpu.memory_space<vmem>>, vector<2x128xf32>
    tpu.vector_store %arg6[%c10_152, %c0_153], %259 {strides = array<i32>} : memref<16x128xf32, #tpu.memory_space<vmem>>, vector<2x128xf32>,
    %c6 = arith.constant 6 : index
    %c0_154 = arith.constant 0 : index
    %269 = vector.load %arg1[%c6, %c0_154] : memref<16x512xf32, #tpu.memory_space<vmem>>, vector<2x512xf32>
    %c0_155 = arith.constant 0 : index
    %c0_156 = arith.constant 0 : index
    %270 = vector.load %arg7[%c0_155, %c0_156] : memref<2x128xf32, #tpu.memory_space<vmem>>, vector<2x128xf32>
    %271 = arith.truncf %270 : vector<2x128xf32> to vector<2x128xbf16>
    %c0_157 = arith.constant 0 : index
    %c0_158 = arith.constant 0 : index
    %272 = vector.load %arg3[%c0_157, %c0_158] : memref<128x512xbf16, #tpu.memory_space<vmem>>, vector<128x512xbf16>
    %cst_159 = arith.constant dense<0.000000e+00> : vector<2x512xf32>
    %273 = tpu.matmul %271, %272, %cst_159 {dimension_numbers = #tpu.dot_dimension_numbers<[1], [0], [0], [1], [0, 0, 1, 1], [], []>} : vector<2x128xbf16>, vector<128x512xbf16>, vector<2x512xf32> -> vector<2x512xf32>
    %274 = arith.addf %269, %273 : vector<2x512xf32>
    %c0_160 = arith.constant 0 : index
    %c0_161 = arith.constant 0 : index
    %275 = vector.load %arg8[%c0_160, %c0_161] : memref<2x128xf32, #tpu.memory_space<vmem>>, vector<2x128xf32>
    %276 = vector.extract_strided_slice %274 {offsets = [0, 0], sizes = [2, 128], strides = [1, 1]} : vector<2x512xf32> to vector<2x128xf32>
    %cst_162 = arith.constant 5.000000e-01 : f32
    %277 = vector.broadcast %cst_162 : f32 to vector<2x128xf32>
    %278 = arith.mulf %277, %276 : vector<2x128xf32>
    %279 = math.tanh %278 : vector<2x128xf32>
    %cst_163 = arith.constant 5.000000e-01 : f32
    %280 = vector.broadcast %cst_163 : f32 to vector<2x128xf32>
    %281 = arith.mulf %280, %279 : vector<2x128xf32>
    %cst_164 = arith.constant 5.000000e-01 : f32
    %282 = vector.broadcast %cst_164 : f32 to vector<2x128xf32>
    %283 = arith.addf %281, %282 : vector<2x128xf32>
    %284 = vector.extract_strided_slice %274 {offsets = [0, 128], sizes = [2, 128], strides = [1, 1]} : vector<2x512xf32> to vector<2x128xf32>
    %cst_165 = arith.constant 5.000000e-01 : f32
    %285 = vector.broadcast %cst_165 : f32 to vector<2x128xf32>
    %286 = arith.mulf %285, %284 : vector<2x128xf32>
    %287 = math.tanh %286 : vector<2x128xf32>
    %cst_166 = arith.constant 5.000000e-01 : f32
    %288 = vector.broadcast %cst_166 : f32 to vector<2x128xf32>
    %289 = arith.mulf %288, %287 : vector<2x128xf32>
    %cst_167 = arith.constant 5.000000e-01 : f32
    %290 = vector.broadcast %cst_167 : f32 to vector<2x128xf32>
    %291 = arith.addf %289, %290 : vector<2x128xf32>
    %292 = vector.extract_strided_slice %274 {offsets = [0, 256], sizes = [2, 128], strides = [1, 1]} : vector<2x512xf32> to vector<2x128xf32>
    %293 = math.tanh %292 : vector<2x128xf32>
    %294 = vector.extract_strided_slice %274 {offsets = [0, 384], sizes = [2, 128], strides = [1, 1]} : vector<2x512xf32> to vector<2x128xf32>
    %cst_168 = arith.constant 5.000000e-01 : f32
    %295 = vector.broadcast %cst_168 : f32 to vector<2x128xf32>
    %296 = arith.mulf %295, %294 : vector<2x128xf32>
    %297 = math.tanh %296 : vector<2x128xf32>
    %cst_169 = arith.constant 5.000000e-01 : f32
    %298 = vector.broadcast %cst_169 : f32 to vector<2x128xf32>
    %299 = arith.mulf %298, %297 : vector<2x128xf32>
    %cst_170 = arith.constant 5.000000e-01 : f32
    %300 = vector.broadcast %cst_170 : f32 to vector<2x128xf32>
    %301 = arith.addf %299, %300 : vector<2x128xf32>
    %302 = arith.mulf %291, %275 : vector<2x128xf32>
    %303 = arith.mulf %283, %293 : vector<2x128xf32>
    %304 = arith.addf %302, %303 : vector<2x128xf32>
    %305 = math.tanh %304 : vector<2x128xf32>
    %306 = arith.mulf %301, %305 : vector<2x128xf32>
    %c0_171 = arith.constant 0 : index
    %c0_172 = arith.constant 0 : index
    %307 = vector.load %arg7[%c0_171, %c0_172] : memref<2x128xf32, #tpu.memory_space<vmem>>, vector<2x128xf32>
    tpu.vector_store %arg7[%c0_171, %c0_172], %306 {strides = array<i32>} : memref<2x128xf32, #tpu.memory_space<vmem>>, vector<2x128xf32>,
    %c0_173 = arith.constant 0 : index
    %c0_174 = arith.constant 0 : index
    %308 = vector.load %arg8[%c0_173, %c0_174] : memref<2x128xf32, #tpu.memory_space<vmem>>, vector<2x128xf32>
    tpu.vector_store %arg8[%c0_173, %c0_174], %304 {strides = array<i32>} : memref<2x128xf32, #tpu.memory_space<vmem>>, vector<2x128xf32>,
    %c6_175 = arith.constant 6 : index
    %c0_176 = arith.constant 0 : index
    %309 = vector.load %arg5[%c6_175, %c0_176] : memref<16x128xf32, #tpu.memory_space<vmem>>, vector<2x128xf32>
    tpu.vector_store %arg5[%c6_175, %c0_176], %306 {strides = array<i32>} : memref<16x128xf32, #tpu.memory_space<vmem>>, vector<2x128xf32>,
    %c8 = arith.constant 8 : index
    %c0_177 = arith.constant 0 : index
    %310 = vector.load %arg2[%c8, %c0_177] : memref<16x512xf32, #tpu.memory_space<vmem>>, vector<2x512xf32>
    %c0_178 = arith.constant 0 : index
    %c0_179 = arith.constant 0 : index
    %311 = vector.load %arg9[%c0_178, %c0_179] : memref<2x128xf32, #tpu.memory_space<vmem>>, vector<2x128xf32>
    %312 = arith.truncf %311 : vector<2x128xf32> to vector<2x128xbf16>
    %c0_180 = arith.constant 0 : index
    %c0_181 = arith.constant 0 : index
    %313 = vector.load %arg4[%c0_180, %c0_181] : memref<128x512xbf16, #tpu.memory_space<vmem>>, vector<128x512xbf16>
    %cst_182 = arith.constant dense<0.000000e+00> : vector<2x512xf32>
    %314 = tpu.matmul %312, %313, %cst_182 {dimension_numbers = #tpu.dot_dimension_numbers<[1], [0], [0], [1], [0, 0, 1, 1], [], []>} : vector<2x128xbf16>, vector<128x512xbf16>, vector<2x512xf32> -> vector<2x512xf32>
    %315 = arith.addf %310, %314 : vector<2x512xf32>
    %c0_183 = arith.constant 0 : index
    %c0_184 = arith.constant 0 : index
    %316 = vector.load %arg10[%c0_183, %c0_184] : memref<2x128xf32, #tpu.memory_space<vmem>>, vector<2x128xf32>
    %317 = vector.extract_strided_slice %315 {offsets = [0, 0], sizes = [2, 128], strides = [1, 1]} : vector<2x512xf32> to vector<2x128xf32>
    %cst_185 = arith.constant 5.000000e-01 : f32
    %318 = vector.broadcast %cst_185 : f32 to vector<2x128xf32>
    %319 = arith.mulf %318, %317 : vector<2x128xf32>
    %320 = math.tanh %319 : vector<2x128xf32>
    %cst_186 = arith.constant 5.000000e-01 : f32
    %321 = vector.broadcast %cst_186 : f32 to vector<2x128xf32>
    %322 = arith.mulf %321, %320 : vector<2x128xf32>
    %cst_187 = arith.constant 5.000000e-01 : f32
    %323 = vector.broadcast %cst_187 : f32 to vector<2x128xf32>
    %324 = arith.addf %322, %323 : vector<2x128xf32>
    %325 = vector.extract_strided_slice %315 {offsets = [0, 128], sizes = [2, 128], strides = [1, 1]} : vector<2x512xf32> to vector<2x128xf32>
    %cst_188 = arith.constant 5.000000e-01 : f32
    %326 = vector.broadcast %cst_188 : f32 to vector<2x128xf32>
    %327 = arith.mulf %326, %325 : vector<2x128xf32>
    %328 = math.tanh %327 : vector<2x128xf32>
    %cst_189 = arith.constant 5.000000e-01 : f32
    %329 = vector.broadcast %cst_189 : f32 to vector<2x128xf32>
    %330 = arith.mulf %329, %328 : vector<2x128xf32>
    %cst_190 = arith.constant 5.000000e-01 : f32
    %331 = vector.broadcast %cst_190 : f32 to vector<2x128xf32>
    %332 = arith.addf %330, %331 : vector<2x128xf32>
    %333 = vector.extract_strided_slice %315 {offsets = [0, 256], sizes = [2, 128], strides = [1, 1]} : vector<2x512xf32> to vector<2x128xf32>
    %334 = math.tanh %333 : vector<2x128xf32>
    %335 = vector.extract_strided_slice %315 {offsets = [0, 384], sizes = [2, 128], strides = [1, 1]} : vector<2x512xf32> to vector<2x128xf32>
    %cst_191 = arith.constant 5.000000e-01 : f32
    %336 = vector.broadcast %cst_191 : f32 to vector<2x128xf32>
    %337 = arith.mulf %336, %335 : vector<2x128xf32>
    %338 = math.tanh %337 : vector<2x128xf32>
    %cst_192 = arith.constant 5.000000e-01 : f32
    %339 = vector.broadcast %cst_192 : f32 to vector<2x128xf32>
    %340 = arith.mulf %339, %338 : vector<2x128xf32>
    %cst_193 = arith.constant 5.000000e-01 : f32
    %341 = vector.broadcast %cst_193 : f32 to vector<2x128xf32>
    %342 = arith.addf %340, %341 : vector<2x128xf32>
    %343 = arith.mulf %332, %316 : vector<2x128xf32>
    %344 = arith.mulf %324, %334 : vector<2x128xf32>
    %345 = arith.addf %343, %344 : vector<2x128xf32>
    %346 = math.tanh %345 : vector<2x128xf32>
    %347 = arith.mulf %342, %346 : vector<2x128xf32>
    %c4_i32 = arith.constant 4 : i32
    %348 = arith.addi %4, %c4_i32 : i32
    %c8_i32_194 = arith.constant 8 : i32
    %349 = arith.cmpi slt, %348, %c8_i32_194 : i32
    %c0_195 = arith.constant 0 : index
    %c0_196 = arith.constant 0 : index
    %350 = vector.load %arg9[%c0_195, %c0_196] : memref<2x128xf32, #tpu.memory_space<vmem>>, vector<2x128xf32>
    %351 = arith.select %349, %347, %350 : vector<2x128xf32>
    %c0_197 = arith.constant 0 : index
    %c0_198 = arith.constant 0 : index
    %352 = vector.load %arg9[%c0_197, %c0_198] : memref<2x128xf32, #tpu.memory_space<vmem>>, vector<2x128xf32>
    tpu.vector_store %arg9[%c0_197, %c0_198], %351 {strides = array<i32>} : memref<2x128xf32, #tpu.memory_space<vmem>>, vector<2x128xf32>,
    %c0_199 = arith.constant 0 : index
    %c0_200 = arith.constant 0 : index
    %353 = vector.load %arg10[%c0_199, %c0_200] : memref<2x128xf32, #tpu.memory_space<vmem>>, vector<2x128xf32>
    %354 = arith.select %349, %345, %353 : vector<2x128xf32>
    %c0_201 = arith.constant 0 : index
    %c0_202 = arith.constant 0 : index
    %355 = vector.load %arg10[%c0_201, %c0_202] : memref<2x128xf32, #tpu.memory_space<vmem>>, vector<2x128xf32>
    tpu.vector_store %arg10[%c0_201, %c0_202], %354 {strides = array<i32>} : memref<2x128xf32, #tpu.memory_space<vmem>>, vector<2x128xf32>,
    %c8_203 = arith.constant 8 : index
    %c0_204 = arith.constant 0 : index
    %356 = vector.load %arg6[%c8_203, %c0_204] : memref<16x128xf32, #tpu.memory_space<vmem>>, vector<2x128xf32>
    tpu.vector_store %arg6[%c8_203, %c0_204], %347 {strides = array<i32>} : memref<16x128xf32, #tpu.memory_space<vmem>>, vector<2x128xf32>,
    %c8_205 = arith.constant 8 : index
    %c0_206 = arith.constant 0 : index
    %357 = vector.load %arg1[%c8_205, %c0_206] : memref<16x512xf32, #tpu.memory_space<vmem>>, vector<2x512xf32>
    %c0_207 = arith.constant 0 : index
    %c0_208 = arith.constant 0 : index
    %358 = vector.load %arg7[%c0_207, %c0_208] : memref<2x128xf32, #tpu.memory_space<vmem>>, vector<2x128xf32>
    %359 = arith.truncf %358 : vector<2x128xf32> to vector<2x128xbf16>
    %c0_209 = arith.constant 0 : index
    %c0_210 = arith.constant 0 : index
    %360 = vector.load %arg3[%c0_209, %c0_210] : memref<128x512xbf16, #tpu.memory_space<vmem>>, vector<128x512xbf16>
    %cst_211 = arith.constant dense<0.000000e+00> : vector<2x512xf32>
    %361 = tpu.matmul %359, %360, %cst_211 {dimension_numbers = #tpu.dot_dimension_numbers<[1], [0], [0], [1], [0, 0, 1, 1], [], []>} : vector<2x128xbf16>, vector<128x512xbf16>, vector<2x512xf32> -> vector<2x512xf32>
    %362 = arith.addf %357, %361 : vector<2x512xf32>
    %c0_212 = arith.constant 0 : index
    %c0_213 = arith.constant 0 : index
    %363 = vector.load %arg8[%c0_212, %c0_213] : memref<2x128xf32, #tpu.memory_space<vmem>>, vector<2x128xf32>
    %364 = vector.extract_strided_slice %362 {offsets = [0, 0], sizes = [2, 128], strides = [1, 1]} : vector<2x512xf32> to vector<2x128xf32>
    %cst_214 = arith.constant 5.000000e-01 : f32
    %365 = vector.broadcast %cst_214 : f32 to vector<2x128xf32>
    %366 = arith.mulf %365, %364 : vector<2x128xf32>
    %367 = math.tanh %366 : vector<2x128xf32>
    %cst_215 = arith.constant 5.000000e-01 : f32
    %368 = vector.broadcast %cst_215 : f32 to vector<2x128xf32>
    %369 = arith.mulf %368, %367 : vector<2x128xf32>
    %cst_216 = arith.constant 5.000000e-01 : f32
    %370 = vector.broadcast %cst_216 : f32 to vector<2x128xf32>
    %371 = arith.addf %369, %370 : vector<2x128xf32>
    %372 = vector.extract_strided_slice %362 {offsets = [0, 128], sizes = [2, 128], strides = [1, 1]} : vector<2x512xf32> to vector<2x128xf32>
    %cst_217 = arith.constant 5.000000e-01 : f32
    %373 = vector.broadcast %cst_217 : f32 to vector<2x128xf32>
    %374 = arith.mulf %373, %372 : vector<2x128xf32>
    %375 = math.tanh %374 : vector<2x128xf32>
    %cst_218 = arith.constant 5.000000e-01 : f32
    %376 = vector.broadcast %cst_218 : f32 to vector<2x128xf32>
    %377 = arith.mulf %376, %375 : vector<2x128xf32>
    %cst_219 = arith.constant 5.000000e-01 : f32
    %378 = vector.broadcast %cst_219 : f32 to vector<2x128xf32>
    %379 = arith.addf %377, %378 : vector<2x128xf32>
    %380 = vector.extract_strided_slice %362 {offsets = [0, 256], sizes = [2, 128], strides = [1, 1]} : vector<2x512xf32> to vector<2x128xf32>
    %381 = math.tanh %380 : vector<2x128xf32>
    %382 = vector.extract_strided_slice %362 {offsets = [0, 384], sizes = [2, 128], strides = [1, 1]} : vector<2x512xf32> to vector<2x128xf32>
    %cst_220 = arith.constant 5.000000e-01 : f32
    %383 = vector.broadcast %cst_220 : f32 to vector<2x128xf32>
    %384 = arith.mulf %383, %382 : vector<2x128xf32>
    %385 = math.tanh %384 : vector<2x128xf32>
    %cst_221 = arith.constant 5.000000e-01 : f32
    %386 = vector.broadcast %cst_221 : f32 to vector<2x128xf32>
    %387 = arith.mulf %386, %385 : vector<2x128xf32>
    %cst_222 = arith.constant 5.000000e-01 : f32
    %388 = vector.broadcast %cst_222 : f32 to vector<2x128xf32>
    %389 = arith.addf %387, %388 : vector<2x128xf32>
    %390 = arith.mulf %379, %363 : vector<2x128xf32>
    %391 = arith.mulf %371, %381 : vector<2x128xf32>
    %392 = arith.addf %390, %391 : vector<2x128xf32>
    %393 = math.tanh %392 : vector<2x128xf32>
    %394 = arith.mulf %389, %393 : vector<2x128xf32>
    %c0_223 = arith.constant 0 : index
    %c0_224 = arith.constant 0 : index
    %395 = vector.load %arg7[%c0_223, %c0_224] : memref<2x128xf32, #tpu.memory_space<vmem>>, vector<2x128xf32>
    tpu.vector_store %arg7[%c0_223, %c0_224], %394 {strides = array<i32>} : memref<2x128xf32, #tpu.memory_space<vmem>>, vector<2x128xf32>,
    %c0_225 = arith.constant 0 : index
    %c0_226 = arith.constant 0 : index
    %396 = vector.load %arg8[%c0_225, %c0_226] : memref<2x128xf32, #tpu.memory_space<vmem>>, vector<2x128xf32>
    tpu.vector_store %arg8[%c0_225, %c0_226], %392 {strides = array<i32>} : memref<2x128xf32, #tpu.memory_space<vmem>>, vector<2x128xf32>,
    %c8_227 = arith.constant 8 : index
    %c0_228 = arith.constant 0 : index
    %397 = vector.load %arg5[%c8_227, %c0_228] : memref<16x128xf32, #tpu.memory_space<vmem>>, vector<2x128xf32>
    tpu.vector_store %arg5[%c8_227, %c0_228], %394 {strides = array<i32>} : memref<16x128xf32, #tpu.memory_space<vmem>>, vector<2x128xf32>,
    %c6_229 = arith.constant 6 : index
    %c0_230 = arith.constant 0 : index
    %398 = vector.load %arg2[%c6_229, %c0_230] : memref<16x512xf32, #tpu.memory_space<vmem>>, vector<2x512xf32>
    %c0_231 = arith.constant 0 : index
    %c0_232 = arith.constant 0 : index
    %399 = vector.load %arg9[%c0_231, %c0_232] : memref<2x128xf32, #tpu.memory_space<vmem>>, vector<2x128xf32>
    %400 = arith.truncf %399 : vector<2x128xf32> to vector<2x128xbf16>
    %c0_233 = arith.constant 0 : index
    %c0_234 = arith.constant 0 : index
    %401 = vector.load %arg4[%c0_233, %c0_234] : memref<128x512xbf16, #tpu.memory_space<vmem>>, vector<128x512xbf16>
    %cst_235 = arith.constant dense<0.000000e+00> : vector<2x512xf32>
    %402 = tpu.matmul %400, %401, %cst_235 {dimension_numbers = #tpu.dot_dimension_numbers<[1], [0], [0], [1], [0, 0, 1, 1], [], []>} : vector<2x128xbf16>, vector<128x512xbf16>, vector<2x512xf32> -> vector<2x512xf32>
    %403 = arith.addf %398, %402 : vector<2x512xf32>
    %c0_236 = arith.constant 0 : index
    %c0_237 = arith.constant 0 : index
    %404 = vector.load %arg10[%c0_236, %c0_237] : memref<2x128xf32, #tpu.memory_space<vmem>>, vector<2x128xf32>
    %405 = vector.extract_strided_slice %403 {offsets = [0, 0], sizes = [2, 128], strides = [1, 1]} : vector<2x512xf32> to vector<2x128xf32>
    %cst_238 = arith.constant 5.000000e-01 : f32
    %406 = vector.broadcast %cst_238 : f32 to vector<2x128xf32>
    %407 = arith.mulf %406, %405 : vector<2x128xf32>
    %408 = math.tanh %407 : vector<2x128xf32>
    %cst_239 = arith.constant 5.000000e-01 : f32
    %409 = vector.broadcast %cst_239 : f32 to vector<2x128xf32>
    %410 = arith.mulf %409, %408 : vector<2x128xf32>
    %cst_240 = arith.constant 5.000000e-01 : f32
    %411 = vector.broadcast %cst_240 : f32 to vector<2x128xf32>
    %412 = arith.addf %410, %411 : vector<2x128xf32>
    %413 = vector.extract_strided_slice %403 {offsets = [0, 128], sizes = [2, 128], strides = [1, 1]} : vector<2x512xf32> to vector<2x128xf32>
    %cst_241 = arith.constant 5.000000e-01 : f32
    %414 = vector.broadcast %cst_241 : f32 to vector<2x128xf32>
    %415 = arith.mulf %414, %413 : vector<2x128xf32>
    %416 = math.tanh %415 : vector<2x128xf32>
    %cst_242 = arith.constant 5.000000e-01 : f32
    %417 = vector.broadcast %cst_242 : f32 to vector<2x128xf32>
    %418 = arith.mulf %417, %416 : vector<2x128xf32>
    %cst_243 = arith.constant 5.000000e-01 : f32
    %419 = vector.broadcast %cst_243 : f32 to vector<2x128xf32>
    %420 = arith.addf %418, %419 : vector<2x128xf32>
    %421 = vector.extract_strided_slice %403 {offsets = [0, 256], sizes = [2, 128], strides = [1, 1]} : vector<2x512xf32> to vector<2x128xf32>
    %422 = math.tanh %421 : vector<2x128xf32>
    %423 = vector.extract_strided_slice %403 {offsets = [0, 384], sizes = [2, 128], strides = [1, 1]} : vector<2x512xf32> to vector<2x128xf32>
    %cst_244 = arith.constant 5.000000e-01 : f32
    %424 = vector.broadcast %cst_244 : f32 to vector<2x128xf32>
    %425 = arith.mulf %424, %423 : vector<2x128xf32>
    %426 = math.tanh %425 : vector<2x128xf32>
    %cst_245 = arith.constant 5.000000e-01 : f32
    %427 = vector.broadcast %cst_245 : f32 to vector<2x128xf32>
    %428 = arith.mulf %427, %426 : vector<2x128xf32>
    %cst_246 = arith.constant 5.000000e-01 : f32
    %429 = vector.broadcast %cst_246 : f32 to vector<2x128xf32>
    %430 = arith.addf %428, %429 : vector<2x128xf32>
    %431 = arith.mulf %420, %404 : vector<2x128xf32>
    %432 = arith.mulf %412, %422 : vector<2x128xf32>
    %433 = arith.addf %431, %432 : vector<2x128xf32>
    %434 = math.tanh %433 : vector<2x128xf32>
    %435 = arith.mulf %430, %434 : vector<2x128xf32>
    %c3_i32 = arith.constant 3 : i32
    %436 = arith.addi %4, %c3_i32 : i32
    %c8_i32_247 = arith.constant 8 : i32
    %437 = arith.cmpi slt, %436, %c8_i32_247 : i32
    %c0_248 = arith.constant 0 : index
    %c0_249 = arith.constant 0 : index
    %438 = vector.load %arg9[%c0_248, %c0_249] : memref<2x128xf32, #tpu.memory_space<vmem>>, vector<2x128xf32>
    %439 = arith.select %437, %435, %438 : vector<2x128xf32>
    %c0_250 = arith.constant 0 : index
    %c0_251 = arith.constant 0 : index
    %440 = vector.load %arg9[%c0_250, %c0_251] : memref<2x128xf32, #tpu.memory_space<vmem>>, vector<2x128xf32>
    tpu.vector_store %arg9[%c0_250, %c0_251], %439 {strides = array<i32>} : memref<2x128xf32, #tpu.memory_space<vmem>>, vector<2x128xf32>,
    %c0_252 = arith.constant 0 : index
    %c0_253 = arith.constant 0 : index
    %441 = vector.load %arg10[%c0_252, %c0_253] : memref<2x128xf32, #tpu.memory_space<vmem>>, vector<2x128xf32>
    %442 = arith.select %437, %433, %441 : vector<2x128xf32>
    %c0_254 = arith.constant 0 : index
    %c0_255 = arith.constant 0 : index
    %443 = vector.load %arg10[%c0_254, %c0_255] : memref<2x128xf32, #tpu.memory_space<vmem>>, vector<2x128xf32>
    tpu.vector_store %arg10[%c0_254, %c0_255], %442 {strides = array<i32>} : memref<2x128xf32, #tpu.memory_space<vmem>>, vector<2x128xf32>,
    %c6_256 = arith.constant 6 : index
    %c0_257 = arith.constant 0 : index
    %444 = vector.load %arg6[%c6_256, %c0_257] : memref<16x128xf32, #tpu.memory_space<vmem>>, vector<2x128xf32>
    tpu.vector_store %arg6[%c6_256, %c0_257], %435 {strides = array<i32>} : memref<16x128xf32, #tpu.memory_space<vmem>>, vector<2x128xf32>,
    %c10_258 = arith.constant 10 : index
    %c0_259 = arith.constant 0 : index
    %445 = vector.load %arg1[%c10_258, %c0_259] : memref<16x512xf32, #tpu.memory_space<vmem>>, vector<2x512xf32>
    %c0_260 = arith.constant 0 : index
    %c0_261 = arith.constant 0 : index
    %446 = vector.load %arg7[%c0_260, %c0_261] : memref<2x128xf32, #tpu.memory_space<vmem>>, vector<2x128xf32>
    %447 = arith.truncf %446 : vector<2x128xf32> to vector<2x128xbf16>
    %c0_262 = arith.constant 0 : index
    %c0_263 = arith.constant 0 : index
    %448 = vector.load %arg3[%c0_262, %c0_263] : memref<128x512xbf16, #tpu.memory_space<vmem>>, vector<128x512xbf16>
    %cst_264 = arith.constant dense<0.000000e+00> : vector<2x512xf32>
    %449 = tpu.matmul %447, %448, %cst_264 {dimension_numbers = #tpu.dot_dimension_numbers<[1], [0], [0], [1], [0, 0, 1, 1], [], []>} : vector<2x128xbf16>, vector<128x512xbf16>, vector<2x512xf32> -> vector<2x512xf32>
    %450 = arith.addf %445, %449 : vector<2x512xf32>
    %c0_265 = arith.constant 0 : index
    %c0_266 = arith.constant 0 : index
    %451 = vector.load %arg8[%c0_265, %c0_266] : memref<2x128xf32, #tpu.memory_space<vmem>>, vector<2x128xf32>
    %452 = vector.extract_strided_slice %450 {offsets = [0, 0], sizes = [2, 128], strides = [1, 1]} : vector<2x512xf32> to vector<2x128xf32>
    %cst_267 = arith.constant 5.000000e-01 : f32
    %453 = vector.broadcast %cst_267 : f32 to vector<2x128xf32>
    %454 = arith.mulf %453, %452 : vector<2x128xf32>
    %455 = math.tanh %454 : vector<2x128xf32>
    %cst_268 = arith.constant 5.000000e-01 : f32
    %456 = vector.broadcast %cst_268 : f32 to vector<2x128xf32>
    %457 = arith.mulf %456, %455 : vector<2x128xf32>
    %cst_269 = arith.constant 5.000000e-01 : f32
    %458 = vector.broadcast %cst_269 : f32 to vector<2x128xf32>
    %459 = arith.addf %457, %458 : vector<2x128xf32>
    %460 = vector.extract_strided_slice %450 {offsets = [0, 128], sizes = [2, 128], strides = [1, 1]} : vector<2x512xf32> to vector<2x128xf32>
    %cst_270 = arith.constant 5.000000e-01 : f32
    %461 = vector.broadcast %cst_270 : f32 to vector<2x128xf32>
    %462 = arith.mulf %461, %460 : vector<2x128xf32>
    %463 = math.tanh %462 : vector<2x128xf32>
    %cst_271 = arith.constant 5.000000e-01 : f32
    %464 = vector.broadcast %cst_271 : f32 to vector<2x128xf32>
    %465 = arith.mulf %464, %463 : vector<2x128xf32>
    %cst_272 = arith.constant 5.000000e-01 : f32
    %466 = vector.broadcast %cst_272 : f32 to vector<2x128xf32>
    %467 = arith.addf %465, %466 : vector<2x128xf32>
    %468 = vector.extract_strided_slice %450 {offsets = [0, 256], sizes = [2, 128], strides = [1, 1]} : vector<2x512xf32> to vector<2x128xf32>
    %469 = math.tanh %468 : vector<2x128xf32>
    %470 = vector.extract_strided_slice %450 {offsets = [0, 384], sizes = [2, 128], strides = [1, 1]} : vector<2x512xf32> to vector<2x128xf32>
    %cst_273 = arith.constant 5.000000e-01 : f32
    %471 = vector.broadcast %cst_273 : f32 to vector<2x128xf32>
    %472 = arith.mulf %471, %470 : vector<2x128xf32>
    %473 = math.tanh %472 : vector<2x128xf32>
    %cst_274 = arith.constant 5.000000e-01 : f32
    %474 = vector.broadcast %cst_274 : f32 to vector<2x128xf32>
    %475 = arith.mulf %474, %473 : vector<2x128xf32>
    %cst_275 = arith.constant 5.000000e-01 : f32
    %476 = vector.broadcast %cst_275 : f32 to vector<2x128xf32>
    %477 = arith.addf %475, %476 : vector<2x128xf32>
    %478 = arith.mulf %467, %451 : vector<2x128xf32>
    %479 = arith.mulf %459, %469 : vector<2x128xf32>
    %480 = arith.addf %478, %479 : vector<2x128xf32>
    %481 = math.tanh %480 : vector<2x128xf32>
    %482 = arith.mulf %477, %481 : vector<2x128xf32>
    %c0_276 = arith.constant 0 : index
    %c0_277 = arith.constant 0 : index
    %483 = vector.load %arg7[%c0_276, %c0_277] : memref<2x128xf32, #tpu.memory_space<vmem>>, vector<2x128xf32>
    tpu.vector_store %arg7[%c0_276, %c0_277], %482 {strides = array<i32>} : memref<2x128xf32, #tpu.memory_space<vmem>>, vector<2x128xf32>,
    %c0_278 = arith.constant 0 : index
    %c0_279 = arith.constant 0 : index
    %484 = vector.load %arg8[%c0_278, %c0_279] : memref<2x128xf32, #tpu.memory_space<vmem>>, vector<2x128xf32>
    tpu.vector_store %arg8[%c0_278, %c0_279], %480 {strides = array<i32>} : memref<2x128xf32, #tpu.memory_space<vmem>>, vector<2x128xf32>,
    %c10_280 = arith.constant 10 : index
    %c0_281 = arith.constant 0 : index
    %485 = vector.load %arg5[%c10_280, %c0_281] : memref<16x128xf32, #tpu.memory_space<vmem>>, vector<2x128xf32>
    tpu.vector_store %arg5[%c10_280, %c0_281], %482 {strides = array<i32>} : memref<16x128xf32, #tpu.memory_space<vmem>>, vector<2x128xf32>,
    %c4_282 = arith.constant 4 : index
    %c0_283 = arith.constant 0 : index
    %486 = vector.load %arg2[%c4_282, %c0_283] : memref<16x512xf32, #tpu.memory_space<vmem>>, vector<2x512xf32>
    %c0_284 = arith.constant 0 : index
    %c0_285 = arith.constant 0 : index
    %487 = vector.load %arg9[%c0_284, %c0_285] : memref<2x128xf32, #tpu.memory_space<vmem>>, vector<2x128xf32>
    %488 = arith.truncf %487 : vector<2x128xf32> to vector<2x128xbf16>
    %c0_286 = arith.constant 0 : index
    %c0_287 = arith.constant 0 : index
    %489 = vector.load %arg4[%c0_286, %c0_287] : memref<128x512xbf16, #tpu.memory_space<vmem>>, vector<128x512xbf16>
    %cst_288 = arith.constant dense<0.000000e+00> : vector<2x512xf32>
    %490 = tpu.matmul %488, %489, %cst_288 {dimension_numbers = #tpu.dot_dimension_numbers<[1], [0], [0], [1], [0, 0, 1, 1], [], []>} : vector<2x128xbf16>, vector<128x512xbf16>, vector<2x512xf32> -> vector<2x512xf32>
    %491 = arith.addf %486, %490 : vector<2x512xf32>
    %c0_289 = arith.constant 0 : index
    %c0_290 = arith.constant 0 : index
    %492 = vector.load %arg10[%c0_289, %c0_290] : memref<2x128xf32, #tpu.memory_space<vmem>>, vector<2x128xf32>
    %493 = vector.extract_strided_slice %491 {offsets = [0, 0], sizes = [2, 128], strides = [1, 1]} : vector<2x512xf32> to vector<2x128xf32>
    %cst_291 = arith.constant 5.000000e-01 : f32
    %494 = vector.broadcast %cst_291 : f32 to vector<2x128xf32>
    %495 = arith.mulf %494, %493 : vector<2x128xf32>
    %496 = math.tanh %495 : vector<2x128xf32>
    %cst_292 = arith.constant 5.000000e-01 : f32
    %497 = vector.broadcast %cst_292 : f32 to vector<2x128xf32>
    %498 = arith.mulf %497, %496 : vector<2x128xf32>
    %cst_293 = arith.constant 5.000000e-01 : f32
    %499 = vector.broadcast %cst_293 : f32 to vector<2x128xf32>
    %500 = arith.addf %498, %499 : vector<2x128xf32>
    %501 = vector.extract_strided_slice %491 {offsets = [0, 128], sizes = [2, 128], strides = [1, 1]} : vector<2x512xf32> to vector<2x128xf32>
    %cst_294 = arith.constant 5.000000e-01 : f32
    %502 = vector.broadcast %cst_294 : f32 to vector<2x128xf32>
    %503 = arith.mulf %502, %501 : vector<2x128xf32>
    %504 = math.tanh %503 : vector<2x128xf32>
    %cst_295 = arith.constant 5.000000e-01 : f32
    %505 = vector.broadcast %cst_295 : f32 to vector<2x128xf32>
    %506 = arith.mulf %505, %504 : vector<2x128xf32>
    %cst_296 = arith.constant 5.000000e-01 : f32
    %507 = vector.broadcast %cst_296 : f32 to vector<2x128xf32>
    %508 = arith.addf %506, %507 : vector<2x128xf32>
    %509 = vector.extract_strided_slice %491 {offsets = [0, 256], sizes = [2, 128], strides = [1, 1]} : vector<2x512xf32> to vector<2x128xf32>
    %510 = math.tanh %509 : vector<2x128xf32>
    %511 = vector.extract_strided_slice %491 {offsets = [0, 384], sizes = [2, 128], strides = [1, 1]} : vector<2x512xf32> to vector<2x128xf32>
    %cst_297 = arith.constant 5.000000e-01 : f32
    %512 = vector.broadcast %cst_297 : f32 to vector<2x128xf32>
    %513 = arith.mulf %512, %511 : vector<2x128xf32>
    %514 = math.tanh %513 : vector<2x128xf32>
    %cst_298 = arith.constant 5.000000e-01 : f32
    %515 = vector.broadcast %cst_298 : f32 to vector<2x128xf32>
    %516 = arith.mulf %515, %514 : vector<2x128xf32>
    %cst_299 = arith.constant 5.000000e-01 : f32
    %517 = vector.broadcast %cst_299 : f32 to vector<2x128xf32>
    %518 = arith.addf %516, %517 : vector<2x128xf32>
    %519 = arith.mulf %508, %492 : vector<2x128xf32>
    %520 = arith.mulf %500, %510 : vector<2x128xf32>
    %521 = arith.addf %519, %520 : vector<2x128xf32>
    %522 = math.tanh %521 : vector<2x128xf32>
    %523 = arith.mulf %518, %522 : vector<2x128xf32>
    %c2_i32 = arith.constant 2 : i32
    %524 = arith.addi %4, %c2_i32 : i32
    %c8_i32_300 = arith.constant 8 : i32
    %525 = arith.cmpi slt, %524, %c8_i32_300 : i32
    %c0_301 = arith.constant 0 : index
    %c0_302 = arith.constant 0 : index
    %526 = vector.load %arg9[%c0_301, %c0_302] : memref<2x128xf32, #tpu.memory_space<vmem>>, vector<2x128xf32>
    %527 = arith.select %525, %523, %526 : vector<2x128xf32>
    %c0_303 = arith.constant 0 : index
    %c0_304 = arith.constant 0 : index
    %528 = vector.load %arg9[%c0_303, %c0_304] : memref<2x128xf32, #tpu.memory_space<vmem>>, vector<2x128xf32>
    tpu.vector_store %arg9[%c0_303, %c0_304], %527 {strides = array<i32>} : memref<2x128xf32, #tpu.memory_space<vmem>>, vector<2x128xf32>,
    %c0_305 = arith.constant 0 : index
    %c0_306 = arith.constant 0 : index
    %529 = vector.load %arg10[%c0_305, %c0_306] : memref<2x128xf32, #tpu.memory_space<vmem>>, vector<2x128xf32>
    %530 = arith.select %525, %521, %529 : vector<2x128xf32>
    %c0_307 = arith.constant 0 : index
    %c0_308 = arith.constant 0 : index
    %531 = vector.load %arg10[%c0_307, %c0_308] : memref<2x128xf32, #tpu.memory_space<vmem>>, vector<2x128xf32>
    tpu.vector_store %arg10[%c0_307, %c0_308], %530 {strides = array<i32>} : memref<2x128xf32, #tpu.memory_space<vmem>>, vector<2x128xf32>,
    %c4_309 = arith.constant 4 : index
    %c0_310 = arith.constant 0 : index
    %532 = vector.load %arg6[%c4_309, %c0_310] : memref<16x128xf32, #tpu.memory_space<vmem>>, vector<2x128xf32>
    tpu.vector_store %arg6[%c4_309, %c0_310], %523 {strides = array<i32>} : memref<16x128xf32, #tpu.memory_space<vmem>>, vector<2x128xf32>,
    %c12_311 = arith.constant 12 : index
    %c0_312 = arith.constant 0 : index
    %533 = vector.load %arg1[%c12_311, %c0_312] : memref<16x512xf32, #tpu.memory_space<vmem>>, vector<2x512xf32>
    %c0_313 = arith.constant 0 : index
    %c0_314 = arith.constant 0 : index
    %534 = vector.load %arg7[%c0_313, %c0_314] : memref<2x128xf32, #tpu.memory_space<vmem>>, vector<2x128xf32>
    %535 = arith.truncf %534 : vector<2x128xf32> to vector<2x128xbf16>
    %c0_315 = arith.constant 0 : index
    %c0_316 = arith.constant 0 : index
    %536 = vector.load %arg3[%c0_315, %c0_316] : memref<128x512xbf16, #tpu.memory_space<vmem>>, vector<128x512xbf16>
    %cst_317 = arith.constant dense<0.000000e+00> : vector<2x512xf32>
    %537 = tpu.matmul %535, %536, %cst_317 {dimension_numbers = #tpu.dot_dimension_numbers<[1], [0], [0], [1], [0, 0, 1, 1], [], []>} : vector<2x128xbf16>, vector<128x512xbf16>, vector<2x512xf32> -> vector<2x512xf32>
    %538 = arith.addf %533, %537 : vector<2x512xf32>
    %c0_318 = arith.constant 0 : index
    %c0_319 = arith.constant 0 : index
    %539 = vector.load %arg8[%c0_318, %c0_319] : memref<2x128xf32, #tpu.memory_space<vmem>>, vector<2x128xf32>
    %540 = vector.extract_strided_slice %538 {offsets = [0, 0], sizes = [2, 128], strides = [1, 1]} : vector<2x512xf32> to vector<2x128xf32>
    %cst_320 = arith.constant 5.000000e-01 : f32
    %541 = vector.broadcast %cst_320 : f32 to vector<2x128xf32>
    %542 = arith.mulf %541, %540 : vector<2x128xf32>
    %543 = math.tanh %542 : vector<2x128xf32>
    %cst_321 = arith.constant 5.000000e-01 : f32
    %544 = vector.broadcast %cst_321 : f32 to vector<2x128xf32>
    %545 = arith.mulf %544, %543 : vector<2x128xf32>
    %cst_322 = arith.constant 5.000000e-01 : f32
    %546 = vector.broadcast %cst_322 : f32 to vector<2x128xf32>
    %547 = arith.addf %545, %546 : vector<2x128xf32>
    %548 = vector.extract_strided_slice %538 {offsets = [0, 128], sizes = [2, 128], strides = [1, 1]} : vector<2x512xf32> to vector<2x128xf32>
    %cst_323 = arith.constant 5.000000e-01 : f32
    %549 = vector.broadcast %cst_323 : f32 to vector<2x128xf32>
    %550 = arith.mulf %549, %548 : vector<2x128xf32>
    %551 = math.tanh %550 : vector<2x128xf32>
    %cst_324 = arith.constant 5.000000e-01 : f32
    %552 = vector.broadcast %cst_324 : f32 to vector<2x128xf32>
    %553 = arith.mulf %552, %551 : vector<2x128xf32>
    %cst_325 = arith.constant 5.000000e-01 : f32
    %554 = vector.broadcast %cst_325 : f32 to vector<2x128xf32>
    %555 = arith.addf %553, %554 : vector<2x128xf32>
    %556 = vector.extract_strided_slice %538 {offsets = [0, 256], sizes = [2, 128], strides = [1, 1]} : vector<2x512xf32> to vector<2x128xf32>
    %557 = math.tanh %556 : vector<2x128xf32>
    %558 = vector.extract_strided_slice %538 {offsets = [0, 384], sizes = [2, 128], strides = [1, 1]} : vector<2x512xf32> to vector<2x128xf32>
    %cst_326 = arith.constant 5.000000e-01 : f32
    %559 = vector.broadcast %cst_326 : f32 to vector<2x128xf32>
    %560 = arith.mulf %559, %558 : vector<2x128xf32>
    %561 = math.tanh %560 : vector<2x128xf32>
    %cst_327 = arith.constant 5.000000e-01 : f32
    %562 = vector.broadcast %cst_327 : f32 to vector<2x128xf32>
    %563 = arith.mulf %562, %561 : vector<2x128xf32>
    %cst_328 = arith.constant 5.000000e-01 : f32
    %564 = vector.broadcast %cst_328 : f32 to vector<2x128xf32>
    %565 = arith.addf %563, %564 : vector<2x128xf32>
    %566 = arith.mulf %555, %539 : vector<2x128xf32>
    %567 = arith.mulf %547, %557 : vector<2x128xf32>
    %568 = arith.addf %566, %567 : vector<2x128xf32>
    %569 = math.tanh %568 : vector<2x128xf32>
    %570 = arith.mulf %565, %569 : vector<2x128xf32>
    %c0_329 = arith.constant 0 : index
    %c0_330 = arith.constant 0 : index
    %571 = vector.load %arg7[%c0_329, %c0_330] : memref<2x128xf32, #tpu.memory_space<vmem>>, vector<2x128xf32>
    tpu.vector_store %arg7[%c0_329, %c0_330], %570 {strides = array<i32>} : memref<2x128xf32, #tpu.memory_space<vmem>>, vector<2x128xf32>,
    %c0_331 = arith.constant 0 : index
    %c0_332 = arith.constant 0 : index
    %572 = vector.load %arg8[%c0_331, %c0_332] : memref<2x128xf32, #tpu.memory_space<vmem>>, vector<2x128xf32>
    tpu.vector_store %arg8[%c0_331, %c0_332], %568 {strides = array<i32>} : memref<2x128xf32, #tpu.memory_space<vmem>>, vector<2x128xf32>,
    %c12_333 = arith.constant 12 : index
    %c0_334 = arith.constant 0 : index
    %573 = vector.load %arg5[%c12_333, %c0_334] : memref<16x128xf32, #tpu.memory_space<vmem>>, vector<2x128xf32>
    tpu.vector_store %arg5[%c12_333, %c0_334], %570 {strides = array<i32>} : memref<16x128xf32, #tpu.memory_space<vmem>>, vector<2x128xf32>,
    %c2_335 = arith.constant 2 : index
    %c0_336 = arith.constant 0 : index
    %574 = vector.load %arg2[%c2_335, %c0_336] : memref<16x512xf32, #tpu.memory_space<vmem>>, vector<2x512xf32>
    %c0_337 = arith.constant 0 : index
    %c0_338 = arith.constant 0 : index
    %575 = vector.load %arg9[%c0_337, %c0_338] : memref<2x128xf32, #tpu.memory_space<vmem>>, vector<2x128xf32>
    %576 = arith.truncf %575 : vector<2x128xf32> to vector<2x128xbf16>
    %c0_339 = arith.constant 0 : index
    %c0_340 = arith.constant 0 : index
    %577 = vector.load %arg4[%c0_339, %c0_340] : memref<128x512xbf16, #tpu.memory_space<vmem>>, vector<128x512xbf16>
    %cst_341 = arith.constant dense<0.000000e+00> : vector<2x512xf32>
    %578 = tpu.matmul %576, %577, %cst_341 {dimension_numbers = #tpu.dot_dimension_numbers<[1], [0], [0], [1], [0, 0, 1, 1], [], []>} : vector<2x128xbf16>, vector<128x512xbf16>, vector<2x512xf32> -> vector<2x512xf32>
    %579 = arith.addf %574, %578 : vector<2x512xf32>
    %c0_342 = arith.constant 0 : index
    %c0_343 = arith.constant 0 : index
    %580 = vector.load %arg10[%c0_342, %c0_343] : memref<2x128xf32, #tpu.memory_space<vmem>>, vector<2x128xf32>
    %581 = vector.extract_strided_slice %579 {offsets = [0, 0], sizes = [2, 128], strides = [1, 1]} : vector<2x512xf32> to vector<2x128xf32>
    %cst_344 = arith.constant 5.000000e-01 : f32
    %582 = vector.broadcast %cst_344 : f32 to vector<2x128xf32>
    %583 = arith.mulf %582, %581 : vector<2x128xf32>
    %584 = math.tanh %583 : vector<2x128xf32>
    %cst_345 = arith.constant 5.000000e-01 : f32
    %585 = vector.broadcast %cst_345 : f32 to vector<2x128xf32>
    %586 = arith.mulf %585, %584 : vector<2x128xf32>
    %cst_346 = arith.constant 5.000000e-01 : f32
    %587 = vector.broadcast %cst_346 : f32 to vector<2x128xf32>
    %588 = arith.addf %586, %587 : vector<2x128xf32>
    %589 = vector.extract_strided_slice %579 {offsets = [0, 128], sizes = [2, 128], strides = [1, 1]} : vector<2x512xf32> to vector<2x128xf32>
    %cst_347 = arith.constant 5.000000e-01 : f32
    %590 = vector.broadcast %cst_347 : f32 to vector<2x128xf32>
    %591 = arith.mulf %590, %589 : vector<2x128xf32>
    %592 = math.tanh %591 : vector<2x128xf32>
    %cst_348 = arith.constant 5.000000e-01 : f32
    %593 = vector.broadcast %cst_348 : f32 to vector<2x128xf32>
    %594 = arith.mulf %593, %592 : vector<2x128xf32>
    %cst_349 = arith.constant 5.000000e-01 : f32
    %595 = vector.broadcast %cst_349 : f32 to vector<2x128xf32>
    %596 = arith.addf %594, %595 : vector<2x128xf32>
    %597 = vector.extract_strided_slice %579 {offsets = [0, 256], sizes = [2, 128], strides = [1, 1]} : vector<2x512xf32> to vector<2x128xf32>
    %598 = math.tanh %597 : vector<2x128xf32>
    %599 = vector.extract_strided_slice %579 {offsets = [0, 384], sizes = [2, 128], strides = [1, 1]} : vector<2x512xf32> to vector<2x128xf32>
    %cst_350 = arith.constant 5.000000e-01 : f32
    %600 = vector.broadcast %cst_350 : f32 to vector<2x128xf32>
    %601 = arith.mulf %600, %599 : vector<2x128xf32>
    %602 = math.tanh %601 : vector<2x128xf32>
    %cst_351 = arith.constant 5.000000e-01 : f32
    %603 = vector.broadcast %cst_351 : f32 to vector<2x128xf32>
    %604 = arith.mulf %603, %602 : vector<2x128xf32>
    %cst_352 = arith.constant 5.000000e-01 : f32
    %605 = vector.broadcast %cst_352 : f32 to vector<2x128xf32>
    %606 = arith.addf %604, %605 : vector<2x128xf32>
    %607 = arith.mulf %596, %580 : vector<2x128xf32>
    %608 = arith.mulf %588, %598 : vector<2x128xf32>
    %609 = arith.addf %607, %608 : vector<2x128xf32>
    %610 = math.tanh %609 : vector<2x128xf32>
    %611 = arith.mulf %606, %610 : vector<2x128xf32>
    %c1_i32 = arith.constant 1 : i32
    %612 = arith.addi %4, %c1_i32 : i32
    %c8_i32_353 = arith.constant 8 : i32
    %613 = arith.cmpi slt, %612, %c8_i32_353 : i32
    %c0_354 = arith.constant 0 : index
    %c0_355 = arith.constant 0 : index
    %614 = vector.load %arg9[%c0_354, %c0_355] : memref<2x128xf32, #tpu.memory_space<vmem>>, vector<2x128xf32>
    %615 = arith.select %613, %611, %614 : vector<2x128xf32>
    %c0_356 = arith.constant 0 : index
    %c0_357 = arith.constant 0 : index
    %616 = vector.load %arg9[%c0_356, %c0_357] : memref<2x128xf32, #tpu.memory_space<vmem>>, vector<2x128xf32>
    tpu.vector_store %arg9[%c0_356, %c0_357], %615 {strides = array<i32>} : memref<2x128xf32, #tpu.memory_space<vmem>>, vector<2x128xf32>,
    %c0_358 = arith.constant 0 : index
    %c0_359 = arith.constant 0 : index
    %617 = vector.load %arg10[%c0_358, %c0_359] : memref<2x128xf32, #tpu.memory_space<vmem>>, vector<2x128xf32>
    %618 = arith.select %613, %609, %617 : vector<2x128xf32>
    %c0_360 = arith.constant 0 : index
    %c0_361 = arith.constant 0 : index
    %619 = vector.load %arg10[%c0_360, %c0_361] : memref<2x128xf32, #tpu.memory_space<vmem>>, vector<2x128xf32>
    tpu.vector_store %arg10[%c0_360, %c0_361], %618 {strides = array<i32>} : memref<2x128xf32, #tpu.memory_space<vmem>>, vector<2x128xf32>,
    %c2_362 = arith.constant 2 : index
    %c0_363 = arith.constant 0 : index
    %620 = vector.load %arg6[%c2_362, %c0_363] : memref<16x128xf32, #tpu.memory_space<vmem>>, vector<2x128xf32>
    tpu.vector_store %arg6[%c2_362, %c0_363], %611 {strides = array<i32>} : memref<16x128xf32, #tpu.memory_space<vmem>>, vector<2x128xf32>,
    %c14_364 = arith.constant 14 : index
    %c0_365 = arith.constant 0 : index
    %621 = vector.load %arg1[%c14_364, %c0_365] : memref<16x512xf32, #tpu.memory_space<vmem>>, vector<2x512xf32>
    %c0_366 = arith.constant 0 : index
    %c0_367 = arith.constant 0 : index
    %622 = vector.load %arg7[%c0_366, %c0_367] : memref<2x128xf32, #tpu.memory_space<vmem>>, vector<2x128xf32>
    %623 = arith.truncf %622 : vector<2x128xf32> to vector<2x128xbf16>
    %c0_368 = arith.constant 0 : index
    %c0_369 = arith.constant 0 : index
    %624 = vector.load %arg3[%c0_368, %c0_369] : memref<128x512xbf16, #tpu.memory_space<vmem>>, vector<128x512xbf16>
    %cst_370 = arith.constant dense<0.000000e+00> : vector<2x512xf32>
    %625 = tpu.matmul %623, %624, %cst_370 {dimension_numbers = #tpu.dot_dimension_numbers<[1], [0], [0], [1], [0, 0, 1, 1], [], []>} : vector<2x128xbf16>, vector<128x512xbf16>, vector<2x512xf32> -> vector<2x512xf32>
    %626 = arith.addf %621, %625 : vector<2x512xf32>
    %c0_371 = arith.constant 0 : index
    %c0_372 = arith.constant 0 : index
    %627 = vector.load %arg8[%c0_371, %c0_372] : memref<2x128xf32, #tpu.memory_space<vmem>>, vector<2x128xf32>
    %628 = vector.extract_strided_slice %626 {offsets = [0, 0], sizes = [2, 128], strides = [1, 1]} : vector<2x512xf32> to vector<2x128xf32>
    %cst_373 = arith.constant 5.000000e-01 : f32
    %629 = vector.broadcast %cst_373 : f32 to vector<2x128xf32>
    %630 = arith.mulf %629, %628 : vector<2x128xf32>
    %631 = math.tanh %630 : vector<2x128xf32>
    %cst_374 = arith.constant 5.000000e-01 : f32
    %632 = vector.broadcast %cst_374 : f32 to vector<2x128xf32>
    %633 = arith.mulf %632, %631 : vector<2x128xf32>
    %cst_375 = arith.constant 5.000000e-01 : f32
    %634 = vector.broadcast %cst_375 : f32 to vector<2x128xf32>
    %635 = arith.addf %633, %634 : vector<2x128xf32>
    %636 = vector.extract_strided_slice %626 {offsets = [0, 128], sizes = [2, 128], strides = [1, 1]} : vector<2x512xf32> to vector<2x128xf32>
    %cst_376 = arith.constant 5.000000e-01 : f32
    %637 = vector.broadcast %cst_376 : f32 to vector<2x128xf32>
    %638 = arith.mulf %637, %636 : vector<2x128xf32>
    %639 = math.tanh %638 : vector<2x128xf32>
    %cst_377 = arith.constant 5.000000e-01 : f32
    %640 = vector.broadcast %cst_377 : f32 to vector<2x128xf32>
    %641 = arith.mulf %640, %639 : vector<2x128xf32>
    %cst_378 = arith.constant 5.000000e-01 : f32
    %642 = vector.broadcast %cst_378 : f32 to vector<2x128xf32>
    %643 = arith.addf %641, %642 : vector<2x128xf32>
    %644 = vector.extract_strided_slice %626 {offsets = [0, 256], sizes = [2, 128], strides = [1, 1]} : vector<2x512xf32> to vector<2x128xf32>
    %645 = math.tanh %644 : vector<2x128xf32>
    %646 = vector.extract_strided_slice %626 {offsets = [0, 384], sizes = [2, 128], strides = [1, 1]} : vector<2x512xf32> to vector<2x128xf32>
    %cst_379 = arith.constant 5.000000e-01 : f32
    %647 = vector.broadcast %cst_379 : f32 to vector<2x128xf32>
    %648 = arith.mulf %647, %646 : vector<2x128xf32>
    %649 = math.tanh %648 : vector<2x128xf32>
    %cst_380 = arith.constant 5.000000e-01 : f32
    %650 = vector.broadcast %cst_380 : f32 to vector<2x128xf32>
    %651 = arith.mulf %650, %649 : vector<2x128xf32>
    %cst_381 = arith.constant 5.000000e-01 : f32
    %652 = vector.broadcast %cst_381 : f32 to vector<2x128xf32>
    %653 = arith.addf %651, %652 : vector<2x128xf32>
    %654 = arith.mulf %643, %627 : vector<2x128xf32>
    %655 = arith.mulf %635, %645 : vector<2x128xf32>
    %656 = arith.addf %654, %655 : vector<2x128xf32>
    %657 = math.tanh %656 : vector<2x128xf32>
    %658 = arith.mulf %653, %657 : vector<2x128xf32>
    %c0_382 = arith.constant 0 : index
    %c0_383 = arith.constant 0 : index
    %659 = vector.load %arg7[%c0_382, %c0_383] : memref<2x128xf32, #tpu.memory_space<vmem>>, vector<2x128xf32>
    tpu.vector_store %arg7[%c0_382, %c0_383], %658 {strides = array<i32>} : memref<2x128xf32, #tpu.memory_space<vmem>>, vector<2x128xf32>,
    %c0_384 = arith.constant 0 : index
    %c0_385 = arith.constant 0 : index
    %660 = vector.load %arg8[%c0_384, %c0_385] : memref<2x128xf32, #tpu.memory_space<vmem>>, vector<2x128xf32>
    tpu.vector_store %arg8[%c0_384, %c0_385], %656 {strides = array<i32>} : memref<2x128xf32, #tpu.memory_space<vmem>>, vector<2x128xf32>,
    %c14_386 = arith.constant 14 : index
    %c0_387 = arith.constant 0 : index
    %661 = vector.load %arg5[%c14_386, %c0_387] : memref<16x128xf32, #tpu.memory_space<vmem>>, vector<2x128xf32>
    tpu.vector_store %arg5[%c14_386, %c0_387], %658 {strides = array<i32>} : memref<16x128xf32, #tpu.memory_space<vmem>>, vector<2x128xf32>,
    %c0_388 = arith.constant 0 : index
    %c0_389 = arith.constant 0 : index
    %662 = vector.load %arg2[%c0_388, %c0_389] : memref<16x512xf32, #tpu.memory_space<vmem>>, vector<2x512xf32>
    %c0_390 = arith.constant 0 : index
    %c0_391 = arith.constant 0 : index
    %663 = vector.load %arg9[%c0_390, %c0_391] : memref<2x128xf32, #tpu.memory_space<vmem>>, vector<2x128xf32>
    %664 = arith.truncf %663 : vector<2x128xf32> to vector<2x128xbf16>
    %c0_392 = arith.constant 0 : index
    %c0_393 = arith.constant 0 : index
    %665 = vector.load %arg4[%c0_392, %c0_393] : memref<128x512xbf16, #tpu.memory_space<vmem>>, vector<128x512xbf16>
    %cst_394 = arith.constant dense<0.000000e+00> : vector<2x512xf32>
    %666 = tpu.matmul %664, %665, %cst_394 {dimension_numbers = #tpu.dot_dimension_numbers<[1], [0], [0], [1], [0, 0, 1, 1], [], []>} : vector<2x128xbf16>, vector<128x512xbf16>, vector<2x512xf32> -> vector<2x512xf32>
    %667 = arith.addf %662, %666 : vector<2x512xf32>
    %c0_395 = arith.constant 0 : index
    %c0_396 = arith.constant 0 : index
    %668 = vector.load %arg10[%c0_395, %c0_396] : memref<2x128xf32, #tpu.memory_space<vmem>>, vector<2x128xf32>
    %669 = vector.extract_strided_slice %667 {offsets = [0, 0], sizes = [2, 128], strides = [1, 1]} : vector<2x512xf32> to vector<2x128xf32>
    %cst_397 = arith.constant 5.000000e-01 : f32
    %670 = vector.broadcast %cst_397 : f32 to vector<2x128xf32>
    %671 = arith.mulf %670, %669 : vector<2x128xf32>
    %672 = math.tanh %671 : vector<2x128xf32>
    %cst_398 = arith.constant 5.000000e-01 : f32
    %673 = vector.broadcast %cst_398 : f32 to vector<2x128xf32>
    %674 = arith.mulf %673, %672 : vector<2x128xf32>
    %cst_399 = arith.constant 5.000000e-01 : f32
    %675 = vector.broadcast %cst_399 : f32 to vector<2x128xf32>
    %676 = arith.addf %674, %675 : vector<2x128xf32>
    %677 = vector.extract_strided_slice %667 {offsets = [0, 128], sizes = [2, 128], strides = [1, 1]} : vector<2x512xf32> to vector<2x128xf32>
    %cst_400 = arith.constant 5.000000e-01 : f32
    %678 = vector.broadcast %cst_400 : f32 to vector<2x128xf32>
    %679 = arith.mulf %678, %677 : vector<2x128xf32>
    %680 = math.tanh %679 : vector<2x128xf32>
    %cst_401 = arith.constant 5.000000e-01 : f32
    %681 = vector.broadcast %cst_401 : f32 to vector<2x128xf32>
    %682 = arith.mulf %681, %680 : vector<2x128xf32>
    %cst_402 = arith.constant 5.000000e-01 : f32
    %683 = vector.broadcast %cst_402 : f32 to vector<2x128xf32>
    %684 = arith.addf %682, %683 : vector<2x128xf32>
    %685 = vector.extract_strided_slice %667 {offsets = [0, 256], sizes = [2, 128], strides = [1, 1]} : vector<2x512xf32> to vector<2x128xf32>
    %686 = math.tanh %685 : vector<2x128xf32>
    %687 = vector.extract_strided_slice %667 {offsets = [0, 384], sizes = [2, 128], strides = [1, 1]} : vector<2x512xf32> to vector<2x128xf32>
    %cst_403 = arith.constant 5.000000e-01 : f32
    %688 = vector.broadcast %cst_403 : f32 to vector<2x128xf32>
    %689 = arith.mulf %688, %687 : vector<2x128xf32>
    %690 = math.tanh %689 : vector<2x128xf32>
    %cst_404 = arith.constant 5.000000e-01 : f32
    %691 = vector.broadcast %cst_404 : f32 to vector<2x128xf32>
    %692 = arith.mulf %691, %690 : vector<2x128xf32>
    %cst_405 = arith.constant 5.000000e-01 : f32
    %693 = vector.broadcast %cst_405 : f32 to vector<2x128xf32>
    %694 = arith.addf %692, %693 : vector<2x128xf32>
    %695 = arith.mulf %684, %668 : vector<2x128xf32>
    %696 = arith.mulf %676, %686 : vector<2x128xf32>
    %697 = arith.addf %695, %696 : vector<2x128xf32>
    %698 = math.tanh %697 : vector<2x128xf32>
    %699 = arith.mulf %694, %698 : vector<2x128xf32>
    %c0_i32_406 = arith.constant 0 : i32
    %700 = arith.addi %4, %c0_i32_406 : i32
    %c8_i32_407 = arith.constant 8 : i32
    %701 = arith.cmpi slt, %700, %c8_i32_407 : i32
    %c0_408 = arith.constant 0 : index
    %c0_409 = arith.constant 0 : index
    %702 = vector.load %arg9[%c0_408, %c0_409] : memref<2x128xf32, #tpu.memory_space<vmem>>, vector<2x128xf32>
    %703 = arith.select %701, %699, %702 : vector<2x128xf32>
    %c0_410 = arith.constant 0 : index
    %c0_411 = arith.constant 0 : index
    %704 = vector.load %arg9[%c0_410, %c0_411] : memref<2x128xf32, #tpu.memory_space<vmem>>, vector<2x128xf32>
    tpu.vector_store %arg9[%c0_410, %c0_411], %703 {strides = array<i32>} : memref<2x128xf32, #tpu.memory_space<vmem>>, vector<2x128xf32>,
    %c0_412 = arith.constant 0 : index
    %c0_413 = arith.constant 0 : index
    %705 = vector.load %arg10[%c0_412, %c0_413] : memref<2x128xf32, #tpu.memory_space<vmem>>, vector<2x128xf32>
    %706 = arith.select %701, %697, %705 : vector<2x128xf32>
    %c0_414 = arith.constant 0 : index
    %c0_415 = arith.constant 0 : index
    %707 = vector.load %arg10[%c0_414, %c0_415] : memref<2x128xf32, #tpu.memory_space<vmem>>, vector<2x128xf32>
    tpu.vector_store %arg10[%c0_414, %c0_415], %706 {strides = array<i32>} : memref<2x128xf32, #tpu.memory_space<vmem>>, vector<2x128xf32>,
    %c0_416 = arith.constant 0 : index
    %c0_417 = arith.constant 0 : index
    %708 = vector.load %arg6[%c0_416, %c0_417] : memref<16x128xf32, #tpu.memory_space<vmem>>, vector<2x128xf32>
    tpu.vector_store %arg6[%c0_416, %c0_417], %699 {strides = array<i32>} : memref<16x128xf32, #tpu.memory_space<vmem>>, vector<2x128xf32>,
    return
  }
  func.func @transform_0(%arg0: i32) -> (i32, i32) {
    %c0_i32 = arith.constant 0 : i32
    %c0_i32_0 = arith.constant 0 : i32
    return %arg0, %c0_i32 : i32, i32
  }
  func.func @transform_1(%arg0: i32) -> (i32, i32) {
    %c0_i32 = arith.constant 0 : i32
    %0 = arith.subi %c0_i32, %arg0 : i32
    %c0_i32_0 = arith.constant 0 : i32
    %c0_i32_1 = arith.constant 0 : i32
    return %0, %c0_i32_0 : i32, i32
  }
  func.func @transform_2(%arg0: i32) -> (i32, i32) {
    %c0_i32 = arith.constant 0 : i32
    %c0_i32_0 = arith.constant 0 : i32
    %c0_i32_1 = arith.constant 0 : i32
    return %c0_i32, %c0_i32_0 : i32, i32
  }
  func.func @transform_3(%arg0: i32) -> (i32, i32) {
    %c0_i32 = arith.constant 0 : i32
    %c0_i32_0 = arith.constant 0 : i32
    %c0_i32_1 = arith.constant 0 : i32
    return %c0_i32, %c0_i32_0 : i32, i32
  }
  func.func @transform_4(%arg0: i32) -> (i32, i32) {
    %c0_i32 = arith.constant 0 : i32
    %c0_i32_0 = arith.constant 0 : i32
    return %arg0, %c0_i32 : i32, i32
  }
  func.func @transform_5(%arg0: i32) -> (i32, i32) {
    %c0_i32 = arith.constant 0 : i32
    %0 = arith.subi %c0_i32, %arg0 : i32
    %c0_i32_0 = arith.constant 0 : i32
    %c0_i32_1 = arith.constant 0 : i32
    return %0, %c0_i32_0 : i32, i32
  }
}

</mosaic_0001>

<bundles_post_ra>
// kernel: lstm_model_forward.2
= control target key start
LH: loop header
LB: loop body
LE: loop exit
PB: predicated region body
PF: predicated region fallthrough
CT: control target
= control target key end

     0   :  { %s10863_s2 = inlined_call_operand.vmem [shape: bf16[128,512], index: 2, kind: input, shape index: {}]   ;;  %s10864_s3 = inlined_call_operand.vmem [shape: bf16[128,512], index: 3, kind: input, shape index: {}]   ;;  %s10865_s0 = inlined_call_operand.vmem [shape: f32[16,512], index: 0, kind: input, shape index: {}]   ;;  %s10866_s1 = inlined_call_operand.vmem [shape: f32[16,512], index: 1, kind: input, shape index: {}]   ;;  %s10867_s4 = inlined_call_operand.vmem [shape: f32[16,128], index: 4, kind: output, shape index: {0}]   ;;  %s10868_s5 = inlined_call_operand.vmem [shape: f32[16,128], index: 5, kind: output, shape index: {1}]  }
   0x1   :  { %v4913_v0 = vld [vmem:[%s10863_s2 + $0xe0] sm:$0xf]  ;;  %v6877_v1 = vld [vmem:[%s10863_s2 + $0xec] sm:$0xf0]  ;;  %v6875_v2 = vld [vmem:[%s10863_s2 + $0xe4] sm:$0xf] }
   0x2   :  { %v4914_v3 = vor.u32 %v6877_v1, %v4913_v0  ;;  %v4915_v4 = vld [vmem:[%s10863_s2 + $0xf0] sm:$0xf0]  ;;  %v4921_v5 = vld [vmem:[%s10863_s2 + $0xe8] sm:$0xf]  ;;  %v6878_v6 = vld [vmem:[%s10863_s2 + $0xf4] sm:$0xf0] }
   0x3   :  { %v4918_v7 = vor.u32 %v6875_v2, %v4915_v4  ;;  %v4922_v8 = vor.u32 %v6878_v6, %v4921_v5  ;;  %v6876_v9 = vld [vmem:[%s10863_s2 + $0xec] sm:$0xf]  ;;  %v4923_v10 = vld [vmem:[%s10863_s2 + $0xf8] sm:$0xf0]  ;;  %v4897_v11 = vld [vmem:[%s10863_s2 + $0xc0] sm:$0xf] }
   0x4   :  { %266 = vmatpush.bf16.msra.mxu0 %v4914_v3  ;;  %v4926_v12 = vor.u32 %v6876_v9, %v4923_v10  ;;  %v6873_v13 = vld [vmem:[%s10863_s2 + $0xcc] sm:$0xf0]  ;;  %v6871_v14 = vld [vmem:[%s10863_s2 + $0xc4] sm:$0xf]  ;;  %v4899_v15 = vld [vmem:[%s10863_s2 + $0xd0] sm:$0xf0] }
   0x5   :  { %279 = vmatpush.bf16.msra.mxu1 %v4918_v7  ;;  %292 = vmatpush.bf16.msra.mxu2 %v4922_v8  ;;  %v4898_v16 = vor.u32 %v6873_v13, %v4897_v11  ;;  %v4902_v17 = vor.u32 %v6871_v14, %v4899_v15  ;;  %v4905_v18 = vld [vmem:[%s10863_s2 + $0xc8] sm:$0xf]  ;;  %v6874_v19 = vld [vmem:[%s10863_s2 + $0xd4] sm:$0xf0]  ;;  %v6872_v20 = vld [vmem:[%s10863_s2 + $0xcc] sm:$0xf] }
   0x6   :  { %305 = vmatpush.bf16.msra.mxu3 %v4926_v12  ;;  %v4906_v21 = vor.u32 %v6874_v19, %v4905_v18  ;;  %v4907_v22 = vld [vmem:[%s10863_s2 + $0xd8] sm:$0xf0]  ;;  %v4881_v23 = vld [vmem:[%s10863_s2 + $0xa0] sm:$0xf]  ;;  %v6869_v24 = vld [vmem:[%s10863_s2 + $0xac] sm:$0xf0] }
   0x7   :  { %v4910_v25 = vor.u32 %v6872_v20, %v4907_v22  ;;  %v6867_v26 = vld [vmem:[%s10863_s2 + $0xa4] sm:$0xf]  ;;  %v4883_v27 = vld [vmem:[%s10863_s2 + $0xb0] sm:$0xf0]  ;;  %v4889_v28 = vld [vmem:[%s10863_s2 + $0xa8] sm:$0xf]  ;;  %v4882_v29 = vor.u32 %v6869_v24, %v4881_v23 }
   0x8   :  { %267 = vmatpush.bf16.msra.mxu0 %v4898_v16  ;;  %v6870_v30 = vld [vmem:[%s10863_s2 + $0xb4] sm:$0xf0]  ;;  %v6868_v31 = vld [vmem:[%s10863_s2 + $0xac] sm:$0xf]  ;;  %v4891_v32 = vld [vmem:[%s10863_s2 + $0xb8] sm:$0xf0]  ;;  %v4886_v33 = vor.u32 %v6867_v26, %v4883_v27 }
   0x9   :  { %280 = vmatpush.bf16.msra.mxu1 %v4902_v17  ;;  %293 = vmatpush.bf16.msra.mxu2 %v4906_v21  ;;  %v4890_v34 = vor.u32 %v6870_v30, %v4889_v28  ;;  %v4865_v35 = vld [vmem:[%s10863_s2 + $0x80] sm:$0xf]  ;;  %v6865_v36 = vld [vmem:[%s10863_s2 + $0x8c] sm:$0xf0]  ;;  %v6863_v37 = vld [vmem:[%s10863_s2 + $0x84] sm:$0xf]  ;;  %v4894_v38 = vor.u32 %v6868_v31, %v4891_v32 }
   0xa   :  { %306 = vmatpush.bf16.msra.mxu3 %v4910_v25  ;;  %v4867_v39 = vld [vmem:[%s10863_s2 + $0x90] sm:$0xf0]  ;;  %v4873_v40 = vld [vmem:[%s10863_s2 + $0x88] sm:$0xf]  ;;  %v6866_v41 = vld [vmem:[%s10863_s2 + $0x94] sm:$0xf0]  ;;  %v4866_v44 = vor.u32 %v6865_v36, %v4865_v35 }
   0xb   :  { %v6864_v42 = vld [vmem:[%s10863_s2 + $0x8c] sm:$0xf]  ;;  %v4875_v43 = vld [vmem:[%s10863_s2 + $0x98] sm:$0xf0]  ;;  %v4870_v45 = vor.u32 %v6863_v37, %v4867_v39  ;;  %v4874_v46 = vor.u32 %v6866_v41, %v4873_v40  ;;  %v4849_v47 = vld [vmem:[%s10863_s2 + $0x60] sm:$0xf] }
   0xc   :  { %268 = vmatpush.bf16.msra.mxu0 %v4882_v29  ;;  %v6861_v48 = vld [vmem:[%s10863_s2 + $0x6c] sm:$0xf0]  ;;  %v6859_v49 = vld [vmem:[%s10863_s2 + $0x64] sm:$0xf]  ;;  %v4878_v50 = vor.u32 %v6864_v42, %v4875_v43  ;;  %v4851_v51 = vld [vmem:[%s10863_s2 + $0x70] sm:$0xf0] }
   0xd   :  { %281 = vmatpush.bf16.msra.mxu1 %v4886_v33  ;;  %294 = vmatpush.bf16.msra.mxu2 %v4890_v34  ;;  %v4857_v52 = vld [vmem:[%s10863_s2 + $0x68] sm:$0xf]  ;;  %v6862_v53 = vld [vmem:[%s10863_s2 + $0x74] sm:$0xf0]  ;;  %v6860_v54 = vld [vmem:[%s10863_s2 + $0x6c] sm:$0xf]  ;;  %v4850_v56 = vor.u32 %v6861_v48, %v4849_v47  ;;  %v4854_v57 = vor.u32 %v6859_v49, %v4851_v51 }
   0xe   :  { %307 = vmatpush.bf16.msra.mxu3 %v4894_v38  ;;  %v4859_v55 = vld [vmem:[%s10863_s2 + $0x78] sm:$0xf0]  ;;  %v4858_v58 = vor.u32 %v6862_v53, %v4857_v52  ;;  %v4833_v59 = vld [vmem:[%s10863_s2 + $0x40] sm:$0xf]  ;;  %v6857_v60 = vld [vmem:[%s10863_s2 + $0x4c] sm:$0xf0] }
   0xf   :  { %v6855_v61 = vld [vmem:[%s10863_s2 + $0x44] sm:$0xf]  ;;  %v4862_v62 = vor.u32 %v6860_v54, %v4859_v55  ;;  %v4835_v63 = vld [vmem:[%s10863_s2 + $0x50] sm:$0xf0]  ;;  %v4841_v0 = vld [vmem:[%s10863_s2 + $0x48] sm:$0xf]  ;;  %v4834_v4 = vor.u32 %v6857_v60, %v4833_v59 }
  0x10   :  { %269 = vmatpush.bf16.msra.mxu0 %v4866_v44  ;;  %v6858_v1 = vld [vmem:[%s10863_s2 + $0x54] sm:$0xf0]  ;;  %v6856_v2 = vld [vmem:[%s10863_s2 + $0x4c] sm:$0xf]  ;;  %v4843_v3 = vld [vmem:[%s10863_s2 + $0x58] sm:$0xf0]  ;;  %v4838_v6 = vor.u32 %v6855_v61, %v4835_v63 }
  0x11   :  { %282 = vmatpush.bf16.msra.mxu1 %v4870_v45  ;;  %295 = vmatpush.bf16.msra.mxu2 %v4874_v46  ;;  %v4817_v5 = vld [vmem:[%s10863_s2 + $0x20] sm:$0xf]  ;;  %v4842_v7 = vor.u32 %v6858_v1, %v4841_v0  ;;  %v6853_v8 = vld [vmem:[%s10863_s2 + $0x2c] sm:$0xf0]  ;;  %v6851_v9 = vld [vmem:[%s10863_s2 + $0x24] sm:$0xf]  ;;  %v4846_v11 = vor.u32 %v6856_v2, %v4843_v3 }
  0x12   :  { %308 = vmatpush.bf16.msra.mxu3 %v4878_v50  ;;  %v4819_v10 = vld [vmem:[%s10863_s2 + $0x30] sm:$0xf0]  ;;  %v4825_v12 = vld [vmem:[%s10863_s2 + $0x28] sm:$0xf]  ;;  %v6854_v13 = vld [vmem:[%s10863_s2 + $0x34] sm:$0xf0]  ;;  %v4818_v18 = vor.u32 %v6853_v8, %v4817_v5 }
  0x13   :  { %v6852_v14 = vld [vmem:[%s10863_s2 + $0x2c] sm:$0xf]  ;;  %v4827_v15 = vld [vmem:[%s10863_s2 + $0x38] sm:$0xf0]  ;;  %v4801_v16 = vld [vmem:[%s10863_s2] sm:$0xf]  ;;  %v4822_v23 = vor.u32 %v6851_v9, %v4819_v10  ;;  %v4826_v24 = vor.u32 %v6854_v13, %v4825_v12 }
  0x14   :  { %270 = vmatpush.bf16.msra.mxu0 %v4850_v56  ;;  %v6849_v17 = vld [vmem:[%s10863_s2 + $0xc] sm:$0xf0]  ;;  %v6847_v19 = vld [vmem:[%s10863_s2 + $0x4] sm:$0xf]  ;;  %v4803_v20 = vld [vmem:[%s10863_s2 + $0x10] sm:$0xf0]  ;;  %v4830_v28 = vor.u32 %v6852_v14, %v4827_v15 }
  0x15   :  { %283 = vmatpush.bf16.msra.mxu1 %v4854_v57  ;;  %296 = vmatpush.bf16.msra.mxu2 %v4858_v58  ;;  %v4809_v21 = vld [vmem:[%s10863_s2 + $0x8] sm:$0xf]  ;;  %v6850_v22 = vld [vmem:[%s10863_s2 + $0x14] sm:$0xf0]  ;;  %v6848_v25 = vld [vmem:[%s10863_s2 + $0xc] sm:$0xf]  ;;  %v4802_v33 = vor.u32 %v6849_v17, %v4801_v16  ;;  %v4806_v36 = vor.u32 %v6847_v19, %v4803_v20 }
  0x16   :  { %309 = vmatpush.bf16.msra.mxu3 %v4862_v62  ;;  %v4811_v26 = vld [vmem:[%s10863_s2 + $0x18] sm:$0xf0]  ;;  %v7520_v27 = vmov 0.0   ;;  %v5041_v29 = vld [vmem:[%s10864_s3 + $0xe0] sm:$0xf]  ;;  %v4810_v37 = vor.u32 %v6850_v22, %v4809_v21 }
  0x17   :  { %62 = vst [vmem:[#allocation2] sm:$0x3] %v7520_v27  ;;  %v6909_v30 = vld [vmem:[%s10864_s3 + $0xec] sm:$0xf0]  ;;  %v6907_v31 = vld [vmem:[%s10864_s3 + $0xe4] sm:$0xf]  ;;  %v4814_v40 = vor.u32 %v6848_v25, %v4811_v26 }
  0x18   :  { %271 = vmatpush.bf16.msra.mxu0 %v4834_v4  ;;  %63 = vst [vmem:[#allocation3] sm:$0x3] %v7520_v27  ;;  %v5043_v32 = vld [vmem:[%s10864_s3 + $0xf0] sm:$0xf0]  ;;  %v5049_v34 = vld [vmem:[%s10864_s3 + $0xe8] sm:$0xf]  ;;  %v5042_v41 = vor.u32 %v6909_v30, %v5041_v29 }
  0x19   :  { %284 = vmatpush.bf16.msra.mxu1 %v4838_v6  ;;  %297 = vmatpush.bf16.msra.mxu2 %v4842_v7  ;;  %64 = vst [vmem:[#allocation4] sm:$0x3] %v7520_v27  ;;  %v6910_v35 = vld [vmem:[%s10864_s3 + $0xf4] sm:$0xf0]  ;;  %v6908_v38 = vld [vmem:[%s10864_s3 + $0xec] sm:$0xf]  ;;  %v5046_v43 = vor.u32 %v6907_v31, %v5043_v32 }
  0x1a   :  { %310 = vmatpush.bf16.msra.mxu3 %v4846_v11  ;;  %65 = vst [vmem:[#allocation5] sm:$0x3] %v7520_v27  ;;  %v5051_v39 = vld [vmem:[%s10864_s3 + $0xf8] sm:$0xf0]  ;;  %v5025_v42 = vld [vmem:[%s10864_s3 + $0xc0] sm:$0xf]  ;;  %v5050_v44 = vor.u32 %v6910_v35, %v5049_v34 }
  0x1b   :  { %v6905_v45 = vld [vmem:[%s10864_s3 + $0xcc] sm:$0xf0]  ;;  %v6903_v46 = vld [vmem:[%s10864_s3 + $0xc4] sm:$0xf]  ;;  %v5027_v47 = vld [vmem:[%s10864_s3 + $0xd0] sm:$0xf0]  ;;  %v5054_v48 = vor.u32 %v6908_v38, %v5051_v39 }
  0x1c   :  { %272 = vmatpush.bf16.msra.mxu0 %v4818_v18  ;;  %v5033_v50 = vld [vmem:[%s10864_s3 + $0xc8] sm:$0xf]  ;;  %v6906_v51 = vld [vmem:[%s10864_s3 + $0xd4] sm:$0xf0]  ;;  %v6904_v53 = vld [vmem:[%s10864_s3 + $0xcc] sm:$0xf]  ;;  %v5026_v55 = vor.u32 %v6905_v45, %v5025_v42  ;;  %v5030_v56 = vor.u32 %v6903_v46, %v5027_v47 }
  0x1d   :  { %285 = vmatpush.bf16.msra.mxu1 %v4822_v23  ;;  %298 = vmatpush.bf16.msra.mxu2 %v4826_v24  ;;  %v5035_v54 = vld [vmem:[%s10864_s3 + $0xd8] sm:$0xf0]  ;;  %v5034_v57 = vor.u32 %v6906_v51, %v5033_v50  ;;  %v5009_v58 = vld [vmem:[%s10864_s3 + $0xa0] sm:$0xf]  ;;  %v6901_v59 = vld [vmem:[%s10864_s3 + $0xac] sm:$0xf0] }
  0x1e   :  { %311 = vmatpush.bf16.msra.mxu3 %v4830_v28  ;;  %v72_v49 = vld [vmem:[#allocation2] sm:$0x3]  ;;  %v6899_v60 = vld [vmem:[%s10864_s3 + $0xa4] sm:$0xf]  ;;  %v5038_v61 = vor.u32 %v6904_v53, %v5035_v54  ;;  %v5011_v62 = vld [vmem:[%s10864_s3 + $0xb0] sm:$0xf0]  ;;  %v5010_v3 = vor.u32 %v6901_v59, %v5009_v58 }
  0x1f   :  { %v73_v52 = vpack.c.bf16 %v72_v49, %v72_v49  ;;  %v5017_v63 = vld [vmem:[%s10864_s3 + $0xa8] sm:$0xf]  ;;  %v6902_v0 = vld [vmem:[%s10864_s3 + $0xb4] sm:$0xf0]  ;;  %v6900_v1 = vld [vmem:[%s10864_s3 + $0xac] sm:$0xf]  ;;  %v5014_v4 = vor.u32 %v6899_v60, %v5011_v62 }
  0x20   :  { %273 = vmatpush.bf16.msra.mxu0 %v4802_v33  ;;  %v5019_v2 = vld [vmem:[%s10864_s3 + $0xb8] sm:$0xf0]  ;;  %v5018_v5 = vor.u32 %v6902_v0, %v5017_v63  ;;  %v4993_v6 = vld [vmem:[%s10864_s3 + $0x80] sm:$0xf]  ;;  %v6897_v7 = vld [vmem:[%s10864_s3 + $0x8c] sm:$0xf0] }
  0x21   :  { %286 = vmatpush.bf16.msra.mxu1 %v4806_v36  ;;  %299 = vmatpush.bf16.msra.mxu2 %v4810_v37  ;;  %v6895_v8 = vld [vmem:[%s10864_s3 + $0x84] sm:$0xf]  ;;  %v5022_v9 = vor.u32 %v6900_v1, %v5019_v2  ;;  %v4995_v10 = vld [vmem:[%s10864_s3 + $0x90] sm:$0xf0]  ;;  %v5001_v11 = vld [vmem:[%s10864_s3 + $0x88] sm:$0xf]  ;;  %v4994_v15 = vor.u32 %v6897_v7, %v4993_v6 }
  0x22   :  { %312 = vmatpush.bf16.msra.mxu3 %v4814_v40  ;;  %v6898_v12 = vld [vmem:[%s10864_s3 + $0x94] sm:$0xf0]  ;;  %v6896_v13 = vld [vmem:[%s10864_s3 + $0x8c] sm:$0xf]  ;;  %v5003_v14 = vld [vmem:[%s10864_s3 + $0x98] sm:$0xf0]  ;;  %v4998_v16 = vor.u32 %v6895_v8, %v4995_v10 }
  0x23   :  { %274 = vmatmul.bf16.vlgmr.msra.gmra.mxu0 %v73_v52  ;;  %v5002_v17 = vor.u32 %v6898_v12, %v5001_v11  ;;  %v4977_v18 = vld [vmem:[%s10864_s3 + $0x60] sm:$0xf]  ;;  %v6893_v19 = vld [vmem:[%s10864_s3 + $0x6c] sm:$0xf0]  ;;  %v6891_v20 = vld [vmem:[%s10864_s3 + $0x64] sm:$0xf]  ;;  %v5006_v21 = vor.u32 %v6896_v13, %v5003_v14 }
  0x24   :  { %542 = vmatpush.bf16.msrb.mxu0 %v5042_v41  ;;  %287 = vmatmul.bf16.vlgmr.msra.gmra.mxu1 %v73_v52  ;;  %v4979_v22 = vld [vmem:[%s10864_s3 + $0x70] sm:$0xf0]  ;;  %v4985_v23 = vld [vmem:[%s10864_s3 + $0x68] sm:$0xf]  ;;  %v6894_v24 = vld [vmem:[%s10864_s3 + $0x74] sm:$0xf0]  ;;  %v4978_v27 = vor.u32 %v6893_v19, %v4977_v18 }
  0x25   :  { %555 = vmatpush.bf16.msrb.mxu1 %v5046_v43  ;;  %568 = vmatpush.bf16.msrb.mxu2 %v5050_v44  ;;  %v6892_v25 = vld [vmem:[%s10864_s3 + $0x6c] sm:$0xf]  ;;  %v4987_v26 = vld [vmem:[%s10864_s3 + $0x78] sm:$0xf0]  ;;  %v4982_v28 = vor.u32 %v6891_v20, %v4979_v22  ;;  %v4986_v29 = vor.u32 %v6894_v24, %v4985_v23  ;;  %v4961_v30 = vld [vmem:[%s10864_s3 + $0x40] sm:$0xf] }
  0x26   :  { %581 = vmatpush.bf16.msrb.mxu3 %v5054_v48  ;;  %300 = vmatmul.bf16.vlgmr.msra.gmra.mxu2 %v73_v52  ;;  %v6889_v31 = vld [vmem:[%s10864_s3 + $0x4c] sm:$0xf0]  ;;  %v6887_v32 = vld [vmem:[%s10864_s3 + $0x44] sm:$0xf]  ;;  %v4990_v33 = vor.u32 %v6892_v25, %v4987_v26  ;;  %v4963_v34 = vld [vmem:[%s10864_s3 + $0x50] sm:$0xf0] }
  0x27   :  { %313 = vmatmul.bf16.vlgmr.msra.gmra.mxu3 %v73_v52  ;;  %v4969_v35 = vld [vmem:[%s10864_s3 + $0x48] sm:$0xf]  ;;  %v6890_v36 = vld [vmem:[%s10864_s3 + $0x54] sm:$0xf0]  ;;  %v6888_v37 = vld [vmem:[%s10864_s3 + $0x4c] sm:$0xf]  ;;  %v4962_v39 = vor.u32 %v6889_v31, %v4961_v30  ;;  %v4966_v40 = vor.u32 %v6887_v32, %v4963_v34 }
  0x28   :  { %543 = vmatpush.bf16.msrb.mxu0 %v5026_v55  ;;  %v4971_v38 = vld [vmem:[%s10864_s3 + $0x58] sm:$0xf0]  ;;  %v4970_v41 = vor.u32 %v6890_v36, %v4969_v35  ;;  %v4945_v42 = vld [vmem:[%s10864_s3 + $0x20] sm:$0xf]  ;;  %v6885_v43 = vld [vmem:[%s10864_s3 + $0x2c] sm:$0xf0] }
  0x29   :  { %556 = vmatpush.bf16.msrb.mxu1 %v5030_v56  ;;  %569 = vmatpush.bf16.msrb.mxu2 %v5034_v57  ;;  %v6883_v44 = vld [vmem:[%s10864_s3 + $0x24] sm:$0xf]  ;;  %v4974_v45 = vor.u32 %v6888_v37, %v4971_v38  ;;  %v4947_v46 = vld [vmem:[%s10864_s3 + $0x30] sm:$0xf0]  ;;  %v4953_v47 = vld [vmem:[%s10864_s3 + $0x28] sm:$0xf]  ;;  %v4946_v51 = vor.u32 %v6885_v43, %v4945_v42 }
  0x2a   :  { %582 = vmatpush.bf16.msrb.mxu3 %v5038_v61  ;;  %v6886_v48 = vld [vmem:[%s10864_s3 + $0x34] sm:$0xf0]  ;;  %v6884_v49 = vld [vmem:[%s10864_s3 + $0x2c] sm:$0xf]  ;;  %v4955_v50 = vld [vmem:[%s10864_s3 + $0x38] sm:$0xf0]  ;;  %v4950_v52 = vor.u32 %v6883_v44, %v4947_v46 }
  0x2b   :  { %v4954_v53 = vor.u32 %v6886_v48, %v4953_v47  ;;  %v4929_v54 = vld [vmem:[%s10864_s3] sm:$0xf]  ;;  %v6881_v55 = vld [vmem:[%s10864_s3 + $0xc] sm:$0xf0]  ;;  %v6879_v56 = vld [vmem:[%s10864_s3 + $0x4] sm:$0xf]  ;;  %v4958_v57 = vor.u32 %v6884_v49, %v4955_v50 }
  0x2c   :  { %544 = vmatpush.bf16.msrb.mxu0 %v5010_v3  ;;  %v4931_v58 = vld [vmem:[%s10864_s3 + $0x10] sm:$0xf0]  ;;  %v4937_v59 = vld [vmem:[%s10864_s3 + $0x8] sm:$0xf]  ;;  %v6882_v60 = vld [vmem:[%s10864_s3 + $0x14] sm:$0xf0]  ;;  %v4930_v63 = vor.u32 %v6881_v55, %v4929_v54 }
  0x2d   :  { %557 = vmatpush.bf16.msrb.mxu1 %v5014_v4  ;;  %570 = vmatpush.bf16.msrb.mxu2 %v5018_v5  ;;  %v6880_v61 = vld [vmem:[%s10864_s3 + $0xc] sm:$0xf]  ;;  %v4939_v62 = vld [vmem:[%s10864_s3 + $0x18] sm:$0xf0]  ;;  %v348_v0 = vld [vmem:[#allocation4] sm:$0x3]  ;;  %v4934_v1 = vor.u32 %v6879_v56, %v4931_v58  ;;  %v4938_v2 = vor.u32 %v6882_v60, %v4937_v59 }
  0x2e   :  { %583 = vmatpush.bf16.msrb.mxu3 %v5022_v9  ;;  %v4942_v3 = vor.u32 %v6880_v61, %v4939_v62  ;;  %v349_v4 = vpack.c.bf16 %v348_v0, %v348_v0  ;;  %v5169_v5 = vld [vmem:[%s10863_s2 + $0xe0] sm:$0xf]  ;;  %v6941_v6 = vld [vmem:[%s10863_s2 + $0xec] sm:$0xf0]  ;;  %v6939_v7 = vld [vmem:[%s10863_s2 + $0xe4] sm:$0xf] }
  0x2f   :  { %v5170_v8 = vor.u32 %v6941_v6, %v5169_v5  ;;  %v5171_v9 = vld [vmem:[%s10863_s2 + $0xf0] sm:$0xf0]  ;;  %v5177_v10 = vld [vmem:[%s10863_s2 + $0xe8] sm:$0xf]  ;;  %v6942_v12 = vld [vmem:[%s10863_s2 + $0xf4] sm:$0xf0] }
  0x30   :  { %545 = vmatpush.bf16.msrb.mxu0 %v4994_v15  ;;  %v5174_v11 = vor.u32 %v6939_v7, %v5171_v9  ;;  %v6940_v13 = vld [vmem:[%s10863_s2 + $0xec] sm:$0xf]  ;;  %v5179_v14 = vld [vmem:[%s10863_s2 + $0xf8] sm:$0xf0]  ;;  %v5178_v15 = vor.u32 %v6942_v12, %v5177_v10  ;;  %v6937_v18 = vld [vmem:[%s10863_s2 + $0xcc] sm:$0xf0] }
  0x31   :  { %558 = vmatpush.bf16.msrb.mxu1 %v4998_v16  ;;  %571 = vmatpush.bf16.msrb.mxu2 %v5002_v17  ;;  %v5182_v16 = vor.u32 %v6940_v13, %v5179_v14  ;;  %v5153_v17 = vld [vmem:[%s10863_s2 + $0xc0] sm:$0xf]  ;;  %v6935_v19 = vld [vmem:[%s10863_s2 + $0xc4] sm:$0xf]  ;;  %v5161_v22 = vld [vmem:[%s10863_s2 + $0xc8] sm:$0xf] }
  0x32   :  { %584 = vmatpush.bf16.msrb.mxu3 %v5006_v21  ;;  %v5154_v20 = vor.u32 %v6937_v18, %v5153_v17  ;;  %v5155_v21 = vld [vmem:[%s10863_s2 + $0xd0] sm:$0xf0]  ;;  %v6938_v23 = vld [vmem:[%s10863_s2 + $0xd4] sm:$0xf0]  ;;  %v6936_v26 = vld [vmem:[%s10863_s2 + $0xcc] sm:$0xf] }
  0x33   :  { %v5158_v24 = vor.u32 %v6935_v19, %v5155_v21  ;;  %v5162_v25 = vor.u32 %v6938_v23, %v5161_v22  ;;  %v6933_v30 = vld [vmem:[%s10863_s2 + $0xac] sm:$0xf0]  ;;  %v6931_v31 = vld [vmem:[%s10863_s2 + $0xa4] sm:$0xf]  ;;  %v5145_v34 = vld [vmem:[%s10863_s2 + $0xa8] sm:$0xf] }
  0x34   :  { %546 = vmatpush.bf16.msrb.mxu0 %v4978_v27  ;;  %v5163_v27 = vld [vmem:[%s10863_s2 + $0xd8] sm:$0xf0]  ;;  %v6934_v35 = vld [vmem:[%s10863_s2 + $0xb4] sm:$0xf0]  ;;  %v6932_v38 = vld [vmem:[%s10863_s2 + $0xac] sm:$0xf] }
  0x35   :  { %559 = vmatpush.bf16.msrb.mxu1 %v4982_v28  ;;  %572 = vmatpush.bf16.msrb.mxu2 %v4986_v29  ;;  %v5166_v28 = vor.u32 %v6936_v26, %v5163_v27  ;;  %v5137_v29 = vld [vmem:[%s10863_s2 + $0xa0] sm:$0xf]  ;;  %v5146_v37 = vor.u32 %v6934_v35, %v5145_v34  ;;  %v6929_v42 = vld [vmem:[%s10863_s2 + $0x8c] sm:$0xf0]  ;;  %v6927_v43 = vld [vmem:[%s10863_s2 + $0x84] sm:$0xf] }
  0x36   :  { %585 = vmatpush.bf16.msrb.mxu3 %v4990_v33  ;;  %v5138_v32 = vor.u32 %v6933_v30, %v5137_v29  ;;  %v5139_v33 = vld [vmem:[%s10863_s2 + $0xb0] sm:$0xf0]  ;;  %v5129_v46 = vld [vmem:[%s10863_s2 + $0x88] sm:$0xf]  ;;  %v6930_v47 = vld [vmem:[%s10863_s2 + $0x94] sm:$0xf0] }
  0x37   :  { %v5142_v36 = vor.u32 %v6931_v31, %v5139_v33  ;;  %v5130_v49 = vor.u32 %v6930_v47, %v5129_v46  ;;  %v6928_v50 = vld [vmem:[%s10863_s2 + $0x8c] sm:$0xf]  ;;  %v6925_v54 = vld [vmem:[%s10863_s2 + $0x6c] sm:$0xf0]  ;;  %v6923_v55 = vld [vmem:[%s10863_s2 + $0x64] sm:$0xf] }
  0x38   :  { %547 = vmatpush.bf16.msrb.mxu0 %v4962_v39  ;;  %v5147_v39 = vld [vmem:[%s10863_s2 + $0xb8] sm:$0xf0]  ;;  %v5113_v58 = vld [vmem:[%s10863_s2 + $0x68] sm:$0xf]  ;;  %v6926_v59 = vld [vmem:[%s10863_s2 + $0x74] sm:$0xf0] }
  0x39   :  { %560 = vmatpush.bf16.msrb.mxu1 %v4966_v40  ;;  %573 = vmatpush.bf16.msrb.mxu2 %v4970_v41  ;;  %v5150_v40 = vor.u32 %v6932_v38, %v5147_v39  ;;  %v5121_v41 = vld [vmem:[%s10863_s2 + $0x80] sm:$0xf]  ;;  %v5114_v61 = vor.u32 %v6926_v59, %v5113_v58  ;;  %v6924_v62 = vld [vmem:[%s10863_s2 + $0x6c] sm:$0xf]  ;;  %v5091_v5 = vld [vmem:[%s10863_s2 + $0x50] sm:$0xf0] }
  0x3a   :  { %586 = vmatpush.bf16.msrb.mxu3 %v4974_v45  ;;  %v5122_v44 = vor.u32 %v6929_v42, %v5121_v41  ;;  %v5123_v45 = vld [vmem:[%s10863_s2 + $0x90] sm:$0xf0]  ;;  %v5097_v6 = vld [vmem:[%s10863_s2 + $0x48] sm:$0xf]  ;;  %v6922_v7 = vld [vmem:[%s10863_s2 + $0x54] sm:$0xf0] }
  0x3b   :  { %v5126_v48 = vor.u32 %v6927_v43, %v5123_v45  ;;  %v5098_v9 = vor.u32 %v6922_v7, %v5097_v6  ;;  %v6920_v10 = vld [vmem:[%s10863_s2 + $0x4c] sm:$0xf]  ;;  %v68_v12 = vld [vmem:[%s10865_s0] sm:$0x3]  ;;  %v69_v14 = vld [vmem:[%s10865_s0 + $0x8] sm:$0x3] }
  0x3c   :  { %548 = vmatpush.bf16.msrb.mxu0 %v4946_v51  ;;  %v5131_v51 = vld [vmem:[%s10863_s2 + $0x98] sm:$0xf0]  ;;  %v6915_v19 = vld [vmem:[%s10863_s2 + $0x24] sm:$0xf]  ;;  %v5081_v21 = vld [vmem:[%s10863_s2 + $0x28] sm:$0xf] }
  0x3d   :  { %561 = vmatpush.bf16.msrb.mxu1 %v4950_v52  ;;  %574 = vmatpush.bf16.msrb.mxu2 %v4954_v53  ;;  %v5134_v52 = vor.u32 %v6928_v50, %v5131_v51  ;;  %v5105_v53 = vld [vmem:[%s10863_s2 + $0x60] sm:$0xf]  ;;  %v6916_v26 = vld [vmem:[%s10863_s2 + $0x2c] sm:$0xf]  ;;  %v5083_v29 = vld [vmem:[%s10863_s2 + $0x38] sm:$0xf0] }
  0x3e   :  { %587 = vmatpush.bf16.msrb.mxu3 %v4958_v57  ;;  %v5106_v56 = vor.u32 %v6925_v54, %v5105_v53  ;;  %v5107_v57 = vld [vmem:[%s10863_s2 + $0x70] sm:$0xf0]  ;;  %v70_v31 = vld [vmem:[%s10865_s0 + $0x10] sm:$0x3]  ;;  %v5057_v33 = vld [vmem:[%s10863_s2] sm:$0xf] }
  0x3f   :  { %v5110_v60 = vor.u32 %v6923_v55, %v5107_v57  ;;  %v6913_v34 = vld [vmem:[%s10863_s2 + $0xc] sm:$0xf0]  ;;  %v6911_v38 = vld [vmem:[%s10863_s2 + $0x4] sm:$0xf]  ;;  %v5059_v39 = vld [vmem:[%s10863_s2 + $0x10] sm:$0xf0] }
  0x40   :  { %549 = vmatpush.bf16.msrb.mxu0 %v4930_v63  ;;  %v5115_v63 = vld [vmem:[%s10863_s2 + $0x78] sm:$0xf0]  ;;  %v5065_v41 = vld [vmem:[%s10863_s2 + $0x8] sm:$0xf]  ;;  %v6914_v42 = vld [vmem:[%s10863_s2 + $0x14] sm:$0xf0] }
  0x41   :  { %562 = vmatpush.bf16.msrb.mxu1 %v4934_v1  ;;  %575 = vmatpush.bf16.msrb.mxu2 %v4938_v2  ;;  %v5118_v0 = vor.u32 %v6924_v62, %v5115_v63  ;;  %v5089_v1 = vld [vmem:[%s10863_s2 + $0x40] sm:$0xf]  ;;  %v6921_v2 = vld [vmem:[%s10863_s2 + $0x4c] sm:$0xf0]  ;;  %v6912_v43 = vld [vmem:[%s10863_s2 + $0xc] sm:$0xf] }
  0x42   :  { %588 = vmatpush.bf16.msrb.mxu3 %v4942_v3  ;;  %v6919_v3 = vld [vmem:[%s10863_s2 + $0x44] sm:$0xf]  ;;  %v5067_v45 = vld [vmem:[%s10863_s2 + $0x18] sm:$0xf0]  ;;  %v5297_v46 = vld [vmem:[%s10864_s3 + $0xe0] sm:$0xf] }
  0x43   :  { %550 = vmatmul.bf16.vlgmr.msrb.gmra.mxu0 %v349_v4  ;;  %v6973_v47 = vld [vmem:[%s10864_s3 + $0xec] sm:$0xf0]  ;;  %v6971_v51 = vld [vmem:[%s10864_s3 + $0xe4] sm:$0xf]  ;;  %v5305_v57 = vld [vmem:[%s10864_s3 + $0xe8] sm:$0xf] }
  0x44   :  { %563 = vmatmul.bf16.vlgmr.msrb.gmra.mxu1 %v349_v4  ;;  %576 = vmatmul.bf16.vlgmr.msrb.gmra.mxu2 %v349_v4  ;;  %v5298_v50 = vor.u32 %v6973_v47, %v5297_v46  ;;  %v6974_v58 = vld [vmem:[%s10864_s3 + $0xf4] sm:$0xf0]  ;;  %v6972_v59 = vld [vmem:[%s10864_s3 + $0xec] sm:$0xf]  ;;  %v5307_v63 = vld [vmem:[%s10864_s3 + $0xf8] sm:$0xf0] }
  0x45   :  { %589 = vmatmul.bf16.vlgmr.msrb.gmra.mxu3 %v349_v4  ;;  %847 = vmatpush.bf16.msra.mxu0 %v5170_v8  ;;  %v5090_v4 = vor.u32 %v6921_v2, %v5089_v1  ;;  %v5094_v8 = vor.u32 %v6919_v3, %v5091_v5  ;;  %v5306_v62 = vor.u32 %v6974_v58, %v5305_v57  ;;  %v5281_v1 = vld [vmem:[%s10864_s3 + $0xc0] sm:$0xf]  ;;  %v6969_v2 = vld [vmem:[%s10864_s3 + $0xcc] sm:$0xf0]  ;;  %v6967_v3 = vld [vmem:[%s10864_s3 + $0xc4] sm:$0xf] }
  0x46   :  { %860 = vmatpush.bf16.msra.mxu1 %v5174_v11  ;;  %873 = vmatpush.bf16.msra.mxu2 %v5178_v15  ;;  %v5099_v11 = vld [vmem:[%s10863_s2 + $0x58] sm:$0xf0]  ;;  %v5073_v15 = vld [vmem:[%s10863_s2 + $0x20] sm:$0xf]  ;;  %v5282_v6 = vor.u32 %v6969_v2, %v5281_v1  ;;  %v5283_v7 = vld [vmem:[%s10864_s3 + $0xd0] sm:$0xf0] }
  0x47   :  { %886 = vmatpush.bf16.msra.mxu3 %v5182_v16  ;;  %v5102_v13 = vor.u32 %v6920_v10, %v5099_v11  ;;  %v6917_v16 = vld [vmem:[%s10863_s2 + $0x2c] sm:$0xf0]  ;;  %v5286_v11 = vor.u32 %v6967_v3, %v5283_v7  ;;  %v6962_v46 = vld [vmem:[%s10864_s3 + $0x94] sm:$0xf0]  ;;  %v6955_v57 = vld [vmem:[%s10864_s3 + $0x64] sm:$0xf] }
  0x48   :  { %v5074_v18 = vor.u32 %v6917_v16, %v5073_v15  ;;  %v6968_v16 = vld [vmem:[%s10864_s3 + $0xcc] sm:$0xf]  ;;  %v5235_v58 = vld [vmem:[%s10864_s3 + $0x70] sm:$0xf0]  ;;  %v5217_v2 = vld [vmem:[%s10864_s3 + $0x40] sm:$0xf] }
  0x49   :  { %848 = vmatpush.bf16.msra.mxu0 %v5154_v20  ;;  %v5075_v20 = vld [vmem:[%s10863_s2 + $0x30] sm:$0xf0]  ;;  %v6953_v3 = vld [vmem:[%s10864_s3 + $0x4c] sm:$0xf0] }
  0x4a   :  { %861 = vmatpush.bf16.msra.mxu1 %v5158_v24  ;;  %874 = vmatpush.bf16.msra.mxu2 %v5162_v25  ;;  %v5078_v24 = vor.u32 %v6915_v19, %v5075_v20  ;;  %v6918_v25 = vld [vmem:[%s10863_s2 + $0x34] sm:$0xf0]  ;;  %v5265_v19 = vld [vmem:[%s10864_s3 + $0xa0] sm:$0xf]  ;;  %v5219_v7 = vld [vmem:[%s10864_s3 + $0x50] sm:$0xf0] }
  0x4b   :  { %887 = vmatpush.bf16.msra.mxu3 %v5166_v28  ;;  %v5082_v28 = vor.u32 %v6918_v25, %v5081_v21 }
  0x4d   :  { %849 = vmatpush.bf16.msra.mxu0 %v5138_v32  ;;  %v5086_v32 = vor.u32 %v6916_v26, %v5083_v29  ;;  %v5273_v29 = vld [vmem:[%s10864_s3 + $0xa8] sm:$0xf] }
  0x4e   :  { %862 = vmatpush.bf16.msra.mxu1 %v5142_v36  ;;  %875 = vmatpush.bf16.msra.mxu2 %v5146_v37  ;;  %v71_v36 = vld [vmem:[%s10865_s0 + $0x18] sm:$0x3]  ;;  %v5058_v37 = vor.u32 %v6913_v34, %v5057_v33 }
  0x4f   :  { %888 = vmatpush.bf16.msra.mxu3 %v5150_v40  ;;  %v5062_v40 = vor.u32 %v6911_v38, %v5059_v39  ;;  %v5249_v38 = vld [vmem:[%s10864_s3 + $0x80] sm:$0xf]  ;;  %v6961_v39 = vld [vmem:[%s10864_s3 + $0x8c] sm:$0xf0] }
  0x51   :  { %850 = vmatpush.bf16.msra.mxu0 %v5122_v44  ;;  %v5066_v44 = vor.u32 %v6914_v42, %v5065_v41 }
  0x52   :  { %863 = vmatpush.bf16.msra.mxu1 %v5126_v48  ;;  %876 = vmatpush.bf16.msra.mxu2 %v5130_v49  ;;  %v5070_v49 = vor.u32 %v6912_v43, %v5067_v45  ;;  %v5250_v43 = vor.u32 %v6961_v39, %v5249_v38  ;;  %v5257_v45 = vld [vmem:[%s10864_s3 + $0x88] sm:$0xf]  ;;  %v6945_v39 = vld [vmem:[%s10864_s3 + $0xc] sm:$0xf0] }
  0x53   :  { %889 = vmatpush.bf16.msra.mxu3 %v5134_v52  ;;  %v5299_v52 = vld [vmem:[%s10864_s3 + $0xf0] sm:$0xf0] }
  0x55   :  { %851 = vmatpush.bf16.msra.mxu0 %v5106_v56  ;;  %v5302_v56 = vor.u32 %v6971_v51, %v5299_v52  ;;  %v5259_v51 = vld [vmem:[%s10864_s3 + $0x98] sm:$0xf0] }
  0x56   :  { %864 = vmatpush.bf16.msra.mxu1 %v5110_v60  ;;  %877 = vmatpush.bf16.msra.mxu2 %v5114_v61 }
  0x57   :  { %890 = vmatpush.bf16.msra.mxu3 %v5118_v0  ;;  %v5310_v0 = vor.u32 %v6972_v59, %v5307_v63  ;;  %v5241_v59 = vld [vmem:[%s10864_s3 + $0x68] sm:$0xf]  ;;  %v5243_v63 = vld [vmem:[%s10864_s3 + $0x78] sm:$0xf0] }
  0x59   :  { %852 = vmatpush.bf16.msra.mxu0 %v5090_v4 }
  0x5a   :  { %865 = vmatpush.bf16.msra.mxu1 %v5094_v8  ;;  %878 = vmatpush.bf16.msra.mxu2 %v5098_v9  ;;  %v5289_v8 = vld [vmem:[%s10864_s3 + $0xc8] sm:$0xf] }
  0x5b   :  { %891 = vmatpush.bf16.msra.mxu3 %v5102_v13  ;;  %v322_v13 = vld [vmem:[#allocation3] sm:$0x3] }
  0x5d   :  { %853 = vmatpush.bf16.msra.mxu0 %v5074_v18  ;;  %v5291_v18 = vld [vmem:[%s10864_s3 + $0xd8] sm:$0xf0] }
  0x5e   :  { %866 = vmatpush.bf16.msra.mxu1 %v5078_v24  ;;  %879 = vmatpush.bf16.msra.mxu2 %v5082_v28  ;;  %v6963_v24 = vld [vmem:[%s10864_s3 + $0xa4] sm:$0xf]  ;;  %v5267_v28 = vld [vmem:[%s10864_s3 + $0xb0] sm:$0xf0] }
  0x5f   :  { %892 = vmatpush.bf16.msra.mxu3 %v5086_v32  ;;  %v5270_v33 = vor.u32 %v6963_v24, %v5267_v28  ;;  %v6947_v24 = vld [vmem:[%s10864_s3 + $0x24] sm:$0xf]  ;;  %v5209_v28 = vld [vmem:[%s10864_s3 + $0x28] sm:$0xf] }
  0x61   :  { %854 = vmatpush.bf16.msra.mxu0 %v5058_v37 }
  0x62   :  { %867 = vmatpush.bf16.msra.mxu1 %v5062_v40  ;;  %880 = vmatpush.bf16.msra.mxu2 %v5066_v44  ;;  %v6959_v40 = vld [vmem:[%s10864_s3 + $0x84] sm:$0xf]  ;;  %v5251_v44 = vld [vmem:[%s10864_s3 + $0x90] sm:$0xf0] }
  0x63   :  { %893 = vmatpush.bf16.msra.mxu3 %v5070_v49  ;;  %v5258_v49 = vor.u32 %v6962_v46, %v5257_v45 }
  0x65   :  { %1138 = vmatpush.bf16.msrb.mxu0 %v5298_v50  ;;  %v6960_v50 = vld [vmem:[%s10864_s3 + $0x8c] sm:$0xf] }
  0x66   :  { %1151 = vmatpush.bf16.msrb.mxu1 %v5302_v56  ;;  %1164 = vmatpush.bf16.msrb.mxu2 %v5306_v62  ;;  %v5262_v52 = vor.u32 %v6960_v50, %v5259_v51  ;;  %v6956_v62 = vld [vmem:[%s10864_s3 + $0x6c] sm:$0xf]  ;;  %v347_v51 = vld [vmem:[%s10866_s1 + $0x38] sm:$0xc0] }
  0x67   :  { %1177 = vmatpush.bf16.msrb.mxu3 %v5310_v0  ;;  %v5246_v1 = vor.u32 %v6956_v62, %v5243_v63  ;;  %v610_v62 = vld [vmem:[#allocation5] sm:$0x3] }
  0x69   :  { %1139 = vmatpush.bf16.msrb.mxu0 %v5282_v6  ;;  %v5218_v6 = vor.u32 %v6953_v3, %v5217_v2 }
  0x6a   :  { %1152 = vmatpush.bf16.msrb.mxu1 %v5286_v11 }
  0x6e   :  { %1153 = vmatpush.bf16.msrb.mxu1 %v5270_v33  ;;  %v6948_v33 = vld [vmem:[%s10864_s3 + $0x2c] sm:$0xf] }
  0xa0   :  { %v275_v17 = vpop.f32.mrf.mxu0 }
  0xa1   :  { %v318_v22 = vadd.f32 %v275_v17, %v68_v12  ;;  %v288_v23 = vpop.f32.mrf.mxu1  ;;  %v6970_v12 = vld [vmem:[%s10864_s3 + $0xd4] sm:$0xf0] }
  0xa2   :  { %v319_v27 = vadd.f32 %v288_v23, %v69_v14  ;;  %v5290_v15 = vor.u32 %v6970_v12, %v5289_v8  ;;  %v6965_v23 = vld [vmem:[%s10864_s3 + $0xac] sm:$0xf0]  ;;  %v5225_v8 = vld [vmem:[%s10864_s3 + $0x48] sm:$0xf] }
  0xa3   :  { %v323_v30 = vmul.f32 0.5, %v318_v22  ;;  %v5294_v22 = vor.u32 %v6968_v16, %v5291_v18 }
  0xa4   :  { %v327_v35 = vmul.f32 0.5, %v319_v27  ;;  %1165 = vmatpush.bf16.msrb.mxu2 %v5290_v15  ;;  %v5266_v27 = vor.u32 %v6965_v23, %v5265_v19  ;;  %v344_v15 = vld [vmem:[%s10866_s1 + $0x20] sm:$0xc0]  ;;  %v6949_v23 = vld [vmem:[%s10864_s3 + $0x2c] sm:$0xf0] }
  0xa5   :  { %7360 = vtanh.f32 %v323_v30  ;;  %v6966_v30 = vld [vmem:[%s10864_s3 + $0xb4] sm:$0xf0]  ;;  %1178 = vmatpush.bf16.msrb.mxu3 %v5294_v22 }
  0xa6   :  { %7362 = vtanh.f32 %v327_v35  ;;  %v5274_v34 = vor.u32 %v6966_v30, %v5273_v29  ;;  %v6964_v35 = vld [vmem:[%s10864_s3 + $0xac] sm:$0xf]  ;;  %1140 = vmatpush.bf16.msrb.mxu0 %v5266_v27  ;;  %v5203_v27 = vld [vmem:[%s10864_s3 + $0x30] sm:$0xf0]  ;;  %v6950_v29 = vld [vmem:[%s10864_s3 + $0x34] sm:$0xf0] }
  0xa8   :  { %v277_v55 = vpop.f32.mrf.mxu0  ;;  %1166 = vmatpush.bf16.msrb.mxu2 %v5274_v34  ;;  %v5211_v34 = vld [vmem:[%s10864_s3 + $0x38] sm:$0xf0] }
  0xa9   :  { %v301_v48 = vpop.f32.mrf.mxu2  ;;  %v290_v61 = vpop.f32.mrf.mxu1  ;;  %v6957_v55 = vld [vmem:[%s10864_s3 + $0x6c] sm:$0xf0]  ;;  %v5214_v38 = vor.u32 %v6948_v33, %v5211_v34  ;;  %v6999_v34 = vld [vmem:[%s10863_s2 + $0xc4] sm:$0xf] }
  0xaa   :  { %v320_v53 = vadd.f32 %v301_v48, %v70_v31  ;;  %v314_v54 = vpop.f32.mrf.mxu3  ;;  %v5254_v48 = vor.u32 %v6959_v40, %v5251_v44  ;;  %1141 = vmatpush.bf16.msrb.mxu0 %v5250_v43  ;;  %v6958_v61 = vld [vmem:[%s10864_s3 + $0x74] sm:$0xf0]  ;;  %v6943_v40 = vld [vmem:[%s10864_s3 + $0x4] sm:$0xf]  ;;  %v5187_v43 = vld [vmem:[%s10864_s3 + $0x10] sm:$0xf0] }
  0xab   :  { %v321_v60 = vadd.f32 %v314_v54, %v71_v36  ;;  %v7361_v4 = vpop.eup %7360  ;;  %v5275_v36 = vld [vmem:[%s10864_s3 + $0xb8] sm:$0xf0]  ;;  %v5233_v54 = vld [vmem:[%s10864_s3 + $0x60] sm:$0xf]  ;;  %v5242_v0 = vor.u32 %v6958_v61, %v5241_v59  ;;  %v5193_v44 = vld [vmem:[%s10864_s3 + $0x8] sm:$0xf]  ;;  %v5190_v46 = vor.u32 %v6943_v40, %v5187_v43 }
  0xac   :  { %7364 = vtanh.f32 %v320_v53  ;;  %v7363_v9 = vpop.eup %7362  ;;  %v325_v10 = vmul.f32 0.5, %v7361_v4  ;;  %v5278_v37 = vor.u32 %v6964_v35, %v5275_v36  ;;  %1154 = vmatpush.bf16.msrb.mxu1 %v5254_v48  ;;  %1167 = vmatpush.bf16.msrb.mxu2 %v5258_v49  ;;  %v5234_v56 = vor.u32 %v6957_v55, %v5233_v54  ;;  %v6951_v4 = vld [vmem:[%s10864_s3 + $0x44] sm:$0xf]  ;;  %v5185_v35 = vld [vmem:[%s10864_s3] sm:$0xf] }
  0xad   :  { %v332_v5 = vmul.f32 0.5, %v321_v60  ;;  %v329_v14 = vmul.f32 0.5, %v7363_v9  ;;  %v5238_v60 = vor.u32 %v6955_v57, %v5235_v58  ;;  %v6954_v9 = vld [vmem:[%s10864_s3 + $0x54] sm:$0xf0]  ;;  %v5222_v11 = vor.u32 %v6951_v4, %v5219_v7  ;;  %v6944_v48 = vld [vmem:[%s10864_s3 + $0xc] sm:$0xf] }
  0xae   :  { %v326_v17 = vadd.f32 0.5, %v325_v10  ;;  %1179 = vmatpush.bf16.msrb.mxu3 %v5278_v37  ;;  %1142 = vmatpush.bf16.msrb.mxu0 %v5234_v56  ;;  %v5226_v12 = vor.u32 %v6954_v9, %v5225_v8  ;;  %v346_v37 = vld [vmem:[%s10866_s1 + $0x30] sm:$0xc0]  ;;  %v5195_v49 = vld [vmem:[%s10864_s3 + $0x18] sm:$0xf0]  ;;  %v625_v4 = vrot.slane %v610_v62, 2 }
  0xaf   :  { %7366 = vtanh.f32 %v332_v5  ;;  %v330_v20 = vadd.f32 0.5, %v329_v14  ;;  %v5227_v14 = vld [vmem:[%s10864_s3 + $0x58] sm:$0xf0]  ;;  %v5198_v59 = vor.u32 %v6944_v48, %v5195_v49  ;;  %v7001_v33 = vld [vmem:[%s10863_s2 + $0xcc] sm:$0xf0] }
  0xb0   :  { %1155 = vmatpush.bf16.msrb.mxu1 %v5238_v60  ;;  %1168 = vmatpush.bf16.msrb.mxu2 %v5242_v0  ;;  %v7000_v40 = vld [vmem:[%s10863_s2 + $0xcc] sm:$0xf]  ;;  %v5395_v48 = vld [vmem:[%s10863_s2 + $0xb0] sm:$0xf0]  ;;  %v5401_v49 = vld [vmem:[%s10863_s2 + $0xa8] sm:$0xf] }
  0xb1   :  { %v303_v21 = vpop.f32.mrf.mxu2  ;;  %v336_v31 = vmul.f32 %v330_v20, %v322_v13  ;;  %v6952_v13 = vld [vmem:[%s10864_s3 + $0x4c] sm:$0xf]  ;;  %v6994_v62 = vld [vmem:[%s10863_s2 + $0x94] sm:$0xf0] }
  0xb2   :  { %v7365_v25 = vpop.eup %7364  ;;  %v316_v26 = vpop.f32.mrf.mxu3  ;;  %1180 = vmatpush.bf16.msrb.mxu3 %v5262_v52  ;;  %v5230_v18 = vor.u32 %v6952_v13, %v5227_v14  ;;  %1143 = vmatpush.bf16.msrb.mxu0 %v5218_v6  ;;  %v5201_v21 = vld [vmem:[%s10864_s3 + $0x20] sm:$0xf] }
  0xb3   :  { %v337_v32 = vmul.f32 %v7365_v25, %v326_v17  ;;  %v345_v17 = vld [vmem:[%s10866_s1 + $0x28] sm:$0xc0]  ;;  %v5202_v26 = vor.u32 %v6949_v23, %v5201_v21  ;;  %v7005_v21 = vld [vmem:[%s10863_s2 + $0xec] sm:$0xf0] }
  0xb4   :  { %1156 = vmatpush.bf16.msrb.mxu1 %v5222_v11  ;;  %1169 = vmatpush.bf16.msrb.mxu2 %v5226_v12 }
  0xb5   :  { %v7367_v41 = vpop.eup %7366  ;;  %v338_v42 = vadd.f32 %v337_v32, %v336_v31  ;;  %v5206_v31 = vor.u32 %v6947_v24, %v5203_v27  ;;  %v5210_v32 = vor.u32 %v6950_v29, %v5209_v28  ;;  %v5427_v24 = vld [vmem:[%s10863_s2 + $0xf0] sm:$0xf0]  ;;  %v7006_v27 = vld [vmem:[%s10863_s2 + $0xf4] sm:$0xf0]  ;;  %v7004_v28 = vld [vmem:[%s10863_s2 + $0xec] sm:$0xf] }
  0xb6   :  { %v334_v47 = vmul.f32 0.5, %v7367_v41  ;;  %1181 = vmatpush.bf16.msrb.mxu3 %v5246_v1  ;;  %1144 = vmatpush.bf16.msrb.mxu0 %v5202_v26  ;;  %v5435_v29 = vld [vmem:[%s10863_s2 + $0xf8] sm:$0xf0] }
  0xb7   :  { %7368 = vtanh.f32 %v338_v42  ;;  %342 = vst [vmem:[#allocation3] sm:$0x3] %v338_v42  ;;  %v5186_v42 = vor.u32 %v6945_v39, %v5185_v35  ;;  %v7002_v39 = vld [vmem:[%s10863_s2 + $0xd4] sm:$0xf0] }
  0xb8   :  { %v335_v53 = vadd.f32 0.5, %v334_v47  ;;  %1157 = vmatpush.bf16.msrb.mxu1 %v5206_v31  ;;  %1170 = vmatpush.bf16.msrb.mxu2 %v5210_v32  ;;  %v6946_v47 = vld [vmem:[%s10864_s3 + $0x14] sm:$0xf0]  ;;  %v5438_v31 = vor.u32 %v7004_v28, %v5435_v29  ;;  %v5409_v32 = vld [vmem:[%s10863_s2 + $0xc0] sm:$0xf] }
  0xb9   :  { %v5194_v55 = vor.u32 %v6946_v47, %v5193_v44  ;;  %v5410_v35 = vor.u32 %v7001_v33, %v5409_v32  ;;  %v5393_v44 = vld [vmem:[%s10863_s2 + $0xa0] sm:$0xf]  ;;  %v650_v29 = vld [vmem:[%s10865_s0 + $0x8] sm:$0xc] }
  0xba   :  { %1182 = vmatpush.bf16.msrb.mxu3 %v5230_v18  ;;  %1145 = vmatpush.bf16.msrb.mxu0 %v5186_v42 }
  0xbc   :  { %1158 = vmatpush.bf16.msrb.mxu1 %v5190_v46  ;;  %1171 = vmatpush.bf16.msrb.mxu2 %v5194_v55  ;;  %v6995_v46 = vld [vmem:[%s10863_s2 + $0xa4] sm:$0xf] }
  0xbd   :  { %v7369_v5 = vpop.eup %7368 }
  0xbe   :  { %v340_v10 = vmul.f32 %v7369_v5, %v335_v53  ;;  %1183 = vmatpush.bf16.msrb.mxu3 %v5214_v38 }
  0xc0   :  { %v551_v16 = vpop.f32.mrf.mxu0  ;;  %341 = vst [vmem:[#allocation2] sm:$0x3] %v340_v10 }
  0xc1   :  { %v598_v19 = vrot.slane %v551_v16, 2  ;;  %v564_v20 = vpop.f32.mrf.mxu1  ;;  %343 = vst [vmem:[%s10867_s4] sm:$0x3] %v340_v10 }
  0xc2   :  { %v599_v22 = vrot.slane %v564_v20, 2  ;;  %1184 = vmatpush.bf16.msrb.mxu3 %v5198_v59  ;;  %v5425_v20 = vld [vmem:[%s10863_s2 + $0xe0] sm:$0xf] }
  0xc3   :  { %v606_v25 = vadd.f32 %v598_v19, %v344_v15  ;;  %v5426_v23 = vor.u32 %v7005_v21, %v5425_v20  ;;  %v5347_v20 = vld [vmem:[%s10863_s2 + $0x50] sm:$0xf0]  ;;  %v5353_v21 = vld [vmem:[%s10863_s2 + $0x48] sm:$0xf] }
  0xc4   :  { %v607_v30 = vadd.f32 %v599_v22, %v345_v17  ;;  %v7003_v22 = vld [vmem:[%s10863_s2 + $0xe4] sm:$0xf] }
  0xc5   :  { %v611_v36 = vmul.f32 0.5, %v606_v25  ;;  %v5433_v25 = vld [vmem:[%s10863_s2 + $0xe8] sm:$0xf]  ;;  %v5430_v26 = vor.u32 %v7003_v22, %v5427_v24  ;;  %v6986_v22 = vld [vmem:[%s10863_s2 + $0x54] sm:$0xf0] }
  0xc6   :  { %v615_v41 = vmul.f32 0.5, %v607_v30  ;;  %v5434_v30 = vor.u32 %v7006_v27, %v5433_v25  ;;  %v5354_v24 = vor.u32 %v6986_v22, %v5353_v21  ;;  %v6984_v25 = vld [vmem:[%s10863_s2 + $0x4c] sm:$0xf]  ;;  %v649_v27 = vld [vmem:[%s10865_s0] sm:$0xc] }
  0xc7   :  { %7370 = vtanh.f32 %v611_v36  ;;  %v577_v45 = vpop.f32.mrf.mxu2  ;;  %v653_v54 = vld [vmem:[#allocation2] sm:$0x3]  ;;  %v5411_v36 = vld [vmem:[%s10863_s2 + $0xd0] sm:$0xf0] }
  0xc8   :  { %7372 = vtanh.f32 %v615_v41  ;;  %v600_v50 = vrot.slane %v577_v45, 2  ;;  %v590_v52 = vpop.f32.mrf.mxu3  ;;  %v553_v53 = vpop.f32.mrf.mxu0  ;;  %v654_v58 = vpack.c.bf16 %v653_v54, %v653_v54  ;;  %v5414_v38 = vor.u32 %v6999_v34, %v5411_v36  ;;  %v5419_v41 = vld [vmem:[%s10863_s2 + $0xd8] sm:$0xf0]  ;;  %v6997_v45 = vld [vmem:[%s10863_s2 + $0xac] sm:$0xf0] }
  0xc9   :  { %v601_v56 = vrot.slane %v590_v52, 2  ;;  %v566_v57 = vpop.f32.mrf.mxu1  ;;  %v5422_v43 = vor.u32 %v7000_v40, %v5419_v41  ;;  %v5394_v47 = vor.u32 %v6997_v45, %v5393_v44  ;;  %v6996_v53 = vld [vmem:[%s10863_s2 + $0xac] sm:$0xf]  ;;  %v5403_v54 = vld [vmem:[%s10863_s2 + $0xb8] sm:$0xf0] }
  0xca   :  { %v608_v60 = vadd.f32 %v600_v50, %v346_v37  ;;  %855 = vmatmul.bf16.vlgmr.msra.gmra.mxu0 %v654_v58  ;;  %868 = vmatmul.bf16.vlgmr.msra.gmra.mxu1 %v654_v58  ;;  %v5417_v37 = vld [vmem:[%s10863_s2 + $0xc8] sm:$0xf]  ;;  %v6998_v50 = vld [vmem:[%s10863_s2 + $0xb4] sm:$0xf0]  ;;  %v5406_v55 = vor.u32 %v6996_v53, %v5403_v54  ;;  %v6993_v57 = vld [vmem:[%s10863_s2 + $0x8c] sm:$0xf0] }
  0xcb   :  { %v609_v61 = vadd.f32 %v601_v56, %v347_v51  ;;  %881 = vmatmul.bf16.vlgmr.msra.gmra.mxu2 %v654_v58  ;;  %894 = vmatmul.bf16.vlgmr.msra.gmra.mxu3 %v654_v58  ;;  %v5418_v42 = vor.u32 %v7002_v39, %v5417_v37  ;;  %v5398_v51 = vor.u32 %v6995_v46, %v5395_v48  ;;  %v5377_v56 = vld [vmem:[%s10863_s2 + $0x80] sm:$0xf]  ;;  %v6991_v58 = vld [vmem:[%s10863_s2 + $0x84] sm:$0xf]  ;;  %v5331_v37 = vld [vmem:[%s10863_s2 + $0x30] sm:$0xf0] }
  0xcc   :  { %7374 = vtanh.f32 %v608_v60  ;;  %1443 = vmatpush.bf16.msra.mxu0 %v5426_v23  ;;  %1456 = vmatpush.bf16.msra.mxu1 %v5430_v26  ;;  %v5402_v52 = vor.u32 %v6998_v50, %v5401_v49  ;;  %v5378_v59 = vor.u32 %v6993_v57, %v5377_v56  ;;  %v5379_v60 = vld [vmem:[%s10863_s2 + $0x90] sm:$0xf0]  ;;  %v5355_v26 = vld [vmem:[%s10863_s2 + $0x58] sm:$0xf0]  ;;  %v5329_v34 = vld [vmem:[%s10863_s2 + $0x20] sm:$0xf] }
  0xcd   :  { %v7371_v63 = vpop.eup %7370  ;;  %v620_v0 = vmul.f32 0.5, %v609_v61  ;;  %1469 = vmatpush.bf16.msra.mxu2 %v5434_v30  ;;  %1482 = vmatpush.bf16.msra.mxu3 %v5438_v31  ;;  %v5385_v61 = vld [vmem:[%s10863_s2 + $0x88] sm:$0xf]  ;;  %v5358_v31 = vor.u32 %v6984_v25, %v5355_v26  ;;  %v6979_v36 = vld [vmem:[%s10863_s2 + $0x24] sm:$0xf] }
  0xce   :  { %v7373_v1 = vpop.eup %7372  ;;  %v613_v2 = vmul.f32 0.5, %v7371_v63  ;;  %v5382_v63 = vor.u32 %v6991_v58, %v5379_v60  ;;  %v5334_v41 = vor.u32 %v6979_v36, %v5331_v37  ;;  %v6980_v45 = vld [vmem:[%s10863_s2 + $0x2c] sm:$0xf]  ;;  %v5339_v46 = vld [vmem:[%s10863_s2 + $0x38] sm:$0xf0] }
  0xcf   :  { %v617_v3 = vmul.f32 0.5, %v7373_v1  ;;  %7376 = vtanh.f32 %v620_v0  ;;  %v579_v5 = vpop.f32.mrf.mxu2  ;;  %v5386_v0 = vor.u32 %v6994_v62, %v5385_v61  ;;  %v6992_v1 = vld [vmem:[%s10863_s2 + $0x8c] sm:$0xf]  ;;  %v651_v49 = vld [vmem:[%s10865_s0 + $0x10] sm:$0xc] }
  0xd0   :  { %v614_v6 = vadd.f32 0.5, %v613_v2  ;;  %v592_v7 = vpop.f32.mrf.mxu3  ;;  %1444 = vmatpush.bf16.msra.mxu0 %v5410_v35  ;;  %1457 = vmatpush.bf16.msra.mxu1 %v5414_v38  ;;  %v5387_v2 = vld [vmem:[%s10863_s2 + $0x98] sm:$0xf0]  ;;  %v6989_v5 = vld [vmem:[%s10863_s2 + $0x6c] sm:$0xf0] }
  0xd1   :  { %v618_v8 = vadd.f32 0.5, %v617_v3  ;;  %1470 = vmatpush.bf16.msra.mxu2 %v5418_v42  ;;  %1483 = vmatpush.bf16.msra.mxu3 %v5422_v43  ;;  %v5390_v3 = vor.u32 %v6992_v1, %v5387_v2  ;;  %v6981_v35 = vld [vmem:[%s10863_s2 + $0x2c] sm:$0xf0]  ;;  %v5337_v42 = vld [vmem:[%s10863_s2 + $0x28] sm:$0xf] }
  0xd2   :  { %v7375_v9 = vpop.eup %7374  ;;  %v5330_v40 = vor.u32 %v6981_v35, %v5329_v34  ;;  %v6982_v43 = vld [vmem:[%s10863_s2 + $0x34] sm:$0xf0]  ;;  %v6977_v53 = vld [vmem:[%s10863_s2 + $0xc] sm:$0xf0]  ;;  %v5315_v56 = vld [vmem:[%s10863_s2 + $0x10] sm:$0xf0] }
  0xd3   :  { %v627_v10 = vmul.f32 %v625_v4, %v618_v8  ;;  %v628_v11 = vmul.f32 %v7375_v9, %v614_v6  ;;  %v5361_v4 = vld [vmem:[%s10863_s2 + $0x60] sm:$0xf]  ;;  %v6987_v6 = vld [vmem:[%s10863_s2 + $0x64] sm:$0xf]  ;;  %v5363_v8 = vld [vmem:[%s10863_s2 + $0x70] sm:$0xf0]  ;;  %v5338_v44 = vor.u32 %v6982_v43, %v5337_v42 }
  0xd4   :  { %1445 = vmatpush.bf16.msra.mxu0 %v5394_v47  ;;  %1458 = vmatpush.bf16.msra.mxu1 %v5398_v51  ;;  %v5362_v7 = vor.u32 %v6989_v5, %v5361_v4  ;;  %v5369_v9 = vld [vmem:[%s10863_s2 + $0x68] sm:$0xf]  ;;  %v652_v50 = vld [vmem:[%s10865_s0 + $0x18] sm:$0xc]  ;;  %v5342_v51 = vor.u32 %v6980_v45, %v5339_v46  ;;  %v6976_v62 = vld [vmem:[%s10863_s2 + $0xc] sm:$0xf] }
  0xd5   :  { %v7377_v12 = vpop.eup %7376  ;;  %v629_v13 = vadd.f32 %v628_v11, %v627_v10  ;;  %1471 = vmatpush.bf16.msra.mxu2 %v5402_v52  ;;  %1484 = vmatpush.bf16.msra.mxu3 %v5406_v55  ;;  %v6990_v10 = vld [vmem:[%s10863_s2 + $0x74] sm:$0xf0]  ;;  %v5366_v11 = vor.u32 %v6987_v6, %v5363_v8  ;;  %v5313_v52 = vld [vmem:[%s10863_s2] sm:$0xf]  ;;  %v6975_v55 = vld [vmem:[%s10863_s2 + $0x4] sm:$0xf] }
  0xd6   :  { %v622_v14 = vmul.f32 0.5, %v7377_v12  ;;  %v5370_v12 = vor.u32 %v6990_v10, %v5369_v9  ;;  %v5314_v54 = vor.u32 %v6977_v53, %v5313_v52  ;;  %v5321_v57 = vld [vmem:[%s10863_s2 + $0x8] sm:$0xf]  ;;  %v5318_v60 = vor.u32 %v6975_v55, %v5315_v56  ;;  %v6978_v61 = vld [vmem:[%s10863_s2 + $0x14] sm:$0xf0] }
  0xd7   :  { %7378 = vtanh.f32 %v629_v13  ;;  %647 = vst [vmem:[#allocation5 - $0x6] sm:$0xc0] %v629_v13  ;;  %v6988_v13 = vld [vmem:[%s10863_s2 + $0x6c] sm:$0xf]  ;;  %v5322_v4 = vor.u32 %v6978_v61, %v5321_v57  ;;  %v5553_v5 = vld [vmem:[%s10864_s3 + $0xe0] sm:$0xf] }
  0xd8   :  { %v623_v15 = vadd.f32 0.5, %v622_v14  ;;  %1446 = vmatpush.bf16.msra.mxu0 %v5378_v59  ;;  %1459 = vmatpush.bf16.msra.mxu1 %v5382_v63  ;;  %v5371_v14 = vld [vmem:[%s10863_s2 + $0x78] sm:$0xf0]  ;;  %v7037_v6 = vld [vmem:[%s10864_s3 + $0xec] sm:$0xf0] }
  0xd9   :  { %1472 = vmatpush.bf16.msra.mxu2 %v5386_v0  ;;  %1485 = vmatpush.bf16.msra.mxu3 %v5390_v3  ;;  %v5323_v63 = vld [vmem:[%s10863_s2 + $0x18] sm:$0xf0]  ;;  %v5554_v8 = vor.u32 %v7037_v6, %v5553_v5  ;;  %v7035_v9 = vld [vmem:[%s10864_s3 + $0xe4] sm:$0xf]  ;;  %v5537_v22 = vld [vmem:[%s10864_s3 + $0xc0] sm:$0xf] }
  0xda   :  { %v7031_v26 = vld [vmem:[%s10864_s3 + $0xc4] sm:$0xf]  ;;  %v7029_v42 = vld [vmem:[%s10864_s3 + $0xac] sm:$0xf0]  ;;  %v7028_v52 = vld [vmem:[%s10864_s3 + $0xac] sm:$0xf] }
  0xdb   :  { %v7027_v46 = vld [vmem:[%s10864_s3 + $0xa4] sm:$0xf]  ;;  %v5531_v56 = vld [vmem:[%s10864_s3 + $0xb8] sm:$0xf0]  ;;  %v7024_v5 = vld [vmem:[%s10864_s3 + $0x8c] sm:$0xf] }
  0xdc   :  { %1447 = vmatpush.bf16.msra.mxu0 %v5362_v7  ;;  %1460 = vmatpush.bf16.msra.mxu1 %v5366_v11  ;;  %v5326_v7 = vor.u32 %v6976_v62, %v5323_v63  ;;  %v7023_v61 = vld [vmem:[%s10864_s3 + $0x84] sm:$0xf]  ;;  %v5515_v6 = vld [vmem:[%s10864_s3 + $0x98] sm:$0xf0] }
  0xdd   :  { %v7379_v16 = vpop.eup %7378  ;;  %1473 = vmatpush.bf16.msra.mxu2 %v5370_v12  ;;  %v5555_v12 = vld [vmem:[%s10864_s3 + $0xf0] sm:$0xf0] }
  0xde   :  { %v631_v17 = vmul.f32 %v7379_v16, %v623_v15  ;;  %v5374_v15 = vor.u32 %v6988_v13, %v5371_v14  ;;  %v5345_v16 = vld [vmem:[%s10863_s2 + $0x40] sm:$0xf]  ;;  %v5561_v13 = vld [vmem:[%s10864_s3 + $0xe8] sm:$0xf]  ;;  %v7038_v14 = vld [vmem:[%s10864_s3 + $0xf4] sm:$0xf0] }
  0xe0   :  { %641 = vst [vmem:[#allocation4 - $0x6] sm:$0xc0] %v631_v17  ;;  %1486 = vmatpush.bf16.msra.mxu3 %v5374_v15  ;;  %v5558_v15 = vor.u32 %v7035_v9, %v5555_v12  ;;  %v5489_v9 = vld [vmem:[%s10864_s3 + $0x60] sm:$0xf] }
  0xe1   :  { %648 = vst [vmem:[%s10868_s5 + $0x8] sm:$0xc0] %v631_v17  ;;  %v6985_v17 = vld [vmem:[%s10863_s2 + $0x4c] sm:$0xf0]  ;;  %1474 = vmatpush.bf16.msra.mxu2 %v5354_v24 }
  0xe4   :  { %1487 = vmatpush.bf16.msra.mxu3 %v5358_v31 }
  0xe5   :  { %1475 = vmatpush.bf16.msra.mxu2 %v5338_v44 }
  0xe7   :  { %v944_v18 = vld [vmem:[#allocation4] sm:$0x3] }
  0xe8   :  { %v945_v19 = vpack.c.bf16 %v944_v18, %v944_v18  ;;  %v6983_v18 = vld [vmem:[%s10863_s2 + $0x44] sm:$0xf]  ;;  %1488 = vmatpush.bf16.msra.mxu3 %v5342_v51  ;;  %v7030_v51 = vld [vmem:[%s10864_s3 + $0xb4] sm:$0xf0] }
  0xe9   :  { %v5350_v23 = vor.u32 %v6983_v18, %v5347_v20  ;;  %1476 = vmatpush.bf16.msra.mxu2 %v5322_v4  ;;  %v5563_v18 = vld [vmem:[%s10864_s3 + $0xf8] sm:$0xf0]  ;;  %v7026_v4 = vld [vmem:[%s10864_s3 + $0x94] sm:$0xf0] }
  0xea   :  { %1146 = vmatmul.bf16.vlgmr.msrb.gmra.mxu0 %v945_v19  ;;  %1159 = vmatmul.bf16.vlgmr.msrb.gmra.mxu1 %v945_v19 }
  0xeb   :  { %1172 = vmatmul.bf16.vlgmr.msrb.gmra.mxu2 %v945_v19  ;;  %1185 = vmatmul.bf16.vlgmr.msrb.gmra.mxu3 %v945_v19  ;;  %v5346_v19 = vor.u32 %v6985_v17, %v5345_v16  ;;  %v5562_v16 = vor.u32 %v7038_v14, %v5561_v13  ;;  %v7036_v17 = vld [vmem:[%s10864_s3 + $0xec] sm:$0xf]  ;;  %v5491_v13 = vld [vmem:[%s10864_s3 + $0x70] sm:$0xf0]  ;;  %v5497_v14 = vld [vmem:[%s10864_s3 + $0x68] sm:$0xf] }
  0xec   :  { %1461 = vmatpush.bf16.msra.mxu1 %v5350_v23  ;;  %1489 = vmatpush.bf16.msra.mxu3 %v5326_v7  ;;  %v5566_v21 = vor.u32 %v7036_v17, %v5563_v18  ;;  %v7033_v23 = vld [vmem:[%s10864_s3 + $0xcc] sm:$0xf0] }
  0xed   :  { %1448 = vmatpush.bf16.msra.mxu0 %v5346_v19  ;;  %v915_v19 = vld [vmem:[#allocation3] sm:$0x3]  ;;  %1760 = vmatpush.bf16.msrb.mxu2 %v5562_v16  ;;  %v5538_v25 = vor.u32 %v7033_v23, %v5537_v22  ;;  %v7017_v23 = vld [vmem:[%s10864_s3 + $0x4c] sm:$0xf0] }
  0xee   :  { %v930_v44 = vrot.slane %v915_v19, 6  ;;  %v7020_v19 = vld [vmem:[%s10864_s3 + $0x6c] sm:$0xf]  ;;  %v5473_v22 = vld [vmem:[%s10864_s3 + $0x40] sm:$0xf] }
  0xf0   :  { %1462 = vmatpush.bf16.msra.mxu1 %v5334_v41  ;;  %1773 = vmatpush.bf16.msrb.mxu3 %v5566_v21  ;;  %v5521_v41 = vld [vmem:[%s10864_s3 + $0xa0] sm:$0xf] }
  0xf1   :  { %1449 = vmatpush.bf16.msra.mxu0 %v5330_v40  ;;  %v5522_v45 = vor.u32 %v7029_v42, %v5521_v41  ;;  %v5457_v42 = vld [vmem:[%s10864_s3 + $0x20] sm:$0xf] }
  0xf4   :  { %1463 = vmatpush.bf16.msra.mxu1 %v5318_v60  ;;  %v7025_v60 = vld [vmem:[%s10864_s3 + $0x8c] sm:$0xf0] }
  0xf5   :  { %1450 = vmatpush.bf16.msra.mxu0 %v5314_v54 }
  0xf8   :  { %1747 = vmatpush.bf16.msrb.mxu1 %v5558_v15  ;;  %v7022_v15 = vld [vmem:[%s10864_s3 + $0x74] sm:$0xf0] }
  0xf9   :  { %1734 = vmatpush.bf16.msrb.mxu0 %v5554_v8  ;;  %v5518_v8 = vor.u32 %v7024_v5, %v5515_v6  ;;  %v5498_v18 = vor.u32 %v7022_v15, %v5497_v14 }
  0xfd   :  { %1735 = vmatpush.bf16.msrb.mxu0 %v5538_v25 }
 0x101   :  { %1736 = vmatpush.bf16.msrb.mxu0 %v5522_v45 }
 0x147   :  { %v856_v28 = vpop.f32.mrf.mxu0  ;;  %v869_v30 = vpop.f32.mrf.mxu1 }
 0x148   :  { %v903_v32 = vrot.slane %v856_v28, 6  ;;  %v904_v33 = vrot.slane %v869_v30, 6  ;;  %v5545_v28 = vld [vmem:[%s10864_s3 + $0xc8] sm:$0xf] }
 0x14a   :  { %v911_v38 = vadd.f32 %v903_v32, %v649_v27  ;;  %v912_v39 = vadd.f32 %v904_v33, %v650_v29  ;;  %v5539_v27 = vld [vmem:[%s10864_s3 + $0xd0] sm:$0xf0]  ;;  %v7034_v32 = vld [vmem:[%s10864_s3 + $0xd4] sm:$0xf0]  ;;  %v7032_v33 = vld [vmem:[%s10864_s3 + $0xcc] sm:$0xf] }
 0x14b   :  { %v5542_v31 = vor.u32 %v7031_v26, %v5539_v27  ;;  %v5546_v37 = vor.u32 %v7034_v32, %v5545_v28  ;;  %v5474_v26 = vor.u32 %v7017_v23, %v5473_v22  ;;  %v5475_v27 = vld [vmem:[%s10864_s3 + $0x50] sm:$0xf0]  ;;  %v5481_v28 = vld [vmem:[%s10864_s3 + $0x48] sm:$0xf]  ;;  %v1206_v22 = vld [vmem:[#allocation5] sm:$0x3] }
 0x14c   :  { %v916_v47 = vmul.f32 0.5, %v911_v38  ;;  %v920_v48 = vmul.f32 0.5, %v912_v39  ;;  %v5547_v38 = vld [vmem:[%s10864_s3 + $0xd8] sm:$0xf0] }
 0x14d   :  { %v5550_v40 = vor.u32 %v7032_v33, %v5547_v38  ;;  %1748 = vmatpush.bf16.msrb.mxu1 %v5542_v31  ;;  %1761 = vmatpush.bf16.msrb.mxu2 %v5546_v37  ;;  %v7016_v33 = vld [vmem:[%s10864_s3 + $0x4c] sm:$0xf] }
 0x14e   :  { %7380 = vtanh.f32 %v916_v47  ;;  %v882_v58 = vpop.f32.mrf.mxu2  ;;  %v895_v59 = vpop.f32.mrf.mxu3  ;;  %v5523_v47 = vld [vmem:[%s10864_s3 + $0xb0] sm:$0xf0]  ;;  %v941_v37 = vld [vmem:[%s10866_s1 + $0x28] sm:$0x30] }
 0x14f   :  { %7382 = vtanh.f32 %v920_v48  ;;  %v905_v0 = vrot.slane %v882_v58, 6  ;;  %v906_v1 = vrot.slane %v895_v59, 6  ;;  %v858_v2 = vpop.f32.mrf.mxu0  ;;  %v871_v3 = vpop.f32.mrf.mxu1  ;;  %1774 = vmatpush.bf16.msrb.mxu3 %v5550_v40  ;;  %v5534_v58 = vor.u32 %v7028_v52, %v5531_v56  ;;  %v5505_v59 = vld [vmem:[%s10864_s3 + $0x80] sm:$0xf] }
 0x150   :  { %v5513_v2 = vld [vmem:[%s10864_s3 + $0x88] sm:$0xf] }
 0x151   :  { %v913_v10 = vadd.f32 %v905_v0, %v651_v49  ;;  %v914_v11 = vadd.f32 %v906_v1, %v652_v50  ;;  %v5526_v49 = vor.u32 %v7027_v46, %v5523_v47  ;;  %v5529_v50 = vld [vmem:[%s10864_s3 + $0xa8] sm:$0xf]  ;;  %v5506_v0 = vor.u32 %v7025_v60, %v5505_v59  ;;  %v5507_v1 = vld [vmem:[%s10864_s3 + $0x90] sm:$0xf0]  ;;  %v7009_v60 = vld [vmem:[%s10864_s3 + $0xc] sm:$0xf0] }
 0x152   :  { %v5530_v55 = vor.u32 %v7030_v51, %v5529_v50  ;;  %v5510_v3 = vor.u32 %v7023_v61, %v5507_v1  ;;  %v5514_v7 = vor.u32 %v7026_v4, %v5513_v2  ;;  %v7014_v50 = vld [vmem:[%s10864_s3 + $0x34] sm:$0xf0]  ;;  %v7007_v61 = vld [vmem:[%s10864_s3 + $0x4] sm:$0xf] }
 0x153   :  { %7384 = vtanh.f32 %v913_v10  ;;  %v925_v20 = vmul.f32 0.5, %v914_v11  ;;  %1749 = vmatpush.bf16.msrb.mxu1 %v5526_v49  ;;  %1775 = vmatpush.bf16.msrb.mxu3 %v5534_v58  ;;  %v7021_v10 = vld [vmem:[%s10864_s3 + $0x6c] sm:$0xf0]  ;;  %v7019_v11 = vld [vmem:[%s10864_s3 + $0x64] sm:$0xf] }
 0x154   :  { %v7381_v24 = vpop.eup %7380  ;;  %1762 = vmatpush.bf16.msrb.mxu2 %v5530_v55  ;;  %1737 = vmatpush.bf16.msrb.mxu0 %v5506_v0  ;;  %v5490_v12 = vor.u32 %v7021_v10, %v5489_v9  ;;  %v5494_v17 = vor.u32 %v7019_v11, %v5491_v13  ;;  %v5465_v49 = vld [vmem:[%s10864_s3 + $0x28] sm:$0xf]  ;;  %v5441_v55 = vld [vmem:[%s10864_s3] sm:$0xf]  ;;  %v942_v58 = vld [vmem:[%s10866_s1 + $0x30] sm:$0x30] }
 0x155   :  { %v7383_v29 = vpop.eup %7382  ;;  %v918_v30 = vmul.f32 0.5, %v7381_v24  ;;  %7386 = vtanh.f32 %v925_v20  ;;  %v5499_v20 = vld [vmem:[%s10864_s3 + $0x78] sm:$0xf0]  ;;  %v7015_v24 = vld [vmem:[%s10864_s3 + $0x44] sm:$0xf]  ;;  %v5466_v52 = vor.u32 %v7014_v50, %v5465_v49 }
 0x156   :  { %v922_v34 = vmul.f32 0.5, %v7383_v29  ;;  %v884_v35 = vpop.f32.mrf.mxu2  ;;  %v897_v36 = vpop.f32.mrf.mxu3  ;;  %v5502_v21 = vor.u32 %v7020_v19, %v5499_v20  ;;  %v7018_v29 = vld [vmem:[%s10864_s3 + $0x54] sm:$0xf0]  ;;  %v5478_v31 = vor.u32 %v7015_v24, %v5475_v27  ;;  %v5449_v0 = vld [vmem:[%s10864_s3 + $0x8] sm:$0xf] }
 0x157   :  { %v919_v39 = vadd.f32 0.5, %v918_v30  ;;  %1750 = vmatpush.bf16.msrb.mxu1 %v5510_v3  ;;  %1776 = vmatpush.bf16.msrb.mxu3 %v5518_v8  ;;  %v5482_v32 = vor.u32 %v7018_v29, %v5481_v28  ;;  %v940_v35 = vld [vmem:[%s10866_s1 + $0x20] sm:$0x30]  ;;  %v7010_v1 = vld [vmem:[%s10864_s3 + $0x14] sm:$0xf0]  ;;  %v1221_v28 = vrot.slane %v1206_v22, 4 }
 0x158   :  { %v923_v43 = vadd.f32 0.5, %v922_v34  ;;  %1763 = vmatpush.bf16.msrb.mxu2 %v5514_v7  ;;  %1738 = vmatpush.bf16.msrb.mxu0 %v5490_v12  ;;  %v5483_v34 = vld [vmem:[%s10864_s3 + $0x58] sm:$0xf0]  ;;  %v5450_v6 = vor.u32 %v7010_v1, %v5449_v0  ;;  %v7008_v7 = vld [vmem:[%s10864_s3 + $0xc] sm:$0xf] }
 0x159   :  { %v7385_v48 = vpop.eup %7384  ;;  %v943_v3 = vld [vmem:[%s10866_s1 + $0x38] sm:$0x30]  ;;  %v5649_v0 = vld [vmem:[%s10863_s2 + $0xa0] sm:$0xf]  ;;  %v7061_v1 = vld [vmem:[%s10863_s2 + $0xac] sm:$0xf0] }
 0x15a   :  { %v932_v53 = vmul.f32 %v930_v44, %v923_v43  ;;  %v933_v54 = vmul.f32 %v7385_v48, %v919_v39  ;;  %v5486_v39 = vor.u32 %v7016_v33, %v5483_v34  ;;  %v7013_v43 = vld [vmem:[%s10864_s3 + $0x2c] sm:$0xf0]  ;;  %v7011_v44 = vld [vmem:[%s10864_s3 + $0x24] sm:$0xf]  ;;  %v5459_v48 = vld [vmem:[%s10864_s3 + $0x30] sm:$0xf0] }
 0x15b   :  { %v7387_v57 = vpop.eup %7386  ;;  %1751 = vmatpush.bf16.msrb.mxu1 %v5494_v17  ;;  %1777 = vmatpush.bf16.msrb.mxu3 %v5502_v21  ;;  %v5458_v47 = vor.u32 %v7013_v43, %v5457_v42  ;;  %v5462_v51 = vor.u32 %v7011_v44, %v5459_v48  ;;  %v5451_v8 = vld [vmem:[%s10864_s3 + $0x18] sm:$0xf0]  ;;  %v7067_v42 = vld [vmem:[%s10863_s2 + $0xe4] sm:$0xf]  ;;  %v5683_v43 = vld [vmem:[%s10863_s2 + $0xf0] sm:$0xf0] }
 0x15c   :  { %v934_v62 = vadd.f32 %v933_v54, %v932_v53  ;;  %v927_v63 = vmul.f32 0.5, %v7387_v57  ;;  %1764 = vmatpush.bf16.msrb.mxu2 %v5498_v18  ;;  %1739 = vmatpush.bf16.msrb.mxu0 %v5474_v26  ;;  %v7012_v53 = vld [vmem:[%s10864_s3 + $0x2c] sm:$0xf]  ;;  %v5467_v54 = vld [vmem:[%s10864_s3 + $0x38] sm:$0xf0]  ;;  %v5454_v15 = vor.u32 %v7008_v7, %v5451_v8 }
 0x15d   :  { %v5470_v59 = vor.u32 %v7012_v53, %v5467_v54  ;;  %v7068_v48 = vld [vmem:[%s10863_s2 + $0xec] sm:$0xf]  ;;  %v5691_v50 = vld [vmem:[%s10863_s2 + $0xf8] sm:$0xf0]  ;;  %v7065_v53 = vld [vmem:[%s10863_s2 + $0xcc] sm:$0xf0] }
 0x15e   :  { %7388 = vtanh.f32 %v934_v62  ;;  %938 = vst [vmem:[#allocation3 - $0x2] sm:$0xc] %v934_v62  ;;  %v928_v16 = vadd.f32 0.5, %v927_v63  ;;  %v5442_v62 = vor.u32 %v7009_v60, %v5441_v55  ;;  %v5443_v63 = vld [vmem:[%s10864_s3 + $0x10] sm:$0xf0] }
 0x15f   :  { %1752 = vmatpush.bf16.msrb.mxu1 %v5478_v31  ;;  %1778 = vmatpush.bf16.msrb.mxu3 %v5486_v39  ;;  %v5446_v5 = vor.u32 %v7007_v61, %v5443_v63  ;;  %v7063_v54 = vld [vmem:[%s10863_s2 + $0xc4] sm:$0xf]  ;;  %v7064_v61 = vld [vmem:[%s10863_s2 + $0xcc] sm:$0xf]  ;;  %v5643_v22 = vld [vmem:[%s10863_s2 + $0x98] sm:$0xf0] }
 0x160   :  { %1765 = vmatpush.bf16.msrb.mxu2 %v5482_v32  ;;  %1740 = vmatpush.bf16.msrb.mxu0 %v5458_v47  ;;  %v7070_v47 = vld [vmem:[%s10863_s2 + $0xf4] sm:$0xf0] }
 0x163   :  { %1753 = vmatpush.bf16.msrb.mxu1 %v5462_v51  ;;  %1779 = vmatpush.bf16.msrb.mxu3 %v5470_v59  ;;  %v5694_v51 = vor.u32 %v7068_v48, %v5691_v50 }
 0x164   :  { %v7389_v25 = vpop.eup %7388  ;;  %1766 = vmatpush.bf16.msrb.mxu2 %v5466_v52  ;;  %1741 = vmatpush.bf16.msrb.mxu0 %v5442_v62  ;;  %v5665_v52 = vld [vmem:[%s10863_s2 + $0xc0] sm:$0xf]  ;;  %v5675_v62 = vld [vmem:[%s10863_s2 + $0xd8] sm:$0xf0] }
 0x165   :  { %v936_v30 = vmul.f32 %v7389_v25, %v928_v16  ;;  %v5666_v55 = vor.u32 %v7065_v53, %v5665_v52  ;;  %v5678_v63 = vor.u32 %v7064_v61, %v5675_v62  ;;  %v5593_v62 = vld [vmem:[%s10863_s2 + $0x28] sm:$0xf] }
 0x167   :  { %v1147_v36 = vpop.f32.mrf.mxu0  ;;  %v1160_v38 = vpop.f32.mrf.mxu1  ;;  %937 = vst [vmem:[#allocation2 - $0x2] sm:$0xc] %v936_v30  ;;  %1754 = vmatpush.bf16.msrb.mxu1 %v5446_v5  ;;  %1780 = vmatpush.bf16.msrb.mxu3 %v5454_v15  ;;  %v5657_v5 = vld [vmem:[%s10863_s2 + $0xa8] sm:$0xf] }
 0x168   :  { %v1194_v40 = vrot.slane %v1147_v36, 4  ;;  %v1195_v41 = vrot.slane %v1160_v38, 4  ;;  %939 = vst [vmem:[%s10867_s4] sm:$0xc] %v936_v30  ;;  %1767 = vmatpush.bf16.msrb.mxu2 %v5450_v6  ;;  %v7062_v6 = vld [vmem:[%s10863_s2 + $0xb4] sm:$0xf0] }
 0x169   :  { %v5658_v8 = vor.u32 %v7062_v6, %v5657_v5  ;;  %v1247_v5 = vld [vmem:[%s10865_s0 + $0x10] sm:$0x30]  ;;  %v1248_v6 = vld [vmem:[%s10865_s0 + $0x18] sm:$0x30] }
 0x16a   :  { %v1202_v45 = vadd.f32 %v1194_v40, %v940_v35  ;;  %v1203_v46 = vadd.f32 %v1195_v41, %v941_v37  ;;  %v5681_v40 = vld [vmem:[%s10863_s2 + $0xe0] sm:$0xf]  ;;  %v7069_v41 = vld [vmem:[%s10863_s2 + $0xec] sm:$0xf0] }
 0x16b   :  { %v5682_v44 = vor.u32 %v7069_v41, %v5681_v40  ;;  %v5603_v40 = vld [vmem:[%s10863_s2 + $0x50] sm:$0xf0]  ;;  %v5609_v41 = vld [vmem:[%s10863_s2 + $0x48] sm:$0xf] }
 0x16c   :  { %v1207_v56 = vmul.f32 0.5, %v1202_v45  ;;  %v1211_v57 = vmul.f32 0.5, %v1203_v46  ;;  %v5686_v45 = vor.u32 %v7067_v42, %v5683_v43  ;;  %v5689_v46 = vld [vmem:[%s10863_s2 + $0xe8] sm:$0xf]  ;;  %v7050_v42 = vld [vmem:[%s10863_s2 + $0x54] sm:$0xf0] }
 0x16d   :  { %v5690_v49 = vor.u32 %v7070_v47, %v5689_v46  ;;  %v5611_v46 = vld [vmem:[%s10863_s2 + $0x58] sm:$0xf0]  ;;  %v1245_v47 = vld [vmem:[%s10865_s0] sm:$0x30] }
 0x16e   :  { %7390 = vtanh.f32 %v1207_v56  ;;  %v1173_v2 = vpop.f32.mrf.mxu2  ;;  %v1186_v4 = vpop.f32.mrf.mxu3  ;;  %v1249_v13 = vld [vmem:[#allocation2] sm:$0x3]  ;;  %v5667_v56 = vld [vmem:[%s10863_s2 + $0xd0] sm:$0xf0] }
 0x16f   :  { %7392 = vtanh.f32 %v1211_v57  ;;  %v1196_v9 = vrot.slane %v1173_v2, 4  ;;  %v1197_v10 = vrot.slane %v1186_v4, 4  ;;  %v1149_v11 = vpop.f32.mrf.mxu0  ;;  %v1162_v12 = vpop.f32.mrf.mxu1  ;;  %v1250_v14 = vpack.c.bf16 %v1249_v13, %v1249_v13  ;;  %v5673_v57 = vld [vmem:[%s10863_s2 + $0xc8] sm:$0xf]  ;;  %v7059_v2 = vld [vmem:[%s10863_s2 + $0xa4] sm:$0xf] }
 0x170   :  { %v5670_v59 = vor.u32 %v7063_v54, %v5667_v56  ;;  %v5651_v4 = vld [vmem:[%s10863_s2 + $0xb0] sm:$0xf0]  ;;  %v5633_v12 = vld [vmem:[%s10863_s2 + $0x80] sm:$0xf]  ;;  %v7057_v13 = vld [vmem:[%s10863_s2 + $0x8c] sm:$0xf0] }
 0x171   :  { %v1204_v16 = vadd.f32 %v1196_v9, %v942_v58  ;;  %v1205_v17 = vadd.f32 %v1197_v10, %v943_v3  ;;  %1451 = vmatmul.bf16.vlgmr.msra.gmra.mxu0 %v1250_v14  ;;  %1464 = vmatmul.bf16.vlgmr.msra.gmra.mxu1 %v1250_v14  ;;  %v7066_v58 = vld [vmem:[%s10863_s2 + $0xd4] sm:$0xf0]  ;;  %v5650_v3 = vor.u32 %v7061_v1, %v5649_v0  ;;  %v7060_v9 = vld [vmem:[%s10863_s2 + $0xac] sm:$0xf]  ;;  %v5659_v10 = vld [vmem:[%s10863_s2 + $0xb8] sm:$0xf0] }
 0x172   :  { %1477 = vmatmul.bf16.vlgmr.msra.gmra.mxu2 %v1250_v14  ;;  %1490 = vmatmul.bf16.vlgmr.msra.gmra.mxu3 %v1250_v14  ;;  %v5674_v60 = vor.u32 %v7066_v58, %v5673_v57  ;;  %v5654_v7 = vor.u32 %v7059_v2, %v5651_v4  ;;  %v5662_v11 = vor.u32 %v7060_v9, %v5659_v10  ;;  %v7055_v14 = vld [vmem:[%s10863_s2 + $0x84] sm:$0xf]  ;;  %v5585_v54 = vld [vmem:[%s10863_s2 + $0x20] sm:$0xf]  ;;  %v5587_v57 = vld [vmem:[%s10863_s2 + $0x30] sm:$0xf0] }
 0x173   :  { %7394 = vtanh.f32 %v1204_v16  ;;  %v1216_v18 = vmul.f32 0.5, %v1205_v17  ;;  %2039 = vmatpush.bf16.msra.mxu0 %v5682_v44  ;;  %2052 = vmatpush.bf16.msra.mxu1 %v5686_v45  ;;  %v5634_v15 = vor.u32 %v7057_v13, %v5633_v12  ;;  %v5635_v16 = vld [vmem:[%s10863_s2 + $0x90] sm:$0xf0]  ;;  %v5641_v17 = vld [vmem:[%s10863_s2 + $0x88] sm:$0xf]  ;;  %v5610_v44 = vor.u32 %v7050_v42, %v5609_v41 }
 0x174   :  { %v7391_v19 = vpop.eup %7390  ;;  %2065 = vmatpush.bf16.msra.mxu2 %v5690_v49  ;;  %2078 = vmatpush.bf16.msra.mxu3 %v5694_v51  ;;  %v7048_v45 = vld [vmem:[%s10863_s2 + $0x4c] sm:$0xf]  ;;  %v7043_v56 = vld [vmem:[%s10863_s2 + $0x24] sm:$0xf]  ;;  %v5595_v2 = vld [vmem:[%s10863_s2 + $0x38] sm:$0xf0] }
 0x175   :  { %v7393_v20 = vpop.eup %7392  ;;  %v1209_v21 = vmul.f32 0.5, %v7391_v19  ;;  %7396 = vtanh.f32 %v1216_v18  ;;  %v7058_v18 = vld [vmem:[%s10863_s2 + $0x94] sm:$0xf0]  ;;  %v5638_v19 = vor.u32 %v7055_v14, %v5635_v16  ;;  %v1246_v49 = vld [vmem:[%s10865_s0 + $0x8] sm:$0x30]  ;;  %v5614_v51 = vor.u32 %v7048_v45, %v5611_v46 }
 0x176   :  { %v1213_v23 = vmul.f32 0.5, %v7393_v20  ;;  %v1175_v24 = vpop.f32.mrf.mxu2  ;;  %v1188_v25 = vpop.f32.mrf.mxu3  ;;  %v5642_v20 = vor.u32 %v7058_v18, %v5641_v17  ;;  %v5590_v61 = vor.u32 %v7043_v56, %v5587_v57  ;;  %v7044_v1 = vld [vmem:[%s10863_s2 + $0x2c] sm:$0xf]  ;;  %v7041_v9 = vld [vmem:[%s10863_s2 + $0xc] sm:$0xf0] }
 0x177   :  { %v1210_v26 = vadd.f32 0.5, %v1209_v21  ;;  %2040 = vmatpush.bf16.msra.mxu0 %v5666_v55  ;;  %2053 = vmatpush.bf16.msra.mxu1 %v5670_v59  ;;  %v7056_v21 = vld [vmem:[%s10863_s2 + $0x8c] sm:$0xf]  ;;  %v5617_v24 = vld [vmem:[%s10863_s2 + $0x60] sm:$0xf] }
 0x178   :  { %v1214_v27 = vadd.f32 0.5, %v1213_v23  ;;  %2066 = vmatpush.bf16.msra.mxu2 %v5674_v60  ;;  %2079 = vmatpush.bf16.msra.mxu3 %v5678_v63  ;;  %v5646_v23 = vor.u32 %v7056_v21, %v5643_v22  ;;  %v7053_v25 = vld [vmem:[%s10863_s2 + $0x6c] sm:$0xf0]  ;;  %v7046_v63 = vld [vmem:[%s10863_s2 + $0x34] sm:$0xf0] }
 0x179   :  { %v7395_v29 = vpop.eup %7394  ;;  %v7045_v55 = vld [vmem:[%s10863_s2 + $0x2c] sm:$0xf0]  ;;  %v5594_v0 = vor.u32 %v7046_v63, %v5593_v62  ;;  %v5571_v12 = vld [vmem:[%s10863_s2 + $0x10] sm:$0xf0]  ;;  %v5577_v13 = vld [vmem:[%s10863_s2 + $0x8] sm:$0xf] }
 0x17a   :  { %v1223_v30 = vmul.f32 %v1221_v28, %v1214_v27  ;;  %v1224_v31 = vmul.f32 %v7395_v29, %v1210_v26  ;;  %v7051_v26 = vld [vmem:[%s10863_s2 + $0x64] sm:$0xf]  ;;  %v5618_v27 = vor.u32 %v7053_v25, %v5617_v24  ;;  %v5619_v28 = vld [vmem:[%s10863_s2 + $0x70] sm:$0xf0]  ;;  %v5625_v29 = vld [vmem:[%s10863_s2 + $0x68] sm:$0xf]  ;;  %v5586_v60 = vor.u32 %v7045_v55, %v5585_v54 }
 0x17b   :  { %v7397_v32 = vpop.eup %7396  ;;  %2041 = vmatpush.bf16.msra.mxu0 %v5650_v3  ;;  %2054 = vmatpush.bf16.msra.mxu1 %v5654_v7  ;;  %v5598_v7 = vor.u32 %v7044_v1, %v5595_v2  ;;  %v7042_v17 = vld [vmem:[%s10863_s2 + $0x14] sm:$0xf0]  ;;  %v7040_v18 = vld [vmem:[%s10863_s2 + $0xc] sm:$0xf]  ;;  %v5809_v25 = vld [vmem:[%s10864_s3 + $0xe0] sm:$0xf] }
 0x17c   :  { %v1225_v33 = vadd.f32 %v1224_v31, %v1223_v30  ;;  %v1218_v34 = vmul.f32 0.5, %v7397_v32  ;;  %2067 = vmatpush.bf16.msra.mxu2 %v5658_v8  ;;  %2080 = vmatpush.bf16.msra.mxu3 %v5662_v11  ;;  %v7054_v30 = vld [vmem:[%s10863_s2 + $0x74] sm:$0xf0]  ;;  %v5622_v31 = vor.u32 %v7051_v26, %v5619_v28  ;;  %v5569_v8 = vld [vmem:[%s10863_s2] sm:$0xf]  ;;  %v5578_v24 = vor.u32 %v7042_v17, %v5577_v13 }
 0x17d   :  { %v5626_v32 = vor.u32 %v7054_v30, %v5625_v29  ;;  %v5570_v10 = vor.u32 %v7041_v9, %v5569_v8  ;;  %v7039_v11 = vld [vmem:[%s10863_s2 + $0x4] sm:$0xf]  ;;  %v7101_v26 = vld [vmem:[%s10864_s3 + $0xec] sm:$0xf0]  ;;  %v5793_v42 = vld [vmem:[%s10864_s3 + $0xc0] sm:$0xf] }
 0x17e   :  { %7398 = vtanh.f32 %v1225_v33  ;;  %1243 = vst [vmem:[#allocation5 - $0x4] sm:$0x30] %v1225_v33  ;;  %v1219_v35 = vadd.f32 0.5, %v1218_v34  ;;  %v7052_v33 = vld [vmem:[%s10863_s2 + $0x6c] sm:$0xf]  ;;  %v5574_v16 = vor.u32 %v7039_v11, %v5571_v12  ;;  %v5810_v28 = vor.u32 %v7101_v26, %v5809_v25 }
 0x17f   :  { %2042 = vmatpush.bf16.msra.mxu0 %v5634_v15  ;;  %2055 = vmatpush.bf16.msra.mxu1 %v5638_v19  ;;  %v5627_v34 = vld [vmem:[%s10863_s2 + $0x78] sm:$0xf0]  ;;  %v7099_v29 = vld [vmem:[%s10864_s3 + $0xe4] sm:$0xf]  ;;  %v7093_v62 = vld [vmem:[%s10864_s3 + $0xac] sm:$0xf0] }
 0x180   :  { %2068 = vmatpush.bf16.msra.mxu2 %v5642_v20  ;;  %2081 = vmatpush.bf16.msra.mxu3 %v5646_v23  ;;  %v5579_v19 = vld [vmem:[%s10863_s2 + $0x18] sm:$0xf0]  ;;  %v7095_v46 = vld [vmem:[%s10864_s3 + $0xc4] sm:$0xf]  ;;  %v7092_v8 = vld [vmem:[%s10864_s3 + $0xac] sm:$0xf] }
 0x181   :  { %v7091_v2 = vld [vmem:[%s10864_s3 + $0xa4] sm:$0xf]  ;;  %v5787_v12 = vld [vmem:[%s10864_s3 + $0xb8] sm:$0xf0] }
 0x182   :  { %v7087_v17 = vld [vmem:[%s10864_s3 + $0x84] sm:$0xf]  ;;  %v5771_v25 = vld [vmem:[%s10864_s3 + $0x98] sm:$0xf0] }
 0x183   :  { %2043 = vmatpush.bf16.msra.mxu0 %v5618_v27  ;;  %2056 = vmatpush.bf16.msra.mxu1 %v5622_v31  ;;  %v5582_v27 = vor.u32 %v7040_v18, %v5579_v19 }
 0x184   :  { %v7399_v36 = vpop.eup %7398  ;;  %2069 = vmatpush.bf16.msra.mxu2 %v5626_v32  ;;  %v5811_v32 = vld [vmem:[%s10864_s3 + $0xf0] sm:$0xf0] }
 0x185   :  { %v1227_v37 = vmul.f32 %v7399_v36, %v1219_v35  ;;  %v5630_v35 = vor.u32 %v7052_v33, %v5627_v34  ;;  %v5601_v36 = vld [vmem:[%s10863_s2 + $0x40] sm:$0xf]  ;;  %v5817_v33 = vld [vmem:[%s10864_s3 + $0xe8] sm:$0xf]  ;;  %v7102_v34 = vld [vmem:[%s10864_s3 + $0xf4] sm:$0xf0] }
 0x187   :  { %1237 = vst [vmem:[#allocation4 - $0x4] sm:$0x30] %v1227_v37  ;;  %2082 = vmatpush.bf16.msra.mxu3 %v5630_v35  ;;  %v5814_v35 = vor.u32 %v7099_v29, %v5811_v32  ;;  %v5745_v29 = vld [vmem:[%s10864_s3 + $0x60] sm:$0xf] }
 0x188   :  { %1244 = vst [vmem:[%s10868_s5 + $0x8] sm:$0x30] %v1227_v37  ;;  %v7049_v37 = vld [vmem:[%s10863_s2 + $0x4c] sm:$0xf0]  ;;  %2070 = vmatpush.bf16.msra.mxu2 %v5610_v44 }
 0x18b   :  { %2083 = vmatpush.bf16.msra.mxu3 %v5614_v51 }
 0x18c   :  { %2071 = vmatpush.bf16.msra.mxu2 %v5594_v0 }
 0x18e   :  { %v1540_v38 = vld [vmem:[#allocation4] sm:$0x3] }
 0x18f   :  { %v1541_v39 = vpack.c.bf16 %v1540_v38, %v1540_v38  ;;  %v7047_v38 = vld [vmem:[%s10863_s2 + $0x44] sm:$0xf]  ;;  %2084 = vmatpush.bf16.msra.mxu3 %v5598_v7  ;;  %v7094_v7 = vld [vmem:[%s10864_s3 + $0xb4] sm:$0xf0] }
 0x190   :  { %v5606_v43 = vor.u32 %v7047_v38, %v5603_v40  ;;  %2072 = vmatpush.bf16.msra.mxu2 %v5578_v24  ;;  %v5819_v38 = vld [vmem:[%s10864_s3 + $0xf8] sm:$0xf0]  ;;  %v7088_v24 = vld [vmem:[%s10864_s3 + $0x8c] sm:$0xf] }
 0x191   :  { %1742 = vmatmul.bf16.vlgmr.msrb.gmra.mxu0 %v1541_v39  ;;  %1755 = vmatmul.bf16.vlgmr.msrb.gmra.mxu1 %v1541_v39 }
 0x192   :  { %1768 = vmatmul.bf16.vlgmr.msrb.gmra.mxu2 %v1541_v39  ;;  %1781 = vmatmul.bf16.vlgmr.msrb.gmra.mxu3 %v1541_v39  ;;  %v5602_v39 = vor.u32 %v7049_v37, %v5601_v36  ;;  %v5818_v36 = vor.u32 %v7102_v34, %v5817_v33  ;;  %v7100_v37 = vld [vmem:[%s10864_s3 + $0xec] sm:$0xf]  ;;  %v5747_v33 = vld [vmem:[%s10864_s3 + $0x70] sm:$0xf0]  ;;  %v5753_v34 = vld [vmem:[%s10864_s3 + $0x68] sm:$0xf] }
 0x193   :  { %2057 = vmatpush.bf16.msra.mxu1 %v5606_v43  ;;  %2085 = vmatpush.bf16.msra.mxu3 %v5582_v27  ;;  %v5822_v41 = vor.u32 %v7100_v37, %v5819_v38  ;;  %v7097_v43 = vld [vmem:[%s10864_s3 + $0xcc] sm:$0xf0]  ;;  %v7084_v38 = vld [vmem:[%s10864_s3 + $0x6c] sm:$0xf] }
 0x194   :  { %2044 = vmatpush.bf16.msra.mxu0 %v5602_v39  ;;  %v1511_v39 = vld [vmem:[#allocation3] sm:$0x3]  ;;  %2356 = vmatpush.bf16.msrb.mxu2 %v5818_v36  ;;  %v5794_v45 = vor.u32 %v7097_v43, %v5793_v42  ;;  %v7081_v43 = vld [vmem:[%s10864_s3 + $0x4c] sm:$0xf0] }
 0x195   :  { %v1526_v0 = vrot.slane %v1511_v39, 4  ;;  %v5755_v39 = vld [vmem:[%s10864_s3 + $0x78] sm:$0xf0]  ;;  %v5729_v42 = vld [vmem:[%s10864_s3 + $0x40] sm:$0xf] }
 0x197   :  { %2058 = vmatpush.bf16.msra.mxu1 %v5590_v61  ;;  %2369 = vmatpush.bf16.msrb.mxu3 %v5822_v41  ;;  %v5777_v61 = vld [vmem:[%s10864_s3 + $0xa0] sm:$0xf]  ;;  %v5758_v41 = vor.u32 %v7084_v38, %v5755_v39 }
 0x198   :  { %2045 = vmatpush.bf16.msra.mxu0 %v5586_v60  ;;  %v5778_v1 = vor.u32 %v7093_v62, %v5777_v61  ;;  %v5713_v62 = vld [vmem:[%s10864_s3 + $0x20] sm:$0xf] }
 0x19b   :  { %2059 = vmatpush.bf16.msra.mxu1 %v5574_v16  ;;  %v7089_v16 = vld [vmem:[%s10864_s3 + $0x8c] sm:$0xf0] }
 0x19c   :  { %2046 = vmatpush.bf16.msra.mxu0 %v5570_v10 }
 0x19f   :  { %2343 = vmatpush.bf16.msrb.mxu1 %v5814_v35  ;;  %v7086_v35 = vld [vmem:[%s10864_s3 + $0x74] sm:$0xf0] }
 0x1a0   :  { %2330 = vmatpush.bf16.msrb.mxu0 %v5810_v28  ;;  %v5774_v28 = vor.u32 %v7088_v24, %v5771_v25  ;;  %v5754_v37 = vor.u32 %v7086_v35, %v5753_v34 }
 0x1a4   :  { %2331 = vmatpush.bf16.msrb.mxu0 %v5794_v45 }
 0x1a8   :  { %2332 = vmatpush.bf16.msrb.mxu0 %v5778_v1 }
 0x1ee   :  { %v1452_v48 = vpop.f32.mrf.mxu0  ;;  %v1465_v50 = vpop.f32.mrf.mxu1 }
 0x1ef   :  { %v1499_v52 = vrot.slane %v1452_v48, 4  ;;  %v1500_v53 = vrot.slane %v1465_v50, 4  ;;  %v5801_v48 = vld [vmem:[%s10864_s3 + $0xc8] sm:$0xf] }
 0x1f1   :  { %v1507_v58 = vadd.f32 %v1499_v52, %v1245_v47  ;;  %v1508_v59 = vadd.f32 %v1500_v53, %v1246_v49  ;;  %v5795_v47 = vld [vmem:[%s10864_s3 + $0xd0] sm:$0xf0]  ;;  %v7098_v52 = vld [vmem:[%s10864_s3 + $0xd4] sm:$0xf0]  ;;  %v7096_v53 = vld [vmem:[%s10864_s3 + $0xcc] sm:$0xf] }
 0x1f2   :  { %v5798_v51 = vor.u32 %v7095_v46, %v5795_v47  ;;  %v5802_v57 = vor.u32 %v7098_v52, %v5801_v48  ;;  %v5730_v46 = vor.u32 %v7081_v43, %v5729_v42  ;;  %v5731_v47 = vld [vmem:[%s10864_s3 + $0x50] sm:$0xf0]  ;;  %v5737_v48 = vld [vmem:[%s10864_s3 + $0x48] sm:$0xf]  ;;  %v1802_v42 = vld [vmem:[#allocation5] sm:$0x3] }
 0x1f3   :  { %v1512_v3 = vmul.f32 0.5, %v1507_v58  ;;  %v1516_v4 = vmul.f32 0.5, %v1508_v59  ;;  %v5803_v58 = vld [vmem:[%s10864_s3 + $0xd8] sm:$0xf0] }
 0x1f4   :  { %v5806_v60 = vor.u32 %v7096_v53, %v5803_v58  ;;  %2344 = vmatpush.bf16.msrb.mxu1 %v5798_v51  ;;  %2357 = vmatpush.bf16.msrb.mxu2 %v5802_v57  ;;  %v7080_v53 = vld [vmem:[%s10864_s3 + $0x4c] sm:$0xf]  ;;  %v1537_v57 = vld [vmem:[%s10866_s1 + $0x28] sm:$0xc] }
 0x1f5   :  { %7400 = vtanh.f32 %v1512_v3  ;;  %v1478_v14 = vpop.f32.mrf.mxu2  ;;  %v1491_v15 = vpop.f32.mrf.mxu3  ;;  %v5779_v3 = vld [vmem:[%s10864_s3 + $0xb0] sm:$0xf0] }
 0x1f6   :  { %7402 = vtanh.f32 %v1516_v4  ;;  %v1501_v20 = vrot.slane %v1478_v14, 4  ;;  %v1502_v21 = vrot.slane %v1491_v15, 4  ;;  %v1454_v22 = vpop.f32.mrf.mxu0  ;;  %v1467_v23 = vpop.f32.mrf.mxu1  ;;  %2370 = vmatpush.bf16.msrb.mxu3 %v5806_v60  ;;  %v5790_v14 = vor.u32 %v7092_v8, %v5787_v12  ;;  %v5761_v15 = vld [vmem:[%s10864_s3 + $0x80] sm:$0xf] }
 0x1f7   :  { %v5762_v19 = vor.u32 %v7089_v16, %v5761_v15  ;;  %v7090_v23 = vld [vmem:[%s10864_s3 + $0x94] sm:$0xf0]  ;;  %v7073_v16 = vld [vmem:[%s10864_s3 + $0xc] sm:$0xf0] }
 0x1f8   :  { %v1509_v30 = vadd.f32 %v1501_v20, %v1247_v5  ;;  %v1510_v31 = vadd.f32 %v1502_v21, %v1248_v6  ;;  %v5782_v5 = vor.u32 %v7091_v2, %v5779_v3  ;;  %v5785_v6 = vld [vmem:[%s10864_s3 + $0xa8] sm:$0xf]  ;;  %v5763_v20 = vld [vmem:[%s10864_s3 + $0x90] sm:$0xf0] }
 0x1f9   :  { %v5786_v11 = vor.u32 %v7094_v7, %v5785_v6  ;;  %v5769_v21 = vld [vmem:[%s10864_s3 + $0x88] sm:$0xf]  ;;  %v5766_v22 = vor.u32 %v7087_v17, %v5763_v20  ;;  %2333 = vmatpush.bf16.msrb.mxu0 %v5762_v19  ;;  %v7078_v6 = vld [vmem:[%s10864_s3 + $0x34] sm:$0xf0]  ;;  %v7071_v17 = vld [vmem:[%s10864_s3 + $0x4] sm:$0xf] }
 0x1fa   :  { %7404 = vtanh.f32 %v1509_v30  ;;  %v1521_v40 = vmul.f32 0.5, %v1510_v31  ;;  %2345 = vmatpush.bf16.msrb.mxu1 %v5782_v5  ;;  %2371 = vmatpush.bf16.msrb.mxu3 %v5790_v14  ;;  %v5770_v27 = vor.u32 %v7090_v23, %v5769_v21  ;;  %v7085_v30 = vld [vmem:[%s10864_s3 + $0x6c] sm:$0xf0]  ;;  %v7083_v31 = vld [vmem:[%s10864_s3 + $0x64] sm:$0xf] }
 0x1fb   :  { %v7401_v44 = vpop.eup %7400  ;;  %2358 = vmatpush.bf16.msrb.mxu2 %v5786_v11  ;;  %v5746_v32 = vor.u32 %v7085_v30, %v5745_v29  ;;  %v5750_v36 = vor.u32 %v7083_v31, %v5747_v33  ;;  %v5721_v5 = vld [vmem:[%s10864_s3 + $0x28] sm:$0xf]  ;;  %v5697_v11 = vld [vmem:[%s10864_s3] sm:$0xf]  ;;  %v1538_v14 = vld [vmem:[%s10866_s1 + $0x30] sm:$0xc] }
 0x1fc   :  { %v7403_v49 = vpop.eup %7402  ;;  %v1514_v50 = vmul.f32 0.5, %v7401_v44  ;;  %7406 = vtanh.f32 %v1521_v40  ;;  %v7079_v44 = vld [vmem:[%s10864_s3 + $0x44] sm:$0xf]  ;;  %v5722_v8 = vor.u32 %v7078_v6, %v5721_v5  ;;  %v5699_v19 = vld [vmem:[%s10864_s3 + $0x10] sm:$0xf0] }
 0x1fd   :  { %v1518_v54 = vmul.f32 0.5, %v7403_v49  ;;  %v1480_v55 = vpop.f32.mrf.mxu2  ;;  %v1493_v56 = vpop.f32.mrf.mxu3  ;;  %2334 = vmatpush.bf16.msrb.mxu0 %v5746_v32  ;;  %v7082_v49 = vld [vmem:[%s10864_s3 + $0x54] sm:$0xf0]  ;;  %v5734_v51 = vor.u32 %v7079_v44, %v5731_v47  ;;  %v5705_v20 = vld [vmem:[%s10864_s3 + $0x8] sm:$0xf]  ;;  %v5702_v25 = vor.u32 %v7071_v17, %v5699_v19 }
 0x1fe   :  { %v1515_v59 = vadd.f32 0.5, %v1514_v50  ;;  %2346 = vmatpush.bf16.msrb.mxu1 %v5766_v22  ;;  %2372 = vmatpush.bf16.msrb.mxu3 %v5774_v28  ;;  %v5738_v52 = vor.u32 %v7082_v49, %v5737_v48  ;;  %v1536_v55 = vld [vmem:[%s10866_s1 + $0x20] sm:$0xc]  ;;  %v7074_v21 = vld [vmem:[%s10864_s3 + $0x14] sm:$0xf0]  ;;  %v1817_v48 = vrot.slane %v1802_v42, 6 }
 0x1ff   :  { %v1519_v63 = vadd.f32 0.5, %v1518_v54  ;;  %2359 = vmatpush.bf16.msrb.mxu2 %v5770_v27  ;;  %v5739_v54 = vld [vmem:[%s10864_s3 + $0x58] sm:$0xf0]  ;;  %v1539_v23 = vld [vmem:[%s10866_s1 + $0x38] sm:$0xc] }
 0x200   :  { %v7405_v4 = vpop.eup %7404  ;;  %v7072_v27 = vld [vmem:[%s10864_s3 + $0xc] sm:$0xf]  ;;  %v5707_v28 = vld [vmem:[%s10864_s3 + $0x18] sm:$0xf0] }
 0x201   :  { %v1528_v9 = vmul.f32 %v1526_v0, %v1519_v63  ;;  %v1529_v10 = vmul.f32 %v7405_v4, %v1515_v59  ;;  %2335 = vmatpush.bf16.msrb.mxu0 %v5730_v46  ;;  %v5742_v59 = vor.u32 %v7080_v53, %v5739_v54  ;;  %v7077_v63 = vld [vmem:[%s10864_s3 + $0x2c] sm:$0xf0]  ;;  %v7075_v0 = vld [vmem:[%s10864_s3 + $0x24] sm:$0xf]  ;;  %v5715_v4 = vld [vmem:[%s10864_s3 + $0x30] sm:$0xf0]  ;;  %v5710_v35 = vor.u32 %v7072_v27, %v5707_v28 }
 0x202   :  { %v7407_v13 = vpop.eup %7406  ;;  %2347 = vmatpush.bf16.msrb.mxu1 %v5750_v36  ;;  %2373 = vmatpush.bf16.msrb.mxu3 %v5758_v41  ;;  %v5714_v3 = vor.u32 %v7077_v63, %v5713_v62  ;;  %v5718_v7 = vor.u32 %v7075_v0, %v5715_v4  ;;  %v7131_v62 = vld [vmem:[%s10863_s2 + $0xe4] sm:$0xf]  ;;  %v5939_v63 = vld [vmem:[%s10863_s2 + $0xf0] sm:$0xf0]  ;;  %v7132_v4 = vld [vmem:[%s10863_s2 + $0xec] sm:$0xf] }
 0x203   :  { %v1530_v18 = vadd.f32 %v1529_v10, %v1528_v9  ;;  %v1523_v26 = vmul.f32 0.5, %v7407_v13  ;;  %2360 = vmatpush.bf16.msrb.mxu2 %v5754_v37  ;;  %v7076_v9 = vld [vmem:[%s10864_s3 + $0x2c] sm:$0xf]  ;;  %v5723_v10 = vld [vmem:[%s10864_s3 + $0x38] sm:$0xf0] }
 0x204   :  { %v5726_v15 = vor.u32 %v7076_v9, %v5723_v10  ;;  %v5947_v6 = vld [vmem:[%s10863_s2 + $0xf8] sm:$0xf0]  ;;  %v7129_v9 = vld [vmem:[%s10863_s2 + $0xcc] sm:$0xf0]  ;;  %v7127_v10 = vld [vmem:[%s10863_s2 + $0xc4] sm:$0xf] }
 0x205   :  { %7408 = vtanh.f32 %v1530_v18  ;;  %1534 = vst [vmem:[#allocation3 - $0x4] sm:$0x30] %v1530_v18  ;;  %v1524_v40 = vadd.f32 0.5, %v1523_v26  ;;  %2336 = vmatpush.bf16.msrb.mxu0 %v5714_v3  ;;  %v5698_v18 = vor.u32 %v7073_v16, %v5697_v11  ;;  %v5706_v26 = vor.u32 %v7074_v21, %v5705_v20  ;;  %v7134_v3 = vld [vmem:[%s10863_s2 + $0xf4] sm:$0xf0] }
 0x206   :  { %2348 = vmatpush.bf16.msrb.mxu1 %v5734_v51  ;;  %2374 = vmatpush.bf16.msrb.mxu3 %v5742_v59  ;;  %v7128_v17 = vld [vmem:[%s10863_s2 + $0xcc] sm:$0xf]  ;;  %v5905_v20 = vld [vmem:[%s10863_s2 + $0xa0] sm:$0xf]  ;;  %v7125_v21 = vld [vmem:[%s10863_s2 + $0xac] sm:$0xf0] }
 0x207   :  { %2361 = vmatpush.bf16.msrb.mxu2 %v5738_v52  ;;  %v5899_v42 = vld [vmem:[%s10863_s2 + $0x98] sm:$0xf0] }
 0x209   :  { %2337 = vmatpush.bf16.msrb.mxu0 %v5698_v18  ;;  %v5931_v18 = vld [vmem:[%s10863_s2 + $0xd8] sm:$0xf0] }
 0x20a   :  { %2349 = vmatpush.bf16.msrb.mxu1 %v5718_v7  ;;  %2375 = vmatpush.bf16.msrb.mxu3 %v5726_v15  ;;  %v5950_v7 = vor.u32 %v7132_v4, %v5947_v6  ;;  %v5934_v19 = vor.u32 %v7128_v17, %v5931_v18  ;;  %v5849_v17 = vld [vmem:[%s10863_s2 + $0x28] sm:$0xf]  ;;  %v7110_v18 = vld [vmem:[%s10863_s2 + $0x34] sm:$0xf0] }
 0x20b   :  { %v7409_v45 = vpop.eup %7408  ;;  %2362 = vmatpush.bf16.msrb.mxu2 %v5722_v8  ;;  %v5921_v8 = vld [vmem:[%s10863_s2 + $0xc0] sm:$0xf] }
 0x20c   :  { %v1532_v50 = vmul.f32 %v7409_v45, %v1524_v40  ;;  %v5922_v11 = vor.u32 %v7129_v9, %v5921_v8 }
 0x20e   :  { %v1743_v56 = vpop.f32.mrf.mxu0  ;;  %v1756_v58 = vpop.f32.mrf.mxu1  ;;  %1533 = vst [vmem:[#allocation2 - $0x4] sm:$0x30] %v1532_v50  ;;  %2350 = vmatpush.bf16.msrb.mxu1 %v5702_v25  ;;  %2376 = vmatpush.bf16.msrb.mxu3 %v5710_v35  ;;  %v5913_v25 = vld [vmem:[%s10863_s2 + $0xa8] sm:$0xf] }
 0x20f   :  { %v1790_v60 = vrot.slane %v1743_v56, 6  ;;  %v1791_v61 = vrot.slane %v1756_v58, 6  ;;  %1535 = vst [vmem:[%s10867_s4] sm:$0x30] %v1532_v50  ;;  %2363 = vmatpush.bf16.msrb.mxu2 %v5706_v26  ;;  %v7126_v26 = vld [vmem:[%s10863_s2 + $0xb4] sm:$0xf0] }
 0x210   :  { %v5914_v28 = vor.u32 %v7126_v26, %v5913_v25  ;;  %v5825_v26 = vld [vmem:[%s10863_s2] sm:$0xf] }
 0x211   :  { %v1798_v1 = vadd.f32 %v1790_v60, %v1536_v55  ;;  %v1799_v2 = vadd.f32 %v1791_v61, %v1537_v57  ;;  %v5937_v60 = vld [vmem:[%s10863_s2 + $0xe0] sm:$0xf]  ;;  %v7133_v61 = vld [vmem:[%s10863_s2 + $0xec] sm:$0xf0] }
 0x212   :  { %v5938_v0 = vor.u32 %v7133_v61, %v5937_v60  ;;  %v5859_v60 = vld [vmem:[%s10863_s2 + $0x50] sm:$0xf0]  ;;  %v5865_v61 = vld [vmem:[%s10863_s2 + $0x48] sm:$0xf] }
 0x213   :  { %v1803_v12 = vmul.f32 0.5, %v1798_v1  ;;  %v1807_v13 = vmul.f32 0.5, %v1799_v2  ;;  %v5942_v1 = vor.u32 %v7131_v62, %v5939_v63  ;;  %v5945_v2 = vld [vmem:[%s10863_s2 + $0xe8] sm:$0xf]  ;;  %v7114_v62 = vld [vmem:[%s10863_s2 + $0x54] sm:$0xf0] }
 0x214   :  { %v5946_v5 = vor.u32 %v7134_v3, %v5945_v2  ;;  %v5867_v2 = vld [vmem:[%s10863_s2 + $0x58] sm:$0xf0]  ;;  %v1841_v3 = vld [vmem:[%s10865_s0] sm:$0xc0] }
 0x215   :  { %7410 = vtanh.f32 %v1803_v12  ;;  %v1769_v22 = vpop.f32.mrf.mxu2  ;;  %v1782_v24 = vpop.f32.mrf.mxu3  ;;  %v1845_v33 = vld [vmem:[#allocation2] sm:$0x3]  ;;  %v5923_v12 = vld [vmem:[%s10863_s2 + $0xd0] sm:$0xf0] }
 0x216   :  { %7412 = vtanh.f32 %v1807_v13  ;;  %v1792_v29 = vrot.slane %v1769_v22, 6  ;;  %v1793_v30 = vrot.slane %v1782_v24, 6  ;;  %v1745_v31 = vpop.f32.mrf.mxu0  ;;  %v1758_v32 = vpop.f32.mrf.mxu1  ;;  %v1846_v34 = vpack.c.bf16 %v1845_v33, %v1845_v33  ;;  %v5929_v13 = vld [vmem:[%s10863_s2 + $0xc8] sm:$0xf]  ;;  %v7123_v22 = vld [vmem:[%s10863_s2 + $0xa4] sm:$0xf] }
 0x217   :  { %v5926_v15 = vor.u32 %v7127_v10, %v5923_v12  ;;  %v5907_v24 = vld [vmem:[%s10863_s2 + $0xb0] sm:$0xf0]  ;;  %v5889_v32 = vld [vmem:[%s10863_s2 + $0x80] sm:$0xf]  ;;  %v7121_v33 = vld [vmem:[%s10863_s2 + $0x8c] sm:$0xf0] }
 0x218   :  { %v1800_v36 = vadd.f32 %v1792_v29, %v1538_v14  ;;  %v1801_v37 = vadd.f32 %v1793_v30, %v1539_v23  ;;  %2047 = vmatmul.bf16.vlgmr.msra.gmra.mxu0 %v1846_v34  ;;  %2060 = vmatmul.bf16.vlgmr.msra.gmra.mxu1 %v1846_v34  ;;  %v7130_v14 = vld [vmem:[%s10863_s2 + $0xd4] sm:$0xf0]  ;;  %v5906_v23 = vor.u32 %v7125_v21, %v5905_v20  ;;  %v7124_v29 = vld [vmem:[%s10863_s2 + $0xac] sm:$0xf]  ;;  %v5915_v30 = vld [vmem:[%s10863_s2 + $0xb8] sm:$0xf0] }
 0x219   :  { %2073 = vmatmul.bf16.vlgmr.msra.gmra.mxu2 %v1846_v34  ;;  %2086 = vmatmul.bf16.vlgmr.msra.gmra.mxu3 %v1846_v34  ;;  %v5930_v16 = vor.u32 %v7130_v14, %v5929_v13  ;;  %v5910_v27 = vor.u32 %v7123_v22, %v5907_v24  ;;  %v5918_v31 = vor.u32 %v7124_v29, %v5915_v30  ;;  %v7119_v34 = vld [vmem:[%s10863_s2 + $0x84] sm:$0xf]  ;;  %v5841_v10 = vld [vmem:[%s10863_s2 + $0x20] sm:$0xf]  ;;  %v7108_v21 = vld [vmem:[%s10863_s2 + $0x2c] sm:$0xf] }
 0x21a   :  { %7414 = vtanh.f32 %v1800_v36  ;;  %v1812_v38 = vmul.f32 0.5, %v1801_v37  ;;  %2614 = vmatpush.bf16.msra.mxu0 %v5938_v0  ;;  %2627 = vmatpush.bf16.msra.mxu1 %v5942_v1  ;;  %v5890_v35 = vor.u32 %v7121_v33, %v5889_v32  ;;  %v5891_v36 = vld [vmem:[%s10863_s2 + $0x90] sm:$0xf0]  ;;  %v5897_v37 = vld [vmem:[%s10863_s2 + $0x88] sm:$0xf]  ;;  %v5866_v0 = vor.u32 %v7114_v62, %v5865_v61 }
 0x21b   :  { %v7411_v39 = vpop.eup %7410  ;;  %2640 = vmatpush.bf16.msra.mxu2 %v5946_v5  ;;  %2653 = vmatpush.bf16.msra.mxu3 %v5950_v7  ;;  %v7112_v1 = vld [vmem:[%s10863_s2 + $0x4c] sm:$0xf]  ;;  %v7107_v12 = vld [vmem:[%s10863_s2 + $0x24] sm:$0xf]  ;;  %v5850_v20 = vor.u32 %v7110_v18, %v5849_v17  ;;  %v5851_v22 = vld [vmem:[%s10863_s2 + $0x38] sm:$0xf0] }
 0x21c   :  { %v7413_v40 = vpop.eup %7412  ;;  %v1805_v41 = vmul.f32 0.5, %v7411_v39  ;;  %7416 = vtanh.f32 %v1812_v38  ;;  %v7122_v38 = vld [vmem:[%s10863_s2 + $0x94] sm:$0xf0]  ;;  %v5894_v39 = vor.u32 %v7119_v34, %v5891_v36  ;;  %v1842_v5 = vld [vmem:[%s10865_s0 + $0x8] sm:$0xc0]  ;;  %v5870_v7 = vor.u32 %v7112_v1, %v5867_v2 }
 0x21d   :  { %v1809_v43 = vmul.f32 0.5, %v7413_v40  ;;  %v1771_v44 = vpop.f32.mrf.mxu2  ;;  %v1784_v45 = vpop.f32.mrf.mxu3  ;;  %v5898_v40 = vor.u32 %v7122_v38, %v5897_v37  ;;  %v5854_v25 = vor.u32 %v7108_v21, %v5851_v22  ;;  %v7103_v29 = vld [vmem:[%s10863_s2 + $0x4] sm:$0xf]  ;;  %v5827_v30 = vld [vmem:[%s10863_s2 + $0x10] sm:$0xf0] }
 0x21e   :  { %v1806_v46 = vadd.f32 0.5, %v1805_v41  ;;  %2615 = vmatpush.bf16.msra.mxu0 %v5922_v11  ;;  %2628 = vmatpush.bf16.msra.mxu1 %v5926_v15  ;;  %v7120_v41 = vld [vmem:[%s10863_s2 + $0x8c] sm:$0xf]  ;;  %v5873_v44 = vld [vmem:[%s10863_s2 + $0x60] sm:$0xf]  ;;  %v5830_v36 = vor.u32 %v7103_v29, %v5827_v30 }
 0x21f   :  { %v1810_v47 = vadd.f32 0.5, %v1809_v43  ;;  %2641 = vmatpush.bf16.msra.mxu2 %v5930_v16  ;;  %2654 = vmatpush.bf16.msra.mxu3 %v5934_v19  ;;  %v5902_v43 = vor.u32 %v7120_v41, %v5899_v42  ;;  %v7117_v45 = vld [vmem:[%s10863_s2 + $0x6c] sm:$0xf0]  ;;  %v5843_v16 = vld [vmem:[%s10863_s2 + $0x30] sm:$0xf0] }
 0x220   :  { %v7415_v49 = vpop.eup %7414  ;;  %v7109_v11 = vld [vmem:[%s10863_s2 + $0x2c] sm:$0xf0]  ;;  %v5846_v19 = vor.u32 %v7107_v12, %v5843_v16  ;;  %v1843_v32 = vld [vmem:[%s10865_s0 + $0x10] sm:$0xc0]  ;;  %v1844_v34 = vld [vmem:[%s10865_s0 + $0x18] sm:$0xc0] }
 0x221   :  { %v1819_v50 = vmul.f32 %v1817_v48, %v1810_v47  ;;  %v1820_v51 = vmul.f32 %v7415_v49, %v1806_v46  ;;  %v7115_v46 = vld [vmem:[%s10863_s2 + $0x64] sm:$0xf]  ;;  %v5874_v47 = vor.u32 %v7117_v45, %v5873_v44  ;;  %v5875_v48 = vld [vmem:[%s10863_s2 + $0x70] sm:$0xf0]  ;;  %v5881_v49 = vld [vmem:[%s10863_s2 + $0x68] sm:$0xf]  ;;  %v5842_v15 = vor.u32 %v7109_v11, %v5841_v10 }
 0x222   :  { %v7417_v52 = vpop.eup %7416  ;;  %2616 = vmatpush.bf16.msra.mxu0 %v5906_v23  ;;  %2629 = vmatpush.bf16.msra.mxu1 %v5910_v27  ;;  %v7105_v27 = vld [vmem:[%s10863_s2 + $0xc] sm:$0xf0]  ;;  %v7106_v37 = vld [vmem:[%s10863_s2 + $0x14] sm:$0xf0]  ;;  %v5835_v44 = vld [vmem:[%s10863_s2 + $0x18] sm:$0xf0] }
 0x223   :  { %v1821_v53 = vadd.f32 %v1820_v51, %v1819_v50  ;;  %v1814_v54 = vmul.f32 0.5, %v7417_v52  ;;  %2642 = vmatpush.bf16.msra.mxu2 %v5914_v28  ;;  %2655 = vmatpush.bf16.msra.mxu3 %v5918_v31  ;;  %v7118_v50 = vld [vmem:[%s10863_s2 + $0x74] sm:$0xf0]  ;;  %v5878_v51 = vor.u32 %v7115_v46, %v5875_v48  ;;  %v5826_v28 = vor.u32 %v7105_v27, %v5825_v26  ;;  %v5833_v31 = vld [vmem:[%s10863_s2 + $0x8] sm:$0xf] }
 0x224   :  { %v5882_v52 = vor.u32 %v7118_v50, %v5881_v49  ;;  %v5834_v42 = vor.u32 %v7106_v37, %v5833_v31  ;;  %v6065_v46 = vld [vmem:[%s10864_s3 + $0xe0] sm:$0xf]  ;;  %v7163_v48 = vld [vmem:[%s10864_s3 + $0xe4] sm:$0xf]  ;;  %v7160_v10 = vld [vmem:[%s10864_s3 + $0xcc] sm:$0xf] }
 0x225   :  { %7418 = vtanh.f32 %v1821_v53  ;;  %1839 = vst [vmem:[#allocation5 - $0x2] sm:$0xc] %v1821_v53  ;;  %v1815_v55 = vadd.f32 0.5, %v1814_v54  ;;  %v7116_v53 = vld [vmem:[%s10863_s2 + $0x6c] sm:$0xf] }
 0x226   :  { %2617 = vmatpush.bf16.msra.mxu0 %v5890_v35  ;;  %2630 = vmatpush.bf16.msra.mxu1 %v5894_v39  ;;  %v5883_v54 = vld [vmem:[%s10863_s2 + $0x78] sm:$0xf0]  ;;  %v6033_v16 = vld [vmem:[%s10864_s3 + $0xa0] sm:$0xf]  ;;  %v7157_v17 = vld [vmem:[%s10864_s3 + $0xac] sm:$0xf0] }
 0x227   :  { %2643 = vmatpush.bf16.msra.mxu2 %v5898_v40  ;;  %2656 = vmatpush.bf16.msra.mxu3 %v5902_v43  ;;  %v7104_v43 = vld [vmem:[%s10863_s2 + $0xc] sm:$0xf]  ;;  %v6059_v11 = vld [vmem:[%s10864_s3 + $0xd8] sm:$0xf0]  ;;  %v6035_v21 = vld [vmem:[%s10864_s3 + $0xb0] sm:$0xf0] }
 0x228   :  { %v5838_v45 = vor.u32 %v7104_v43, %v5835_v44  ;;  %v7158_v26 = vld [vmem:[%s10864_s3 + $0xb4] sm:$0xf0]  ;;  %v7156_v29 = vld [vmem:[%s10864_s3 + $0xac] sm:$0xf]  ;;  %v6043_v30 = vld [vmem:[%s10864_s3 + $0xb8] sm:$0xf0] }
 0x229   :  { %v6017_v31 = vld [vmem:[%s10864_s3 + $0x80] sm:$0xf]  ;;  %v6019_v37 = vld [vmem:[%s10864_s3 + $0x90] sm:$0xf0] }
 0x22a   :  { %2618 = vmatpush.bf16.msra.mxu0 %v5874_v47  ;;  %2631 = vmatpush.bf16.msra.mxu1 %v5878_v51  ;;  %v7165_v47 = vld [vmem:[%s10864_s3 + $0xec] sm:$0xf0] }
 0x22b   :  { %v7419_v56 = vpop.eup %7418  ;;  %2644 = vmatpush.bf16.msra.mxu2 %v5882_v52  ;;  %v6066_v51 = vor.u32 %v7165_v47, %v6065_v46  ;;  %v6067_v52 = vld [vmem:[%s10864_s3 + $0xf0] sm:$0xf0]  ;;  %v6027_v46 = vld [vmem:[%s10864_s3 + $0x98] sm:$0xf0] }
 0x22c   :  { %v1823_v57 = vmul.f32 %v7419_v56, %v1815_v55  ;;  %v5886_v55 = vor.u32 %v7116_v53, %v5883_v54  ;;  %v5857_v56 = vld [vmem:[%s10863_s2 + $0x40] sm:$0xf]  ;;  %v6073_v53 = vld [vmem:[%s10864_s3 + $0xe8] sm:$0xf]  ;;  %v7166_v54 = vld [vmem:[%s10864_s3 + $0xf4] sm:$0xf0] }
 0x22e   :  { %1833 = vst [vmem:[#allocation4 - $0x2] sm:$0xc] %v1823_v57  ;;  %2657 = vmatpush.bf16.msra.mxu3 %v5886_v55  ;;  %v6070_v55 = vor.u32 %v7163_v48, %v6067_v52  ;;  %v6001_v48 = vld [vmem:[%s10864_s3 + $0x60] sm:$0xf]  ;;  %v6003_v52 = vld [vmem:[%s10864_s3 + $0x70] sm:$0xf0] }
 0x22f   :  { %1840 = vst [vmem:[%s10868_s5 + $0x8] sm:$0xc] %v1823_v57  ;;  %v7113_v57 = vld [vmem:[%s10863_s2 + $0x4c] sm:$0xf0]  ;;  %2645 = vmatpush.bf16.msra.mxu2 %v5866_v0  ;;  %v7159_v0 = vld [vmem:[%s10864_s3 + $0xc4] sm:$0xf] }
 0x232   :  { %2658 = vmatpush.bf16.msra.mxu3 %v5870_v7 }
 0x233   :  { %2646 = vmatpush.bf16.msra.mxu2 %v5850_v20  ;;  %v7155_v20 = vld [vmem:[%s10864_s3 + $0xa4] sm:$0xf] }
 0x235   :  { %v2136_v58 = vld [vmem:[#allocation4] sm:$0x3] }
 0x236   :  { %v2137_v59 = vpack.c.bf16 %v2136_v58, %v2136_v58  ;;  %v7111_v58 = vld [vmem:[%s10863_s2 + $0x44] sm:$0xf]  ;;  %2659 = vmatpush.bf16.msra.mxu3 %v5854_v25  ;;  %v6041_v25 = vld [vmem:[%s10864_s3 + $0xa8] sm:$0xf] }
 0x237   :  { %v5862_v63 = vor.u32 %v7111_v58, %v5859_v60  ;;  %2647 = vmatpush.bf16.msra.mxu2 %v5834_v42  ;;  %v6075_v58 = vld [vmem:[%s10864_s3 + $0xf8] sm:$0xf0]  ;;  %v2107_v60 = vld [vmem:[#allocation3] sm:$0x3]  ;;  %v7152_v42 = vld [vmem:[%s10864_s3 + $0x8c] sm:$0xf] }
 0x238   :  { %2338 = vmatmul.bf16.vlgmr.msrb.gmra.mxu0 %v2137_v59  ;;  %2351 = vmatmul.bf16.vlgmr.msrb.gmra.mxu1 %v2137_v59  ;;  %v6030_v47 = vor.u32 %v7152_v42, %v6027_v46 }
 0x239   :  { %2364 = vmatmul.bf16.vlgmr.msrb.gmra.mxu2 %v2137_v59  ;;  %2377 = vmatmul.bf16.vlgmr.msrb.gmra.mxu3 %v2137_v59  ;;  %v5858_v59 = vor.u32 %v7113_v57, %v5857_v56  ;;  %v6074_v56 = vor.u32 %v7166_v54, %v6073_v53  ;;  %v7164_v57 = vld [vmem:[%s10864_s3 + $0xec] sm:$0xf]  ;;  %v6009_v54 = vld [vmem:[%s10864_s3 + $0x68] sm:$0xf] }
 0x23a   :  { %2632 = vmatpush.bf16.msra.mxu1 %v5862_v63  ;;  %2660 = vmatpush.bf16.msra.mxu3 %v5838_v45  ;;  %v6078_v62 = vor.u32 %v7164_v57, %v6075_v58  ;;  %v7161_v63 = vld [vmem:[%s10864_s3 + $0xcc] sm:$0xf0] }
 0x23b   :  { %2619 = vmatpush.bf16.msra.mxu0 %v5858_v59  ;;  %v6049_v59 = vld [vmem:[%s10864_s3 + $0xc0] sm:$0xf]  ;;  %2916 = vmatpush.bf16.msrb.mxu2 %v6074_v56  ;;  %v7148_v56 = vld [vmem:[%s10864_s3 + $0x6c] sm:$0xf] }
 0x23c   :  { %v6050_v2 = vor.u32 %v7161_v63, %v6049_v59  ;;  %v6011_v59 = vld [vmem:[%s10864_s3 + $0x78] sm:$0xf0]  ;;  %v7143_v63 = vld [vmem:[%s10864_s3 + $0x44] sm:$0xf] }
 0x23e   :  { %2633 = vmatpush.bf16.msra.mxu1 %v5846_v19  ;;  %2929 = vmatpush.bf16.msrb.mxu3 %v6078_v62  ;;  %v6034_v19 = vor.u32 %v7157_v17, %v6033_v16  ;;  %v7145_v62 = vld [vmem:[%s10864_s3 + $0x4c] sm:$0xf0]  ;;  %v7139_v16 = vld [vmem:[%s10864_s3 + $0x24] sm:$0xf] }
 0x23f   :  { %2620 = vmatpush.bf16.msra.mxu0 %v5842_v15  ;;  %v6062_v15 = vor.u32 %v7160_v10, %v6059_v11 }
 0x242   :  { %2634 = vmatpush.bf16.msra.mxu1 %v5830_v36  ;;  %2930 = vmatpush.bf16.msrb.mxu3 %v6062_v15  ;;  %v7151_v36 = vld [vmem:[%s10864_s3 + $0x84] sm:$0xf]  ;;  %v7141_v15 = vld [vmem:[%s10864_s3 + $0x2c] sm:$0xf0] }
 0x243   :  { %2621 = vmatpush.bf16.msra.mxu0 %v5826_v28  ;;  %v6042_v28 = vor.u32 %v7158_v26, %v6041_v25  ;;  %v6022_v44 = vor.u32 %v7151_v36, %v6019_v37  ;;  %v7140_v25 = vld [vmem:[%s10864_s3 + $0x2c] sm:$0xf]  ;;  %v5979_v26 = vld [vmem:[%s10864_s3 + $0x38] sm:$0xf0]  ;;  %v5961_v36 = vld [vmem:[%s10864_s3 + $0x8] sm:$0xf] }
 0x244   :  { %v7138_v37 = vld [vmem:[%s10864_s3 + $0x14] sm:$0xf0] }
 0x245   :  { %v5962_v42 = vor.u32 %v7138_v37, %v5961_v36  ;;  %v7189_v36 = vld [vmem:[%s10863_s2 + $0xac] sm:$0xf0]  ;;  %v7187_v37 = vld [vmem:[%s10863_s2 + $0xa4] sm:$0xf] }
 0x246   :  { %2903 = vmatpush.bf16.msrb.mxu1 %v6070_v55  ;;  %v7150_v55 = vld [vmem:[%s10864_s3 + $0x74] sm:$0xf0] }
 0x247   :  { %2890 = vmatpush.bf16.msrb.mxu0 %v6066_v51  ;;  %v6010_v58 = vor.u32 %v7150_v55, %v6009_v54 }
 0x24b   :  { %2891 = vmatpush.bf16.msrb.mxu0 %v6050_v2  ;;  %v7146_v2 = vld [vmem:[%s10864_s3 + $0x54] sm:$0xf0] }
 0x24f   :  { %2892 = vmatpush.bf16.msrb.mxu0 %v6034_v19  ;;  %v5971_v19 = vld [vmem:[%s10864_s3 + $0x30] sm:$0xf0] }
 0x295   :  { %v2048_v4 = vpop.f32.mrf.mxu0  ;;  %v2061_v6 = vpop.f32.mrf.mxu1 }
 0x296   :  { %v2095_v8 = vrot.slane %v2048_v4, 2  ;;  %v2096_v9 = vrot.slane %v2061_v6, 2  ;;  %v6057_v4 = vld [vmem:[%s10864_s3 + $0xc8] sm:$0xf] }
 0x298   :  { %v2103_v13 = vadd.f32 %v2095_v8, %v1841_v3  ;;  %v2104_v14 = vadd.f32 %v2096_v9, %v1842_v5  ;;  %v6051_v3 = vld [vmem:[%s10864_s3 + $0xd0] sm:$0xf0]  ;;  %v7162_v5 = vld [vmem:[%s10864_s3 + $0xd4] sm:$0xf0] }
 0x299   :  { %v6054_v8 = vor.u32 %v7159_v0, %v6051_v3  ;;  %v6058_v9 = vor.u32 %v7162_v5, %v6057_v4  ;;  %v5987_v0 = vld [vmem:[%s10864_s3 + $0x50] sm:$0xf0]  ;;  %v7144_v5 = vld [vmem:[%s10864_s3 + $0x4c] sm:$0xf] }
 0x29a   :  { %v2108_v23 = vmul.f32 0.5, %v2103_v13  ;;  %v2112_v24 = vmul.f32 0.5, %v2104_v14  ;;  %v5990_v10 = vor.u32 %v7143_v63, %v5987_v0  ;;  %v2386_v0 = vld [vmem:[#allocation5] sm:$0x3] }
 0x29b   :  { %2904 = vmatpush.bf16.msrb.mxu1 %v6054_v8  ;;  %2917 = vmatpush.bf16.msrb.mxu2 %v6058_v9  ;;  %v2132_v8 = vld [vmem:[%s10866_s1 + $0x20] sm:$0x3]  ;;  %v2133_v9 = vld [vmem:[%s10866_s1 + $0x28] sm:$0x3] }
 0x29c   :  { %7420 = vtanh.f32 %v2108_v23  ;;  %v2074_v33 = vpop.f32.mrf.mxu2  ;;  %v2087_v35 = vpop.f32.mrf.mxu3  ;;  %v2122_v23 = vrot.slane %v2107_v60, 2  ;;  %v6014_v60 = vor.u32 %v7148_v56, %v6011_v59 }
 0x29d   :  { %7422 = vtanh.f32 %v2112_v24  ;;  %v2097_v38 = vrot.slane %v2074_v33, 2  ;;  %v2098_v39 = vrot.slane %v2087_v35, 2  ;;  %v2050_v40 = vpop.f32.mrf.mxu0  ;;  %v2063_v41 = vpop.f32.mrf.mxu1  ;;  %v6038_v24 = vor.u32 %v7155_v20, %v6035_v21  ;;  %v7153_v35 = vld [vmem:[%s10864_s3 + $0x8c] sm:$0xf0]  ;;  %v5977_v20 = vld [vmem:[%s10864_s3 + $0x28] sm:$0xf] }
 0x29e   :  { %v6025_v40 = vld [vmem:[%s10864_s3 + $0x88] sm:$0xf]  ;;  %v7154_v41 = vld [vmem:[%s10864_s3 + $0x94] sm:$0xf0] }
 0x29f   :  { %v2105_v49 = vadd.f32 %v2097_v38, %v1843_v32  ;;  %v2106_v50 = vadd.f32 %v2098_v39, %v1844_v34  ;;  %v6046_v34 = vor.u32 %v7156_v29, %v6043_v30  ;;  %v6018_v39 = vor.u32 %v7153_v35, %v6017_v31  ;;  %2905 = vmatpush.bf16.msrb.mxu1 %v6038_v24  ;;  %v7142_v21 = vld [vmem:[%s10864_s3 + $0x34] sm:$0xf0]  ;;  %v5953_v29 = vld [vmem:[%s10864_s3] sm:$0xf]  ;;  %v7137_v30 = vld [vmem:[%s10864_s3 + $0xc] sm:$0xf0] }
 0x2a0   :  { %2918 = vmatpush.bf16.msrb.mxu2 %v6042_v28  ;;  %v6026_v45 = vor.u32 %v7154_v41, %v6025_v40  ;;  %v5978_v28 = vor.u32 %v7142_v21, %v5977_v20  ;;  %v5955_v35 = vld [vmem:[%s10864_s3 + $0x10] sm:$0xf0]  ;;  %v5954_v40 = vor.u32 %v7137_v30, %v5953_v29  ;;  %v6203_v21 = vld [vmem:[%s10863_s2 + $0xf8] sm:$0xf0]  ;;  %v7194_v29 = vld [vmem:[%s10863_s2 + $0xd4] sm:$0xf0] }
 0x2a1   :  { %7424 = vtanh.f32 %v2105_v49  ;;  %v2117_v61 = vmul.f32 0.5, %v2106_v50  ;;  %2931 = vmatpush.bf16.msrb.mxu3 %v6046_v34  ;;  %v7149_v49 = vld [vmem:[%s10864_s3 + $0x6c] sm:$0xf0]  ;;  %v7147_v50 = vld [vmem:[%s10864_s3 + $0x64] sm:$0xf]  ;;  %2893 = vmatpush.bf16.msrb.mxu0 %v6018_v39 }
 0x2a2   :  { %v7421_v1 = vpop.eup %7420  ;;  %v6002_v53 = vor.u32 %v7149_v49, %v6001_v48  ;;  %v6006_v57 = vor.u32 %v7147_v50, %v6003_v52  ;;  %v7135_v34 = vld [vmem:[%s10864_s3 + $0x4] sm:$0xf]  ;;  %v2135_v39 = vld [vmem:[%s10866_s1 + $0x38] sm:$0x3] }
 0x2a3   :  { %v7423_v6 = vpop.eup %7422  ;;  %v2110_v7 = vmul.f32 0.5, %v7421_v1  ;;  %7426 = vtanh.f32 %v2117_v61  ;;  %2906 = vmatpush.bf16.msrb.mxu1 %v6022_v44  ;;  %v5985_v61 = vld [vmem:[%s10864_s3 + $0x40] sm:$0xf]  ;;  %v5993_v1 = vld [vmem:[%s10864_s3 + $0x48] sm:$0xf]  ;;  %v5958_v41 = vor.u32 %v7135_v34, %v5955_v35 }
 0x2a4   :  { %v2114_v12 = vmul.f32 0.5, %v7423_v6  ;;  %v2076_v13 = vpop.f32.mrf.mxu2  ;;  %v2089_v14 = vpop.f32.mrf.mxu3  ;;  %2919 = vmatpush.bf16.msrb.mxu2 %v6026_v45  ;;  %v5986_v4 = vor.u32 %v7145_v62, %v5985_v61  ;;  %v5995_v6 = vld [vmem:[%s10864_s3 + $0x58] sm:$0xf0]  ;;  %v5994_v11 = vor.u32 %v7146_v2, %v5993_v1  ;;  %v6161_v35 = vld [vmem:[%s10863_s2 + $0xa0] sm:$0xf] }
 0x2a5   :  { %v2111_v18 = vadd.f32 0.5, %v2110_v7  ;;  %2932 = vmatpush.bf16.msrb.mxu3 %v6030_v47  ;;  %2894 = vmatpush.bf16.msrb.mxu0 %v6002_v53  ;;  %v5998_v13 = vor.u32 %v7144_v5, %v5995_v6  ;;  %v5969_v14 = vld [vmem:[%s10864_s3 + $0x20] sm:$0xf]  ;;  %v5963_v44 = vld [vmem:[%s10864_s3 + $0x18] sm:$0xf0] }
 0x2a6   :  { %v2115_v22 = vadd.f32 0.5, %v2114_v12  ;;  %v5970_v24 = vor.u32 %v7141_v15, %v5969_v14  ;;  %v6195_v15 = vld [vmem:[%s10863_s2 + $0xf0] sm:$0xf0] }
 0x2a7   :  { %v7425_v27 = vpop.eup %7424  ;;  %2907 = vmatpush.bf16.msrb.mxu1 %v6006_v57 }
 0x2a8   :  { %v2124_v32 = vmul.f32 %v2122_v23, %v2115_v22  ;;  %v2125_v33 = vmul.f32 %v7425_v27, %v2111_v18  ;;  %2920 = vmatpush.bf16.msrb.mxu2 %v6010_v58  ;;  %v5974_v27 = vor.u32 %v7139_v16, %v5971_v19  ;;  %v7196_v19 = vld [vmem:[%s10863_s2 + $0xec] sm:$0xf] }
 0x2a9   :  { %v7427_v38 = vpop.eup %7426  ;;  %2933 = vmatpush.bf16.msrb.mxu3 %v6014_v60  ;;  %2895 = vmatpush.bf16.msrb.mxu0 %v5986_v4 }
 0x2aa   :  { %v2126_v43 = vadd.f32 %v2125_v33, %v2124_v32  ;;  %v2119_v51 = vmul.f32 0.5, %v7427_v38  ;;  %v5982_v33 = vor.u32 %v7140_v25, %v5979_v26  ;;  %v2134_v38 = vld [vmem:[%s10866_s1 + $0x30] sm:$0x3]  ;;  %v7191_v25 = vld [vmem:[%s10863_s2 + $0xc4] sm:$0xf] }
 0x2ab   :  { %2908 = vmatpush.bf16.msrb.mxu1 %v5990_v10 }
 0x2ac   :  { %7428 = vtanh.f32 %v2126_v43  ;;  %2130 = vst [vmem:[#allocation3 - $0x6] sm:$0xc0] %v2126_v43  ;;  %v2120_v3 = vadd.f32 0.5, %v2119_v51  ;;  %2921 = vmatpush.bf16.msrb.mxu2 %v5994_v11  ;;  %v7136_v43 = vld [vmem:[%s10864_s3 + $0xc] sm:$0xf] }
 0x2ad   :  { %2934 = vmatpush.bf16.msrb.mxu3 %v5998_v13  ;;  %2896 = vmatpush.bf16.msrb.mxu0 %v5970_v24  ;;  %v5966_v53 = vor.u32 %v7136_v43, %v5963_v44  ;;  %v6193_v11 = vld [vmem:[%s10863_s2 + $0xe0] sm:$0xf]  ;;  %v7195_v13 = vld [vmem:[%s10863_s2 + $0xe4] sm:$0xf]  ;;  %v7193_v24 = vld [vmem:[%s10863_s2 + $0xcc] sm:$0xf0] }
 0x2ae   :  { %v6198_v16 = vor.u32 %v7195_v13, %v6195_v15  ;;  %v7188_v44 = vld [vmem:[%s10863_s2 + $0xac] sm:$0xf]  ;;  %v6115_v15 = vld [vmem:[%s10863_s2 + $0x50] sm:$0xf0] }
 0x2af   :  { %2909 = vmatpush.bf16.msrb.mxu1 %v5974_v27  ;;  %v6179_v27 = vld [vmem:[%s10863_s2 + $0xd0] sm:$0xf0] }
 0x2b0   :  { %2922 = vmatpush.bf16.msrb.mxu2 %v5978_v28  ;;  %v6185_v28 = vld [vmem:[%s10863_s2 + $0xc8] sm:$0xf]  ;;  %v6182_v30 = vor.u32 %v7191_v25, %v6179_v27  ;;  %v2418_v27 = vld [vmem:[%s10865_s0 + $0x30] sm:$0x3] }
 0x2b1   :  { %2935 = vmatpush.bf16.msrb.mxu3 %v5982_v33  ;;  %2897 = vmatpush.bf16.msrb.mxu0 %v5954_v40  ;;  %v6187_v33 = vld [vmem:[%s10863_s2 + $0xd8] sm:$0xf0]  ;;  %v6169_v40 = vld [vmem:[%s10863_s2 + $0xa8] sm:$0xf] }
 0x2b2   :  { %v7429_v7 = vpop.eup %7428 }
 0x2b3   :  { %v2128_v12 = vmul.f32 %v7429_v7, %v2120_v3  ;;  %2910 = vmatpush.bf16.msrb.mxu1 %v5958_v41  ;;  %v7190_v41 = vld [vmem:[%s10863_s2 + $0xb4] sm:$0xf0] }
 0x2b4   :  { %2923 = vmatpush.bf16.msrb.mxu2 %v5962_v42  ;;  %v6170_v43 = vor.u32 %v7190_v41, %v6169_v40 }
 0x2b5   :  { %v2339_v17 = vpop.f32.mrf.mxu0  ;;  %v2352_v18 = vpop.f32.mrf.mxu1  ;;  %2129 = vst [vmem:[#allocation2 - $0x6] sm:$0xc0] %v2128_v12  ;;  %2936 = vmatpush.bf16.msrb.mxu3 %v5966_v53  ;;  %v7186_v53 = vld [vmem:[%s10863_s2 + $0x94] sm:$0xf0] }
 0x2b6   :  { %v2382_v22 = vadd.f32 %v2339_v17, %v2132_v8  ;;  %v2383_v23 = vadd.f32 %v2352_v18, %v2133_v9  ;;  %2131 = vst [vmem:[%s10867_s4] sm:$0xc0] %v2128_v12  ;;  %v7197_v12 = vld [vmem:[%s10863_s2 + $0xec] sm:$0xf0]  ;;  %v6201_v17 = vld [vmem:[%s10863_s2 + $0xe8] sm:$0xf] }
 0x2b7   :  { %v6194_v14 = vor.u32 %v7197_v12, %v6193_v11  ;;  %v7198_v18 = vld [vmem:[%s10863_s2 + $0xf4] sm:$0xf0]  ;;  %v7175_v11 = vld [vmem:[%s10863_s2 + $0x44] sm:$0xf] }
 0x2b8   :  { %v2387_v31 = vmul.f32 0.5, %v2382_v22  ;;  %v2391_v32 = vmul.f32 0.5, %v2383_v23  ;;  %v6202_v20 = vor.u32 %v7198_v18, %v6201_v17  ;;  %v6206_v22 = vor.u32 %v7196_v19, %v6203_v21  ;;  %v6177_v23 = vld [vmem:[%s10863_s2 + $0xc0] sm:$0xf]  ;;  %v7178_v17 = vld [vmem:[%s10863_s2 + $0x54] sm:$0xf0] }
 0x2b9   :  { %v6178_v26 = vor.u32 %v7193_v24, %v6177_v23  ;;  %v6123_v23 = vld [vmem:[%s10863_s2 + $0x58] sm:$0xf0] }
 0x2ba   :  { %7430 = vtanh.f32 %v2387_v31  ;;  %v6186_v31 = vor.u32 %v7194_v29, %v6185_v28  ;;  %v6097_v28 = vld [vmem:[%s10863_s2 + $0x20] sm:$0xf]  ;;  %v7173_v29 = vld [vmem:[%s10863_s2 + $0x2c] sm:$0xf0] }
 0x2bb   :  { %7432 = vtanh.f32 %v2391_v32  ;;  %v7192_v32 = vld [vmem:[%s10863_s2 + $0xcc] sm:$0xf] }
 0x2bc   :  { %v2365_v45 = vpop.f32.mrf.mxu2  ;;  %v2378_v46 = vpop.f32.mrf.mxu3  ;;  %v2420_v51 = vld [vmem:[#allocation2] sm:$0x3]  ;;  %v6190_v34 = vor.u32 %v7192_v32, %v6187_v33  ;;  %v6099_v32 = vld [vmem:[%s10863_s2 + $0x30] sm:$0xf0]  ;;  %v6105_v33 = vld [vmem:[%s10863_s2 + $0x28] sm:$0xf] }
 0x2bd   :  { %v2384_v47 = vadd.f32 %v2365_v45, %v2134_v38  ;;  %v2385_v48 = vadd.f32 %v2378_v46, %v2135_v39  ;;  %v2341_v49 = vpop.f32.mrf.mxu0  ;;  %v2354_v50 = vpop.f32.mrf.mxu1  ;;  %v2421_v52 = vpack.c.bf16 %v2420_v51, %v2420_v51  ;;  %v6162_v38 = vor.u32 %v7189_v36, %v6161_v35  ;;  %v6163_v39 = vld [vmem:[%s10863_s2 + $0xb0] sm:$0xf0]  ;;  %v6171_v45 = vld [vmem:[%s10863_s2 + $0xb8] sm:$0xf0]  ;;  %v7174_v36 = vld [vmem:[%s10863_s2 + $0x34] sm:$0xf0] }
 0x2be   :  { %v6166_v42 = vor.u32 %v7187_v37, %v6163_v39  ;;  %v6174_v46 = vor.u32 %v7188_v44, %v6171_v45  ;;  %v7183_v49 = vld [vmem:[%s10863_s2 + $0x84] sm:$0xf]  ;;  %v6147_v51 = vld [vmem:[%s10863_s2 + $0x90] sm:$0xf0]  ;;  %v7172_v37 = vld [vmem:[%s10863_s2 + $0x2c] sm:$0xf] }
 0x2bf   :  { %7434 = vtanh.f32 %v2384_v47  ;;  %v2396_v54 = vmul.f32 0.5, %v2385_v48  ;;  %2622 = vmatmul.bf16.vlgmr.msra.gmra.mxu0 %v2421_v52  ;;  %2635 = vmatmul.bf16.vlgmr.msra.gmra.mxu1 %v2421_v52  ;;  %v6145_v47 = vld [vmem:[%s10863_s2 + $0x80] sm:$0xf]  ;;  %v7185_v48 = vld [vmem:[%s10863_s2 + $0x8c] sm:$0xf0] }
 0x2c0   :  { %v7431_v55 = vpop.eup %7430  ;;  %2648 = vmatmul.bf16.vlgmr.msra.gmra.mxu2 %v2421_v52  ;;  %2661 = vmatmul.bf16.vlgmr.msra.gmra.mxu3 %v2421_v52  ;;  %v6146_v50 = vor.u32 %v7185_v48, %v6145_v47  ;;  %v6153_v52 = vld [vmem:[%s10863_s2 + $0x88] sm:$0xf]  ;;  %v6107_v39 = vld [vmem:[%s10863_s2 + $0x38] sm:$0xf0]  ;;  %v7169_v44 = vld [vmem:[%s10863_s2 + $0xc] sm:$0xf0] }
 0x2c1   :  { %v7433_v56 = vpop.eup %7432  ;;  %v2389_v57 = vmul.f32 0.5, %v7431_v55  ;;  %7436 = vtanh.f32 %v2396_v54  ;;  %3195 = vmatpush.bf16.msra.mxu0 %v6194_v14  ;;  %3208 = vmatpush.bf16.msra.mxu1 %v6198_v16  ;;  %v6150_v54 = vor.u32 %v7183_v49, %v6147_v51  ;;  %v6154_v55 = vor.u32 %v7186_v53, %v6153_v52  ;;  %v6121_v16 = vld [vmem:[%s10863_s2 + $0x48] sm:$0xf]  ;;  %v7167_v45 = vld [vmem:[%s10863_s2 + $0x4] sm:$0xf] }
 0x2c2   :  { %v2393_v58 = vmul.f32 0.5, %v7433_v56  ;;  %3221 = vmatpush.bf16.msra.mxu2 %v6202_v20  ;;  %3234 = vmatpush.bf16.msra.mxu3 %v6206_v22  ;;  %v7184_v56 = vld [vmem:[%s10863_s2 + $0x8c] sm:$0xf]  ;;  %v6118_v20 = vor.u32 %v7175_v11, %v6115_v15  ;;  %v6122_v21 = vor.u32 %v7178_v17, %v6121_v16  ;;  %v6083_v51 = vld [vmem:[%s10863_s2 + $0x10] sm:$0xf0] }
 0x2c3   :  { %v2390_v59 = vadd.f32 0.5, %v2389_v57  ;;  %v6155_v57 = vld [vmem:[%s10863_s2 + $0x98] sm:$0xf0]  ;;  %v7176_v22 = vld [vmem:[%s10863_s2 + $0x4c] sm:$0xf] }
 0x2c4   :  { %v2394_v60 = vadd.f32 0.5, %v2393_v58  ;;  %v2367_v61 = vpop.f32.mrf.mxu2  ;;  %v2380_v62 = vpop.f32.mrf.mxu3  ;;  %v6158_v58 = vor.u32 %v7184_v56, %v6155_v57  ;;  %v6126_v24 = vor.u32 %v7176_v22, %v6123_v23  ;;  %v6089_v52 = vld [vmem:[%s10863_s2 + $0x8] sm:$0xf]  ;;  %v7170_v53 = vld [vmem:[%s10863_s2 + $0x14] sm:$0xf0] }
 0x2c5   :  { %v7435_v63 = vpop.eup %7434  ;;  %3196 = vmatpush.bf16.msra.mxu0 %v6178_v26  ;;  %3209 = vmatpush.bf16.msra.mxu1 %v6182_v30  ;;  %v7179_v61 = vld [vmem:[%s10863_s2 + $0x64] sm:$0xf]  ;;  %v6098_v30 = vor.u32 %v7173_v29, %v6097_v28  ;;  %v7168_v56 = vld [vmem:[%s10863_s2 + $0xc] sm:$0xf]  ;;  %v6091_v57 = vld [vmem:[%s10863_s2 + $0x18] sm:$0xf0] }
 0x2c6   :  { %v2400_v1 = vmul.f32 %v2394_v60, %v2386_v0  ;;  %v2401_v2 = vmul.f32 %v7435_v63, %v2390_v59  ;;  %3222 = vmatpush.bf16.msra.mxu2 %v6186_v31  ;;  %3235 = vmatpush.bf16.msra.mxu3 %v6190_v34  ;;  %v6129_v59 = vld [vmem:[%s10863_s2 + $0x60] sm:$0xf]  ;;  %v7181_v60 = vld [vmem:[%s10863_s2 + $0x6c] sm:$0xf0]  ;;  %v6131_v63 = vld [vmem:[%s10863_s2 + $0x70] sm:$0xf0] }
 0x2c7   :  { %v7437_v3 = vpop.eup %7436  ;;  %v6130_v62 = vor.u32 %v7181_v60, %v6129_v59  ;;  %v6137_v0 = vld [vmem:[%s10863_s2 + $0x68] sm:$0xf]  ;;  %v7171_v31 = vld [vmem:[%s10863_s2 + $0x24] sm:$0xf]  ;;  %v2419_v34 = vld [vmem:[%s10865_s0 + $0x38] sm:$0x3]  ;;  %v6094_v59 = vor.u32 %v7168_v56, %v6091_v57 }
 0x2c8   :  { %v2402_v4 = vadd.f32 %v2401_v2, %v2400_v1  ;;  %v2398_v5 = vmul.f32 0.5, %v7437_v3  ;;  %v7182_v1 = vld [vmem:[%s10863_s2 + $0x74] sm:$0xf0]  ;;  %v6134_v2 = vor.u32 %v7179_v61, %v6131_v63  ;;  %v6102_v35 = vor.u32 %v7171_v31, %v6099_v32  ;;  %v6321_v60 = vld [vmem:[%s10864_s3 + $0xe0] sm:$0xf] }
 0x2c9   :  { %3197 = vmatpush.bf16.msra.mxu0 %v6162_v38  ;;  %3210 = vmatpush.bf16.msra.mxu1 %v6166_v42  ;;  %v6138_v3 = vor.u32 %v7182_v1, %v6137_v0  ;;  %v6106_v38 = vor.u32 %v7174_v36, %v6105_v33  ;;  %v6110_v42 = vor.u32 %v7172_v37, %v6107_v39  ;;  %v7229_v61 = vld [vmem:[%s10864_s3 + $0xec] sm:$0xf0]  ;;  %v7227_v0 = vld [vmem:[%s10864_s3 + $0xe4] sm:$0xf]  ;;  %v6307_v22 = vld [vmem:[%s10864_s3 + $0xd0] sm:$0xf0] }
 0x2ca   :  { %7438 = vtanh.f32 %v2402_v4  ;;  %2414 = vst [vmem:[#allocation5] sm:$0x3] %v2402_v4  ;;  %v2399_v6 = vadd.f32 0.5, %v2398_v5  ;;  %3223 = vmatpush.bf16.msra.mxu2 %v6170_v43  ;;  %3236 = vmatpush.bf16.msra.mxu3 %v6174_v46  ;;  %v7180_v4 = vld [vmem:[%s10863_s2 + $0x6c] sm:$0xf]  ;;  %v6322_v63 = vor.u32 %v7229_v61, %v6321_v60 }
 0x2cb   :  { %v6139_v5 = vld [vmem:[%s10863_s2 + $0x78] sm:$0xf0]  ;;  %v6081_v43 = vld [vmem:[%s10863_s2] sm:$0xf]  ;;  %v6313_v23 = vld [vmem:[%s10864_s3 + $0xc8] sm:$0xf] }
 0x2cc   :  { %v7224_v29 = vld [vmem:[%s10864_s3 + $0xcc] sm:$0xf]  ;;  %v6289_v33 = vld [vmem:[%s10864_s3 + $0xa0] sm:$0xf]  ;;  %v6297_v39 = vld [vmem:[%s10864_s3 + $0xa8] sm:$0xf] }
 0x2cd   :  { %3198 = vmatpush.bf16.msra.mxu0 %v6146_v50  ;;  %3211 = vmatpush.bf16.msra.mxu1 %v6150_v54  ;;  %v6082_v50 = vor.u32 %v7169_v44, %v6081_v43  ;;  %v6086_v54 = vor.u32 %v7167_v45, %v6083_v51  ;;  %v6299_v43 = vld [vmem:[%s10864_s3 + $0xb8] sm:$0xf0]  ;;  %v6275_v51 = vld [vmem:[%s10864_s3 + $0x90] sm:$0xf0]  ;;  %v7216_v56 = vld [vmem:[%s10864_s3 + $0x8c] sm:$0xf] }
 0x2ce   :  { %3224 = vmatpush.bf16.msra.mxu2 %v6154_v55  ;;  %3237 = vmatpush.bf16.msra.mxu3 %v6158_v58  ;;  %v6090_v55 = vor.u32 %v7170_v53, %v6089_v52  ;;  %v6281_v52 = vld [vmem:[%s10864_s3 + $0x88] sm:$0xf]  ;;  %v7218_v53 = vld [vmem:[%s10864_s3 + $0x94] sm:$0xf0]  ;;  %v6283_v57 = vld [vmem:[%s10864_s3 + $0x98] sm:$0xf0] }
 0x2cf   :  { %v6257_v60 = vld [vmem:[%s10864_s3 + $0x60] sm:$0xf]  ;;  %v7213_v61 = vld [vmem:[%s10864_s3 + $0x6c] sm:$0xf0] }
 0x2d0   :  { %v7439_v7 = vpop.eup %7438 }
 0x2d1   :  { %v2404_v8 = vmul.f32 %v7439_v7, %v2399_v6  ;;  %v2416_v6 = vld [vmem:[%s10865_s0 + $0x20] sm:$0x3]  ;;  %v2417_v7 = vld [vmem:[%s10865_s0 + $0x28] sm:$0x3]  ;;  %3199 = vmatpush.bf16.msra.mxu0 %v6130_v62  ;;  %3212 = vmatpush.bf16.msra.mxu1 %v6134_v2 }
 0x2d2   :  { %3225 = vmatpush.bf16.msra.mxu2 %v6138_v3  ;;  %v6323_v3 = vld [vmem:[%s10864_s3 + $0xf0] sm:$0xf0] }
 0x2d3   :  { %2411 = vst [vmem:[#allocation4] sm:$0x3] %v2404_v8 }
 0x2d4   :  { %2415 = vst [vmem:[%s10868_s5 + $0x8] sm:$0x3] %v2404_v8  ;;  %v6142_v8 = vor.u32 %v7180_v4, %v6139_v5  ;;  %v6329_v4 = vld [vmem:[%s10864_s3 + $0xe8] sm:$0xf] }
 0x2d5   :  { %3213 = vmatpush.bf16.msra.mxu1 %v6118_v20 }
 0x2d6   :  { %3238 = vmatpush.bf16.msra.mxu3 %v6142_v8  ;;  %3226 = vmatpush.bf16.msra.mxu2 %v6122_v21  ;;  %v7228_v8 = vld [vmem:[%s10864_s3 + $0xec] sm:$0xf] }
 0x2d9   :  { %3214 = vmatpush.bf16.msra.mxu1 %v6102_v35  ;;  %v7219_v35 = vld [vmem:[%s10864_s3 + $0xa4] sm:$0xf] }
 0x2da   :  { %v2696_v9 = vld [vmem:[#allocation4] sm:$0x3]  ;;  %3239 = vmatpush.bf16.msra.mxu3 %v6126_v24  ;;  %3227 = vmatpush.bf16.msra.mxu2 %v6106_v38  ;;  %v7226_v24 = vld [vmem:[%s10864_s3 + $0xd4] sm:$0xf0]  ;;  %v6291_v38 = vld [vmem:[%s10864_s3 + $0xb0] sm:$0xf0] }
 0x2db   :  { %v2697_v10 = vpack.c.bf16 %v2696_v9, %v2696_v9  ;;  %v6113_v9 = vld [vmem:[%s10863_s2 + $0x40] sm:$0xf]  ;;  %v6314_v28 = vor.u32 %v7226_v24, %v6313_v23  ;;  %v6249_v23 = vld [vmem:[%s10864_s3 + $0x48] sm:$0xf]  ;;  %v7210_v24 = vld [vmem:[%s10864_s3 + $0x54] sm:$0xf0] }
 0x2dd   :  { %2898 = vmatmul.bf16.vlgmr.msrb.gmra.mxu0 %v2697_v10  ;;  %2911 = vmatmul.bf16.vlgmr.msrb.gmra.mxu1 %v2697_v10 }
 0x2de   :  { %2924 = vmatmul.bf16.vlgmr.msrb.gmra.mxu2 %v2697_v10  ;;  %2937 = vmatmul.bf16.vlgmr.msrb.gmra.mxu3 %v2697_v10  ;;  %v7177_v10 = vld [vmem:[%s10863_s2 + $0x4c] sm:$0xf0] }
 0x2df   :  { %v6114_v14 = vor.u32 %v7177_v10, %v6113_v9  ;;  %3240 = vmatpush.bf16.msra.mxu3 %v6110_v42  ;;  %3215 = vmatpush.bf16.msra.mxu1 %v6086_v54  ;;  %v2670_v10 = vld [vmem:[#allocation3] sm:$0x3]  ;;  %v7220_v42 = vld [vmem:[%s10864_s3 + $0xac] sm:$0xf] }
 0x2e0   :  { %3228 = vmatpush.bf16.msra.mxu2 %v6090_v55  ;;  %v6282_v55 = vor.u32 %v7218_v53, %v6281_v52  ;;  %v7201_v52 = vld [vmem:[%s10864_s3 + $0xc] sm:$0xf0] }
 0x2e1   :  { %3200 = vmatpush.bf16.msra.mxu0 %v6114_v14 }
 0x2e3   :  { %3241 = vmatpush.bf16.msra.mxu3 %v6094_v59  ;;  %v6286_v59 = vor.u32 %v7216_v56, %v6283_v57  ;;  %v7199_v56 = vld [vmem:[%s10864_s3 + $0x4] sm:$0xf]  ;;  %v6211_v57 = vld [vmem:[%s10864_s3 + $0x10] sm:$0xf0] }
 0x2e5   :  { %3201 = vmatpush.bf16.msra.mxu0 %v6098_v30  ;;  %v6315_v30 = vld [vmem:[%s10864_s3 + $0xd8] sm:$0xf0] }
 0x2e6   :  { %v6318_v32 = vor.u32 %v7224_v29, %v6315_v30  ;;  %v6225_v29 = vld [vmem:[%s10864_s3 + $0x20] sm:$0xf] }
 0x2e9   :  { %3202 = vmatpush.bf16.msra.mxu0 %v6082_v50 }
 0x2ed   :  { %3486 = vmatpush.bf16.msrb.mxu0 %v6322_v63 }
 0x33c   :  { %v2623_v12 = vpop.f32.mrf.mxu0  ;;  %v2636_v13 = vpop.f32.mrf.mxu1 }
 0x33d   :  { %v2666_v18 = vadd.f32 %v2623_v12, %v2416_v6  ;;  %v2667_v19 = vadd.f32 %v2636_v13, %v2417_v7  ;;  %v6326_v6 = vor.u32 %v7227_v0, %v6323_v3  ;;  %v7230_v7 = vld [vmem:[%s10864_s3 + $0xf4] sm:$0xf0]  ;;  %v6331_v12 = vld [vmem:[%s10864_s3 + $0xf8] sm:$0xf0]  ;;  %v6305_v13 = vld [vmem:[%s10864_s3 + $0xc0] sm:$0xf]  ;;  %v6258_v0 = vor.u32 %v7213_v61, %v6257_v60 }
 0x33e   :  { %v6330_v11 = vor.u32 %v7230_v7, %v6329_v4  ;;  %v6334_v17 = vor.u32 %v7228_v8, %v6331_v12  ;;  %v7214_v3 = vld [vmem:[%s10864_s3 + $0x74] sm:$0xf0]  ;;  %v7212_v7 = vld [vmem:[%s10864_s3 + $0x6c] sm:$0xf]  ;;  %v6267_v8 = vld [vmem:[%s10864_s3 + $0x78] sm:$0xf0] }
 0x33f   :  { %v2671_v25 = vmul.f32 0.5, %v2666_v18  ;;  %v2675_v26 = vmul.f32 0.5, %v2667_v19  ;;  %3499 = vmatpush.bf16.msrb.mxu1 %v6326_v6  ;;  %v7225_v18 = vld [vmem:[%s10864_s3 + $0xcc] sm:$0xf0]  ;;  %v7223_v19 = vld [vmem:[%s10864_s3 + $0xc4] sm:$0xf] }
 0x340   :  { %3512 = vmatpush.bf16.msrb.mxu2 %v6330_v11  ;;  %v6306_v21 = vor.u32 %v7225_v18, %v6305_v13  ;;  %3525 = vmatpush.bf16.msrb.mxu3 %v6334_v17  ;;  %v2693_v11 = vld [vmem:[%s10866_s1 + $0x8] sm:$0xc0]  ;;  %v6270_v13 = vor.u32 %v7212_v7, %v6267_v8  ;;  %v7209_v17 = vld [vmem:[%s10864_s3 + $0x4c] sm:$0xf0]  ;;  %v7207_v18 = vld [vmem:[%s10864_s3 + $0x44] sm:$0xf] }
 0x341   :  { %7440 = vtanh.f32 %v2671_v25  ;;  %v2958_v8 = vld [vmem:[#allocation5] sm:$0x3] }
 0x342   :  { %7442 = vtanh.f32 %v2675_v26  ;;  %3487 = vmatpush.bf16.msrb.mxu0 %v6306_v21 }
 0x343   :  { %v2649_v40 = vpop.f32.mrf.mxu2  ;;  %v2662_v41 = vpop.f32.mrf.mxu3 }
 0x344   :  { %v2668_v46 = vadd.f32 %v2649_v40, %v2418_v27  ;;  %v2669_v47 = vadd.f32 %v2662_v41, %v2419_v34  ;;  %v2625_v48 = vpop.f32.mrf.mxu0  ;;  %v2638_v49 = vpop.f32.mrf.mxu1  ;;  %v6310_v27 = vor.u32 %v7223_v19, %v6307_v22  ;;  %v7221_v34 = vld [vmem:[%s10864_s3 + $0xac] sm:$0xf0]  ;;  %3513 = vmatpush.bf16.msrb.mxu2 %v6314_v28  ;;  %v6294_v40 = vor.u32 %v7219_v35, %v6291_v38  ;;  %v7222_v41 = vld [vmem:[%s10864_s3 + $0xb4] sm:$0xf0]  ;;  %v6243_v22 = vld [vmem:[%s10864_s3 + $0x50] sm:$0xf0] }
 0x345   :  { %v6290_v37 = vor.u32 %v7221_v34, %v6289_v33  ;;  %3526 = vmatpush.bf16.msrb.mxu3 %v6318_v32  ;;  %v6298_v45 = vor.u32 %v7222_v41, %v6297_v39  ;;  %v7217_v48 = vld [vmem:[%s10864_s3 + $0x8c] sm:$0xf0]  ;;  %v7215_v49 = vld [vmem:[%s10864_s3 + $0x84] sm:$0xf]  ;;  %v6251_v28 = vld [vmem:[%s10864_s3 + $0x58] sm:$0xf0] }
 0x346   :  { %7444 = vtanh.f32 %v2668_v46  ;;  %v2680_v58 = vmul.f32 0.5, %v2669_v47  ;;  %3500 = vmatpush.bf16.msrb.mxu1 %v6310_v27  ;;  %v6302_v46 = vor.u32 %v7220_v42, %v6299_v43  ;;  %v6273_v47 = vld [vmem:[%s10864_s3 + $0x80] sm:$0xf]  ;;  %v6278_v54 = vor.u32 %v7215_v49, %v6275_v51  ;;  %v7208_v27 = vld [vmem:[%s10864_s3 + $0x4c] sm:$0xf] }
 0x347   :  { %v7441_v62 = vpop.eup %7440  ;;  %3488 = vmatpush.bf16.msrb.mxu0 %v6290_v37  ;;  %v6274_v50 = vor.u32 %v7217_v48, %v6273_v47  ;;  %v2694_v32 = vld [vmem:[%s10866_s1 + $0x10] sm:$0xc0]  ;;  %v2695_v33 = vld [vmem:[%s10866_s1 + $0x18] sm:$0xc0]  ;;  %v6254_v34 = vor.u32 %v7208_v27, %v6251_v28  ;;  %v7205_v35 = vld [vmem:[%s10864_s3 + $0x2c] sm:$0xf0] }
 0x348   :  { %v7443_v1 = vpop.eup %7442  ;;  %v2673_v2 = vmul.f32 0.5, %v7441_v62  ;;  %7446 = vtanh.f32 %v2680_v58  ;;  %3514 = vmatpush.bf16.msrb.mxu2 %v6298_v45  ;;  %v7211_v62 = vld [vmem:[%s10864_s3 + $0x64] sm:$0xf]  ;;  %v6226_v37 = vor.u32 %v7205_v35, %v6225_v29  ;;  %v6227_v38 = vld [vmem:[%s10864_s3 + $0x30] sm:$0xf0] }
 0x349   :  { %v2677_v5 = vmul.f32 0.5, %v7443_v1  ;;  %3527 = vmatpush.bf16.msrb.mxu3 %v6302_v46  ;;  %v6259_v1 = vld [vmem:[%s10864_s3 + $0x70] sm:$0xf0]  ;;  %v6233_v39 = vld [vmem:[%s10864_s3 + $0x28] sm:$0xf] }
 0x34a   :  { %v2674_v9 = vadd.f32 0.5, %v2673_v2  ;;  %3501 = vmatpush.bf16.msrb.mxu1 %v6294_v40  ;;  %v6265_v2 = vld [vmem:[%s10864_s3 + $0x68] sm:$0xf]  ;;  %v7206_v40 = vld [vmem:[%s10864_s3 + $0x34] sm:$0xf0] }
 0x34b   :  { %v2678_v14 = vadd.f32 0.5, %v2677_v5  ;;  %v2651_v15 = vpop.f32.mrf.mxu2  ;;  %v2664_v16 = vpop.f32.mrf.mxu3  ;;  %3489 = vmatpush.bf16.msrb.mxu0 %v6274_v50  ;;  %v6262_v5 = vor.u32 %v7211_v62, %v6259_v1  ;;  %v6266_v6 = vor.u32 %v7214_v3, %v6265_v2  ;;  %v6235_v45 = vld [vmem:[%s10864_s3 + $0x38] sm:$0xf0]  ;;  %v6209_v46 = vld [vmem:[%s10864_s3] sm:$0xf]  ;;  %v6214_v62 = vor.u32 %v7199_v56, %v6211_v57 }
 0x34c   :  { %v7445_v20 = vpop.eup %7444  ;;  %3515 = vmatpush.bf16.msrb.mxu2 %v6282_v55  ;;  %v6241_v16 = vld [vmem:[%s10864_s3 + $0x40] sm:$0xf]  ;;  %v6210_v61 = vor.u32 %v7201_v52, %v6209_v46  ;;  %v6219_v1 = vld [vmem:[%s10864_s3 + $0x18] sm:$0xf0]  ;;  %v7261_v27 = vld [vmem:[%s10863_s2 + $0xec] sm:$0xf0] }
 0x34d   :  { %v2684_v25 = vmul.f32 %v2678_v14, %v2670_v10  ;;  %v2685_v26 = vmul.f32 %v7445_v20, %v2674_v9  ;;  %v2692_v9 = vld [vmem:[%s10866_s1] sm:$0xc0]  ;;  %3528 = vmatpush.bf16.msrb.mxu3 %v6286_v59  ;;  %v6242_v21 = vor.u32 %v7209_v17, %v6241_v16  ;;  %v7254_v56 = vld [vmem:[%s10863_s2 + $0xb4] sm:$0xf0] }
 0x34e   :  { %v7447_v31 = vpop.eup %7446  ;;  %3502 = vmatpush.bf16.msrb.mxu1 %v6278_v54  ;;  %v6234_v54 = vor.u32 %v7206_v40, %v6233_v39  ;;  %v7259_v28 = vld [vmem:[%s10863_s2 + $0xe4] sm:$0xf]  ;;  %v7257_v39 = vld [vmem:[%s10863_s2 + $0xcc] sm:$0xf0] }
 0x34f   :  { %v2686_v36 = vadd.f32 %v2685_v26, %v2684_v25  ;;  %v2682_v44 = vmul.f32 0.5, %v7447_v31  ;;  %3490 = vmatpush.bf16.msrb.mxu0 %v6258_v0  ;;  %v6246_v25 = vor.u32 %v7207_v18, %v6243_v22  ;;  %v6250_v26 = vor.u32 %v7210_v24, %v6249_v23  ;;  %v7200_v0 = vld [vmem:[%s10864_s3 + $0xc] sm:$0xf]  ;;  %v7255_v40 = vld [vmem:[%s10863_s2 + $0xc4] sm:$0xf] }
 0x350   :  { %3516 = vmatpush.bf16.msrb.mxu2 %v6266_v6  ;;  %v7251_v52 = vld [vmem:[%s10863_s2 + $0xa4] sm:$0xf] }
 0x351   :  { %7448 = vtanh.f32 %v2686_v36  ;;  %2690 = vst [vmem:[#allocation3] sm:$0x3] %v2686_v36  ;;  %v2683_v58 = vadd.f32 0.5, %v2682_v44  ;;  %3529 = vmatpush.bf16.msrb.mxu3 %v6270_v13  ;;  %v7203_v36 = vld [vmem:[%s10864_s3 + $0x24] sm:$0xf] }
 0x352   :  { %3503 = vmatpush.bf16.msrb.mxu1 %v6262_v5  ;;  %v6230_v43 = vor.u32 %v7203_v36, %v6227_v38  ;;  %v7204_v44 = vld [vmem:[%s10864_s3 + $0x2c] sm:$0xf]  ;;  %v6222_v5 = vor.u32 %v7200_v0, %v6219_v1  ;;  %v6459_v36 = vld [vmem:[%s10863_s2 + $0xf8] sm:$0xf0]  ;;  %v6433_v38 = vld [vmem:[%s10863_s2 + $0xc0] sm:$0xf] }
 0x353   :  { %3491 = vmatpush.bf16.msrb.mxu0 %v6242_v21  ;;  %v6238_v55 = vor.u32 %v7204_v44, %v6235_v45  ;;  %v7258_v44 = vld [vmem:[%s10863_s2 + $0xd4] sm:$0xf0]  ;;  %v7247_v0 = vld [vmem:[%s10863_s2 + $0x84] sm:$0xf] }
 0x354   :  { %3517 = vmatpush.bf16.msrb.mxu2 %v6250_v26  ;;  %v6449_v26 = vld [vmem:[%s10863_s2 + $0xe0] sm:$0xf] }
 0x355   :  { %3530 = vmatpush.bf16.msrb.mxu3 %v6254_v34  ;;  %v6450_v29 = vor.u32 %v7261_v27, %v6449_v26  ;;  %v7260_v34 = vld [vmem:[%s10863_s2 + $0xec] sm:$0xf]  ;;  %v6369_v26 = vld [vmem:[%s10863_s2 + $0x40] sm:$0xf]  ;;  %v7241_v27 = vld [vmem:[%s10863_s2 + $0x4c] sm:$0xf0] }
 0x356   :  { %3504 = vmatpush.bf16.msrb.mxu1 %v6246_v25 }
 0x357   :  { %v7449_v63 = vpop.eup %7448  ;;  %3492 = vmatpush.bf16.msrb.mxu0 %v6226_v37  ;;  %v6462_v37 = vor.u32 %v7260_v34, %v6459_v36  ;;  %v7240_v36 = vld [vmem:[%s10863_s2 + $0x4c] sm:$0xf] }
 0x358   :  { %v2688_v4 = vmul.f32 %v7449_v63, %v2683_v58  ;;  %v6217_v58 = vld [vmem:[%s10864_s3 + $0x8] sm:$0xf]  ;;  %v7202_v63 = vld [vmem:[%s10864_s3 + $0x14] sm:$0xf0]  ;;  %3518 = vmatpush.bf16.msrb.mxu2 %v6234_v54  ;;  %v6419_v54 = vld [vmem:[%s10863_s2 + $0xb0] sm:$0xf0] }
 0x359   :  { %3531 = vmatpush.bf16.msrb.mxu3 %v6238_v55  ;;  %v6425_v55 = vld [vmem:[%s10863_s2 + $0xa8] sm:$0xf]  ;;  %v6422_v57 = vor.u32 %v7251_v52, %v6419_v54  ;;  %v7236_v52 = vld [vmem:[%s10863_s2 + $0x2c] sm:$0xf] }
 0x35a   :  { %v2899_v10 = vpop.f32.mrf.mxu0  ;;  %v2912_v12 = vpop.f32.mrf.mxu1  ;;  %2689 = vst [vmem:[#allocation2] sm:$0x3] %v2688_v4  ;;  %3505 = vmatpush.bf16.msrb.mxu1 %v6230_v43  ;;  %v6441_v43 = vld [vmem:[%s10863_s2 + $0xc8] sm:$0xf] }
 0x35b   :  { %v2946_v14 = vrot.slane %v2899_v10, 2  ;;  %v2947_v15 = vrot.slane %v2912_v12, 2  ;;  %2691 = vst [vmem:[%s10867_s4 + $0x8] sm:$0x3] %v2688_v4  ;;  %v6218_v4 = vor.u32 %v7202_v63, %v6217_v58  ;;  %3493 = vmatpush.bf16.msrb.mxu0 %v6210_v61  ;;  %v6442_v46 = vor.u32 %v7258_v44, %v6441_v43  ;;  %v7249_v63 = vld [vmem:[%s10863_s2 + $0x8c] sm:$0xf0] }
 0x35c   :  { %v6426_v58 = vor.u32 %v7254_v56, %v6425_v55  ;;  %v7237_v43 = vld [vmem:[%s10863_s2 + $0x2c] sm:$0xf0]  ;;  %v7235_v44 = vld [vmem:[%s10863_s2 + $0x24] sm:$0xf]  ;;  %v3000_v55 = vld [vmem:[%s10865_s0 + $0x38] sm:$0xc] }
 0x35d   :  { %v2954_v19 = vadd.f32 %v2946_v14, %v2692_v9  ;;  %v2955_v20 = vadd.f32 %v2947_v15, %v2693_v11  ;;  %v2973_v14 = vrot.slane %v2958_v8, 2  ;;  %3519 = vmatpush.bf16.msrb.mxu2 %v6218_v4  ;;  %3532 = vmatpush.bf16.msrb.mxu3 %v6222_v5  ;;  %v7250_v4 = vld [vmem:[%s10863_s2 + $0x94] sm:$0xf0]  ;;  %v6411_v8 = vld [vmem:[%s10863_s2 + $0x98] sm:$0xf0] }
 0x35e   :  { %3506 = vmatpush.bf16.msrb.mxu1 %v6214_v62  ;;  %v6401_v62 = vld [vmem:[%s10863_s2 + $0x80] sm:$0xf] }
 0x35f   :  { %v2959_v30 = vmul.f32 0.5, %v2954_v19  ;;  %v2963_v31 = vmul.f32 0.5, %v2955_v20  ;;  %v6402_v1 = vor.u32 %v7249_v63, %v6401_v62 }
 0x361   :  { %7450 = vtanh.f32 %v2959_v30  ;;  %v2925_v41 = vpop.f32.mrf.mxu2  ;;  %v2938_v42 = vpop.f32.mrf.mxu3  ;;  %v3001_v51 = vld [vmem:[#allocation2] sm:$0x3]  ;;  %v6451_v30 = vld [vmem:[%s10863_s2 + $0xf0] sm:$0xf0] }
 0x362   :  { %7452 = vtanh.f32 %v2963_v31  ;;  %v2948_v47 = vrot.slane %v2925_v41, 2  ;;  %v2949_v48 = vrot.slane %v2938_v42, 2  ;;  %v2901_v49 = vpop.f32.mrf.mxu0  ;;  %v2914_v50 = vpop.f32.mrf.mxu1  ;;  %v3002_v53 = vpack.c.bf16 %v3001_v51, %v3001_v51  ;;  %v6435_v42 = vld [vmem:[%s10863_s2 + $0xd0] sm:$0xf0]  ;;  %v7253_v51 = vld [vmem:[%s10863_s2 + $0xac] sm:$0xf0] }
 0x363   :  { %v6454_v31 = vor.u32 %v7259_v28, %v6451_v30  ;;  %v6434_v41 = vor.u32 %v7257_v39, %v6433_v38  ;;  %v6438_v45 = vor.u32 %v7255_v40, %v6435_v42  ;;  %v6417_v50 = vld [vmem:[%s10863_s2 + $0xa0] sm:$0xf]  ;;  %v7239_v28 = vld [vmem:[%s10863_s2 + $0x44] sm:$0xf] }
 0x364   :  { %v2956_v59 = vadd.f32 %v2948_v47, %v2694_v32  ;;  %v2957_v60 = vadd.f32 %v2949_v48, %v2695_v33  ;;  %3203 = vmatmul.bf16.vlgmr.msra.gmra.mxu0 %v3002_v53  ;;  %3216 = vmatmul.bf16.vlgmr.msra.gmra.mxu1 %v3002_v53  ;;  %v6457_v32 = vld [vmem:[%s10863_s2 + $0xe8] sm:$0xf]  ;;  %v7262_v33 = vld [vmem:[%s10863_s2 + $0xf4] sm:$0xf0]  ;;  %v7256_v47 = vld [vmem:[%s10863_s2 + $0xcc] sm:$0xf] }
 0x365   :  { %3229 = vmatmul.bf16.vlgmr.msra.gmra.mxu2 %v3002_v53  ;;  %3242 = vmatmul.bf16.vlgmr.msra.gmra.mxu3 %v3002_v53  ;;  %v6458_v35 = vor.u32 %v7262_v33, %v6457_v32  ;;  %v6443_v48 = vld [vmem:[%s10863_s2 + $0xd8] sm:$0xf0]  ;;  %v6418_v53 = vor.u32 %v7253_v51, %v6417_v50  ;;  %v6371_v32 = vld [vmem:[%s10863_s2 + $0x50] sm:$0xf0]  ;;  %v6377_v33 = vld [vmem:[%s10863_s2 + $0x48] sm:$0xf] }
 0x366   :  { %7454 = vtanh.f32 %v2956_v59  ;;  %v2968_v2 = vmul.f32 0.5, %v2957_v60  ;;  %3791 = vmatpush.bf16.msra.mxu0 %v6450_v29  ;;  %3804 = vmatpush.bf16.msra.mxu1 %v6454_v31  ;;  %v6446_v49 = vor.u32 %v7256_v47, %v6443_v48  ;;  %v7252_v59 = vld [vmem:[%s10863_s2 + $0xac] sm:$0xf]  ;;  %v6427_v60 = vld [vmem:[%s10863_s2 + $0xb8] sm:$0xf0]  ;;  %v6370_v31 = vor.u32 %v7241_v27, %v6369_v26 }
 0x367   :  { %v7451_v3 = vpop.eup %7450  ;;  %3817 = vmatpush.bf16.msra.mxu2 %v6458_v35  ;;  %3830 = vmatpush.bf16.msra.mxu3 %v6462_v37  ;;  %v6430_v61 = vor.u32 %v7252_v59, %v6427_v60  ;;  %v6374_v34 = vor.u32 %v7239_v28, %v6371_v32  ;;  %v7242_v35 = vld [vmem:[%s10863_s2 + $0x54] sm:$0xf0]  ;;  %v6379_v37 = vld [vmem:[%s10863_s2 + $0x58] sm:$0xf0]  ;;  %v6353_v42 = vld [vmem:[%s10863_s2 + $0x20] sm:$0xf] }
 0x368   :  { %v7453_v6 = vpop.eup %7452  ;;  %v2961_v7 = vmul.f32 0.5, %v7451_v3  ;;  %7456 = vtanh.f32 %v2968_v2  ;;  %v6403_v2 = vld [vmem:[%s10863_s2 + $0x90] sm:$0xf0]  ;;  %v6409_v3 = vld [vmem:[%s10863_s2 + $0x88] sm:$0xf]  ;;  %v6378_v40 = vor.u32 %v7242_v35, %v6377_v33  ;;  %v6354_v47 = vor.u32 %v7237_v43, %v6353_v42 }
 0x369   :  { %v2965_v9 = vmul.f32 0.5, %v7453_v6  ;;  %v2927_v10 = vpop.f32.mrf.mxu2  ;;  %v2940_v11 = vpop.f32.mrf.mxu3  ;;  %v6406_v5 = vor.u32 %v7247_v0, %v6403_v2  ;;  %v6410_v6 = vor.u32 %v7250_v4, %v6409_v3  ;;  %v6355_v48 = vld [vmem:[%s10863_s2 + $0x30] sm:$0xf0]  ;;  %v7238_v51 = vld [vmem:[%s10863_s2 + $0x34] sm:$0xf0] }
 0x36a   :  { %v2962_v12 = vadd.f32 0.5, %v2961_v7  ;;  %3792 = vmatpush.bf16.msra.mxu0 %v6434_v41  ;;  %3805 = vmatpush.bf16.msra.mxu1 %v6438_v45  ;;  %v7248_v7 = vld [vmem:[%s10863_s2 + $0x8c] sm:$0xf]  ;;  %v6385_v10 = vld [vmem:[%s10863_s2 + $0x60] sm:$0xf]  ;;  %v6382_v41 = vor.u32 %v7240_v36, %v6379_v37  ;;  %v6358_v50 = vor.u32 %v7235_v44, %v6355_v48 }
 0x36b   :  { %v2966_v13 = vadd.f32 0.5, %v2965_v9  ;;  %3818 = vmatpush.bf16.msra.mxu2 %v6442_v46  ;;  %3831 = vmatpush.bf16.msra.mxu3 %v6446_v49  ;;  %v6414_v9 = vor.u32 %v7248_v7, %v6411_v8  ;;  %v7245_v11 = vld [vmem:[%s10863_s2 + $0x6c] sm:$0xf0]  ;;  %v6361_v49 = vld [vmem:[%s10863_s2 + $0x28] sm:$0xf] }
 0x36c   :  { %v7455_v15 = vpop.eup %7454  ;;  %v6337_v0 = vld [vmem:[%s10863_s2] sm:$0xf]  ;;  %v7231_v3 = vld [vmem:[%s10863_s2 + $0x4] sm:$0xf]  ;;  %v6339_v4 = vld [vmem:[%s10863_s2 + $0x10] sm:$0xf0] }
 0x36d   :  { %v2975_v16 = vmul.f32 %v2973_v14, %v2966_v13  ;;  %v2976_v17 = vmul.f32 %v7455_v15, %v2962_v12  ;;  %v7243_v12 = vld [vmem:[%s10863_s2 + $0x64] sm:$0xf]  ;;  %v6386_v13 = vor.u32 %v7245_v11, %v6385_v10  ;;  %v6387_v14 = vld [vmem:[%s10863_s2 + $0x70] sm:$0xf0]  ;;  %v6393_v15 = vld [vmem:[%s10863_s2 + $0x68] sm:$0xf]  ;;  %v6342_v8 = vor.u32 %v7231_v3, %v6339_v4 }
 0x36e   :  { %v7457_v18 = vpop.eup %7456  ;;  %3793 = vmatpush.bf16.msra.mxu0 %v6418_v53  ;;  %3806 = vmatpush.bf16.msra.mxu1 %v6422_v57  ;;  %v2999_v53 = vld [vmem:[%s10865_s0 + $0x30] sm:$0xc]  ;;  %v6362_v57 = vor.u32 %v7238_v51, %v6361_v49  ;;  %v7232_v10 = vld [vmem:[%s10863_s2 + $0xc] sm:$0xf]  ;;  %v6347_v11 = vld [vmem:[%s10863_s2 + $0x18] sm:$0xf0] }
 0x36f   :  { %v2977_v19 = vadd.f32 %v2976_v17, %v2975_v16  ;;  %v2970_v20 = vmul.f32 0.5, %v7457_v18  ;;  %3819 = vmatpush.bf16.msra.mxu2 %v6426_v58  ;;  %3832 = vmatpush.bf16.msra.mxu3 %v6430_v61  ;;  %v7246_v16 = vld [vmem:[%s10863_s2 + $0x74] sm:$0xf0]  ;;  %v6390_v17 = vor.u32 %v7243_v12, %v6387_v14  ;;  %v6363_v58 = vld [vmem:[%s10863_s2 + $0x38] sm:$0xf0] }
 0x370   :  { %v6394_v18 = vor.u32 %v7246_v16, %v6393_v15  ;;  %v6366_v63 = vor.u32 %v7236_v52, %v6363_v58  ;;  %v6577_v14 = vld [vmem:[%s10864_s3 + $0xe0] sm:$0xf]  ;;  %v7293_v15 = vld [vmem:[%s10864_s3 + $0xec] sm:$0xf0]  ;;  %v7291_v16 = vld [vmem:[%s10864_s3 + $0xe4] sm:$0xf] }
 0x371   :  { %7458 = vtanh.f32 %v2977_v19  ;;  %2995 = vst [vmem:[#allocation5 - $0x6] sm:$0xc0] %v2977_v19  ;;  %v2971_v21 = vadd.f32 0.5, %v2970_v20  ;;  %v7244_v19 = vld [vmem:[%s10863_s2 + $0x6c] sm:$0xf] }
 0x372   :  { %3794 = vmatpush.bf16.msra.mxu0 %v6402_v1  ;;  %3807 = vmatpush.bf16.msra.mxu1 %v6406_v5  ;;  %v6395_v20 = vld [vmem:[%s10863_s2 + $0x78] sm:$0xf0]  ;;  %v7233_v1 = vld [vmem:[%s10863_s2 + $0xc] sm:$0xf0]  ;;  %v6345_v5 = vld [vmem:[%s10863_s2 + $0x8] sm:$0xf] }
 0x373   :  { %3820 = vmatpush.bf16.msra.mxu2 %v6410_v6  ;;  %3833 = vmatpush.bf16.msra.mxu3 %v6414_v9  ;;  %v6338_v2 = vor.u32 %v7233_v1, %v6337_v0  ;;  %v7234_v9 = vld [vmem:[%s10863_s2 + $0x14] sm:$0xf0]  ;;  %v7292_v28 = vld [vmem:[%s10864_s3 + $0xec] sm:$0xf]  ;;  %v7289_v35 = vld [vmem:[%s10864_s3 + $0xcc] sm:$0xf0] }
 0x374   :  { %v6346_v12 = vor.u32 %v7234_v9, %v6345_v5  ;;  %v6569_v43 = vld [vmem:[%s10864_s3 + $0xc8] sm:$0xf]  ;;  %v7290_v44 = vld [vmem:[%s10864_s3 + $0xd4] sm:$0xf0]  ;;  %v6571_v48 = vld [vmem:[%s10864_s3 + $0xd8] sm:$0xf0] }
 0x375   :  { %v6545_v52 = vld [vmem:[%s10864_s3 + $0xa0] sm:$0xf]  ;;  %v6553_v58 = vld [vmem:[%s10864_s3 + $0xa8] sm:$0xf]  ;;  %v6555_v0 = vld [vmem:[%s10864_s3 + $0xb8] sm:$0xf0] }
 0x376   :  { %3795 = vmatpush.bf16.msra.mxu0 %v6386_v13  ;;  %3808 = vmatpush.bf16.msra.mxu1 %v6390_v17  ;;  %v6350_v13 = vor.u32 %v7232_v10, %v6347_v11  ;;  %v3263_v17 = vld [vmem:[#allocation3] sm:$0x3]  ;;  %v7281_v4 = vld [vmem:[%s10864_s3 + $0x8c] sm:$0xf0]  ;;  %v7279_v5 = vld [vmem:[%s10864_s3 + $0x84] sm:$0xf] }
 0x377   :  { %v7459_v22 = vpop.eup %7458  ;;  %3821 = vmatpush.bf16.msra.mxu2 %v6394_v18  ;;  %v6529_v3 = vld [vmem:[%s10864_s3 + $0x80] sm:$0xf]  ;;  %v6537_v9 = vld [vmem:[%s10864_s3 + $0x88] sm:$0xf]  ;;  %v7282_v10 = vld [vmem:[%s10864_s3 + $0x94] sm:$0xf0] }
 0x378   :  { %v2979_v23 = vmul.f32 %v7459_v22, %v2971_v21  ;;  %v2997_v21 = vld [vmem:[%s10865_s0 + $0x20] sm:$0xc]  ;;  %v2998_v22 = vld [vmem:[%s10865_s0 + $0x28] sm:$0xc]  ;;  %v7280_v11 = vld [vmem:[%s10864_s3 + $0x8c] sm:$0xf] }
 0x37a   :  { %2989 = vst [vmem:[#allocation4 - $0x6] sm:$0xc0] %v2979_v23  ;;  %3796 = vmatpush.bf16.msra.mxu0 %v6370_v31  ;;  %3809 = vmatpush.bf16.msra.mxu1 %v6374_v34  ;;  %v6561_v34 = vld [vmem:[%s10864_s3 + $0xc0] sm:$0xf] }
 0x37b   :  { %2996 = vst [vmem:[%s10868_s5] sm:$0xc0] %v2979_v23  ;;  %v6398_v23 = vor.u32 %v7244_v19, %v6395_v20  ;;  %3822 = vmatpush.bf16.msra.mxu2 %v6378_v40  ;;  %v6578_v19 = vor.u32 %v7293_v15, %v6577_v14  ;;  %v6562_v37 = vor.u32 %v7289_v35, %v6561_v34  ;;  %v6539_v14 = vld [vmem:[%s10864_s3 + $0x98] sm:$0xf0]  ;;  %v6497_v34 = vld [vmem:[%s10864_s3 + $0x40] sm:$0xf] }
 0x37c   :  { %v6542_v15 = vor.u32 %v7280_v11, %v6539_v14  ;;  %v7273_v35 = vld [vmem:[%s10864_s3 + $0x4c] sm:$0xf0] }
 0x37d   :  { %3834 = vmatpush.bf16.msra.mxu3 %v6398_v23  ;;  %v7294_v23 = vld [vmem:[%s10864_s3 + $0xf4] sm:$0xf0] }
 0x37e   :  { %3797 = vmatpush.bf16.msra.mxu0 %v6354_v47  ;;  %3810 = vmatpush.bf16.msra.mxu1 %v6358_v50  ;;  %v7288_v47 = vld [vmem:[%s10864_s3 + $0xcc] sm:$0xf] }
 0x37f   :  { %3823 = vmatpush.bf16.msra.mxu2 %v6362_v57  ;;  %v6574_v51 = vor.u32 %v7288_v47, %v6571_v48  ;;  %v6547_v57 = vld [vmem:[%s10864_s3 + $0xb0] sm:$0xf0]  ;;  %v7272_v47 = vld [vmem:[%s10864_s3 + $0x4c] sm:$0xf]  ;;  %v6507_v48 = vld [vmem:[%s10864_s3 + $0x58] sm:$0xf0] }
 0x381   :  { %v3292_v24 = vld [vmem:[#allocation4] sm:$0x3]  ;;  %3835 = vmatpush.bf16.msra.mxu3 %v6382_v41  ;;  %v3278_v41 = vrot.slane %v3263_v17, 6  ;;  %v7277_v17 = vld [vmem:[%s10864_s3 + $0x6c] sm:$0xf0] }
 0x382   :  { %v3293_v25 = vpack.c.bf16 %v3292_v24, %v3292_v24  ;;  %3798 = vmatpush.bf16.msra.mxu0 %v6338_v2  ;;  %3811 = vmatpush.bf16.msra.mxu1 %v6342_v8 }
 0x383   :  { %3824 = vmatpush.bf16.msra.mxu2 %v6346_v12 }
 0x384   :  { %3494 = vmatmul.bf16.vlgmr.msrb.gmra.mxu0 %v3293_v25  ;;  %3507 = vmatmul.bf16.vlgmr.msrb.gmra.mxu1 %v3293_v25 }
 0x385   :  { %3520 = vmatmul.bf16.vlgmr.msrb.gmra.mxu2 %v3293_v25  ;;  %3533 = vmatmul.bf16.vlgmr.msrb.gmra.mxu3 %v3293_v25 }
 0x386   :  { %3836 = vmatpush.bf16.msra.mxu3 %v6366_v63  ;;  %4082 = vmatpush.bf16.msrb.mxu0 %v6578_v19  ;;  %v7284_v63 = vld [vmem:[%s10864_s3 + $0xac] sm:$0xf] }
 0x387   :  { %v6558_v2 = vor.u32 %v7284_v63, %v6555_v0  ;;  %v7268_v63 = vld [vmem:[%s10864_s3 + $0x2c] sm:$0xf]  ;;  %v6491_v0 = vld [vmem:[%s10864_s3 + $0x38] sm:$0xf0] }
 0x38a   :  { %3837 = vmatpush.bf16.msra.mxu3 %v6350_v13  ;;  %4083 = vmatpush.bf16.msrb.mxu0 %v6562_v37  ;;  %v6538_v13 = vor.u32 %v7282_v10, %v6537_v9 }
 0x3e1   :  { %v3204_v24 = vpop.f32.mrf.mxu0  ;;  %v3217_v25 = vpop.f32.mrf.mxu1 }
 0x3e2   :  { %v3251_v29 = vrot.slane %v3204_v24, 6  ;;  %v3252_v30 = vrot.slane %v3217_v25, 6 }
 0x3e4   :  { %v3259_v38 = vadd.f32 %v3251_v29, %v2997_v21  ;;  %v3260_v39 = vadd.f32 %v3252_v30, %v2998_v22  ;;  %v6579_v21 = vld [vmem:[%s10864_s3 + $0xf0] sm:$0xf0]  ;;  %v6585_v22 = vld [vmem:[%s10864_s3 + $0xe8] sm:$0xf]  ;;  %v6587_v29 = vld [vmem:[%s10864_s3 + $0xf8] sm:$0xf0] }
 0x3e5   :  { %v6582_v26 = vor.u32 %v7291_v16, %v6579_v21  ;;  %v6586_v27 = vor.u32 %v7294_v23, %v6585_v22  ;;  %v6590_v33 = vor.u32 %v7292_v28, %v6587_v29  ;;  %v6513_v16 = vld [vmem:[%s10864_s3 + $0x60] sm:$0xf]  ;;  %v6521_v21 = vld [vmem:[%s10864_s3 + $0x68] sm:$0xf]  ;;  %v7278_v22 = vld [vmem:[%s10864_s3 + $0x74] sm:$0xf0] }
 0x3e6   :  { %v3264_v45 = vmul.f32 0.5, %v3259_v38  ;;  %v3268_v46 = vmul.f32 0.5, %v3260_v39  ;;  %v7287_v38 = vld [vmem:[%s10864_s3 + $0xc4] sm:$0xf]  ;;  %v6563_v39 = vld [vmem:[%s10864_s3 + $0xd0] sm:$0xf0]  ;;  %v6514_v19 = vor.u32 %v7277_v17, %v6513_v16 }
 0x3e7   :  { %4095 = vmatpush.bf16.msrb.mxu1 %v6582_v26  ;;  %4108 = vmatpush.bf16.msrb.mxu2 %v6586_v27  ;;  %v6566_v42 = vor.u32 %v7287_v38, %v6563_v39  ;;  %v7276_v26 = vld [vmem:[%s10864_s3 + $0x6c] sm:$0xf]  ;;  %v6523_v27 = vld [vmem:[%s10864_s3 + $0x78] sm:$0xf0]  ;;  %v3288_v29 = vld [vmem:[%s10866_s1] sm:$0x30]  ;;  %v6498_v39 = vor.u32 %v7273_v35, %v6497_v34 }
 0x3e8   :  { %7460 = vtanh.f32 %v3264_v45  ;;  %v3230_v54 = vpop.f32.mrf.mxu2  ;;  %v3243_v56 = vpop.f32.mrf.mxu3  ;;  %4121 = vmatpush.bf16.msrb.mxu3 %v6590_v33  ;;  %v7266_v17 = vld [vmem:[%s10864_s3 + $0x14] sm:$0xf0] }
 0x3e9   :  { %7462 = vtanh.f32 %v3268_v46  ;;  %v3253_v59 = vrot.slane %v3230_v54, 6  ;;  %v3254_v60 = vrot.slane %v3243_v56, 6  ;;  %v3206_v61 = vpop.f32.mrf.mxu0  ;;  %v3219_v62 = vpop.f32.mrf.mxu1  ;;  %v6570_v46 = vor.u32 %v7290_v44, %v6569_v43  ;;  %v7283_v54 = vld [vmem:[%s10864_s3 + $0xa4] sm:$0xf]  ;;  %v7274_v43 = vld [vmem:[%s10864_s3 + $0x54] sm:$0xf0] }
 0x3ea   :  { %v6550_v61 = vor.u32 %v7283_v54, %v6547_v57  ;;  %v3291_v57 = vld [vmem:[%s10866_s1 + $0x18] sm:$0x30] }
 0x3eb   :  { %v3261_v6 = vadd.f32 %v3253_v59, %v2999_v53  ;;  %v3262_v7 = vadd.f32 %v3254_v60, %v3000_v55  ;;  %v7285_v53 = vld [vmem:[%s10864_s3 + $0xac] sm:$0xf0]  ;;  %4096 = vmatpush.bf16.msrb.mxu1 %v6566_v42  ;;  %4109 = vmatpush.bf16.msrb.mxu2 %v6570_v46  ;;  %v7286_v59 = vld [vmem:[%s10864_s3 + $0xb4] sm:$0xf0]  ;;  %v6505_v42 = vld [vmem:[%s10864_s3 + $0x48] sm:$0xf] }
 0x3ec   :  { %v6546_v56 = vor.u32 %v7285_v53, %v6545_v52  ;;  %4122 = vmatpush.bf16.msrb.mxu3 %v6574_v51  ;;  %v6554_v62 = vor.u32 %v7286_v59, %v6553_v58  ;;  %v6506_v46 = vor.u32 %v7274_v43, %v6505_v42  ;;  %v7269_v51 = vld [vmem:[%s10864_s3 + $0x2c] sm:$0xf0]  ;;  %v7267_v52 = vld [vmem:[%s10864_s3 + $0x24] sm:$0xf]  ;;  %v6483_v53 = vld [vmem:[%s10864_s3 + $0x30] sm:$0xf0] }
 0x3ed   :  { %7464 = vtanh.f32 %v3261_v6  ;;  %v3273_v18 = vmul.f32 0.5, %v3262_v7  ;;  %v6531_v6 = vld [vmem:[%s10864_s3 + $0x90] sm:$0xf0]  ;;  %v6530_v7 = vor.u32 %v7281_v4, %v6529_v3  ;;  %v6486_v59 = vor.u32 %v7267_v52, %v6483_v53  ;;  %v6713_v52 = vld [vmem:[%s10863_s2 + $0xe8] sm:$0xf] }
 0x3ee   :  { %v7461_v20 = vpop.eup %7460  ;;  %4084 = vmatpush.bf16.msrb.mxu0 %v6546_v56  ;;  %v6534_v8 = vor.u32 %v7279_v5, %v6531_v6  ;;  %v3290_v56 = vld [vmem:[%s10866_s1 + $0x10] sm:$0x30]  ;;  %v6494_v4 = vor.u32 %v7268_v63, %v6491_v0  ;;  %v7265_v5 = vld [vmem:[%s10864_s3 + $0xc] sm:$0xf0]  ;;  %v7263_v6 = vld [vmem:[%s10864_s3 + $0x4] sm:$0xf] }
 0x3ef   :  { %v7463_v24 = vpop.eup %7462  ;;  %v3266_v25 = vmul.f32 0.5, %v7461_v20  ;;  %7466 = vtanh.f32 %v3273_v18  ;;  %4097 = vmatpush.bf16.msrb.mxu1 %v6550_v61  ;;  %4110 = vmatpush.bf16.msrb.mxu2 %v6554_v62  ;;  %v7275_v18 = vld [vmem:[%s10864_s3 + $0x64] sm:$0xf]  ;;  %v6515_v20 = vld [vmem:[%s10864_s3 + $0x70] sm:$0xf0] }
 0x3f0   :  { %v3270_v30 = vmul.f32 0.5, %v7463_v24  ;;  %v3232_v31 = vpop.f32.mrf.mxu2  ;;  %v3245_v32 = vpop.f32.mrf.mxu3  ;;  %4123 = vmatpush.bf16.msrb.mxu3 %v6558_v2  ;;  %v6518_v24 = vor.u32 %v7275_v18, %v6515_v20  ;;  %v7270_v61 = vld [vmem:[%s10864_s3 + $0x34] sm:$0xf0]  ;;  %v7264_v18 = vld [vmem:[%s10864_s3 + $0xc] sm:$0xf] }
 0x3f1   :  { %v3267_v36 = vadd.f32 0.5, %v3266_v25  ;;  %v6522_v25 = vor.u32 %v7278_v22, %v6521_v21  ;;  %v6526_v31 = vor.u32 %v7276_v26, %v6523_v27  ;;  %v7326_v53 = vld [vmem:[%s10863_s2 + $0xf4] sm:$0xf0]  ;;  %v6697_v63 = vld [vmem:[%s10863_s2 + $0xc8] sm:$0xf] }
 0x3f2   :  { %v3271_v40 = vadd.f32 0.5, %v3270_v30  ;;  %4085 = vmatpush.bf16.msrb.mxu0 %v6530_v7  ;;  %v3289_v30 = vld [vmem:[%s10866_s1 + $0x8] sm:$0x30]  ;;  %v6467_v7 = vld [vmem:[%s10864_s3 + $0x10] sm:$0xf0] }
 0x3f3   :  { %v7465_v45 = vpop.eup %7464  ;;  %4098 = vmatpush.bf16.msrb.mxu1 %v6534_v8  ;;  %4111 = vmatpush.bf16.msrb.mxu2 %v6538_v13  ;;  %v6473_v13 = vld [vmem:[%s10864_s3 + $0x8] sm:$0xf]  ;;  %v6470_v16 = vor.u32 %v7263_v6, %v6467_v7  ;;  %v7322_v0 = vld [vmem:[%s10863_s2 + $0xd4] sm:$0xf0]  ;;  %v6673_v6 = vld [vmem:[%s10863_s2 + $0xa0] sm:$0xf] }
 0x3f4   :  { %v3280_v49 = vmul.f32 %v3278_v41, %v3271_v40  ;;  %v3281_v50 = vmul.f32 %v7465_v45, %v3267_v36  ;;  %4124 = vmatpush.bf16.msrb.mxu3 %v6542_v15  ;;  %v7271_v36 = vld [vmem:[%s10864_s3 + $0x44] sm:$0xf]  ;;  %v6499_v40 = vld [vmem:[%s10864_s3 + $0x50] sm:$0xf0]  ;;  %v6474_v22 = vor.u32 %v7266_v17, %v6473_v13  ;;  %v7317_v7 = vld [vmem:[%s10863_s2 + $0xac] sm:$0xf0] }
 0x3f5   :  { %v7467_v55 = vpop.eup %7466  ;;  %v6502_v41 = vor.u32 %v7271_v36, %v6499_v40 }
 0x3f6   :  { %v3282_v60 = vadd.f32 %v3281_v50, %v3280_v49  ;;  %v3275_v1 = vmul.f32 0.5, %v7467_v55  ;;  %4086 = vmatpush.bf16.msrb.mxu0 %v6514_v19  ;;  %v6481_v49 = vld [vmem:[%s10864_s3 + $0x20] sm:$0xf]  ;;  %v6510_v50 = vor.u32 %v7272_v47, %v6507_v48  ;;  %v6475_v19 = vld [vmem:[%s10864_s3 + $0x18] sm:$0xf0] }
 0x3f7   :  { %4099 = vmatpush.bf16.msrb.mxu1 %v6518_v24  ;;  %4112 = vmatpush.bf16.msrb.mxu2 %v6522_v25  ;;  %v6482_v58 = vor.u32 %v7269_v51, %v6481_v49  ;;  %v7325_v47 = vld [vmem:[%s10863_s2 + $0xec] sm:$0xf0]  ;;  %v7323_v48 = vld [vmem:[%s10863_s2 + $0xe4] sm:$0xf] }
 0x3f8   :  { %7468 = vtanh.f32 %v3282_v60  ;;  %3286 = vst [vmem:[#allocation3 - $0x2] sm:$0xc] %v3282_v60  ;;  %v3276_v12 = vadd.f32 0.5, %v3275_v1  ;;  %4125 = vmatpush.bf16.msrb.mxu3 %v6526_v31  ;;  %v6489_v60 = vld [vmem:[%s10864_s3 + $0x28] sm:$0xf] }
 0x3f9   :  { %v6490_v62 = vor.u32 %v7270_v61, %v6489_v60  ;;  %v6465_v1 = vld [vmem:[%s10864_s3] sm:$0xf]  ;;  %v7319_v60 = vld [vmem:[%s10863_s2 + $0xc4] sm:$0xf] }
 0x3fa   :  { %4087 = vmatpush.bf16.msrb.mxu0 %v6498_v39  ;;  %v6466_v15 = vor.u32 %v7265_v5, %v6465_v1 }
 0x3fb   :  { %4100 = vmatpush.bf16.msrb.mxu1 %v6502_v41  ;;  %4113 = vmatpush.bf16.msrb.mxu2 %v6506_v46  ;;  %v6705_v46 = vld [vmem:[%s10863_s2 + $0xe0] sm:$0xf] }
 0x3fc   :  { %4126 = vmatpush.bf16.msrb.mxu3 %v6510_v50  ;;  %v6706_v49 = vor.u32 %v7325_v47, %v6705_v46  ;;  %v6707_v50 = vld [vmem:[%s10863_s2 + $0xf0] sm:$0xf0]  ;;  %v7308_v46 = vld [vmem:[%s10863_s2 + $0x6c] sm:$0xf]  ;;  %v6651_v47 = vld [vmem:[%s10863_s2 + $0x78] sm:$0xf0] }
 0x3fd   :  { %v6710_v51 = vor.u32 %v7323_v48, %v6707_v50  ;;  %v6625_v50 = vld [vmem:[%s10863_s2 + $0x40] sm:$0xf] }
 0x3fe   :  { %v7469_v23 = vpop.eup %7468  ;;  %4088 = vmatpush.bf16.msrb.mxu0 %v6482_v58  ;;  %v6689_v58 = vld [vmem:[%s10863_s2 + $0xc0] sm:$0xf] }
 0x3ff   :  { %v3284_v28 = vmul.f32 %v7469_v23, %v3276_v12  ;;  %4101 = vmatpush.bf16.msrb.mxu1 %v6486_v59  ;;  %4114 = vmatpush.bf16.msrb.mxu2 %v6490_v62  ;;  %v6478_v23 = vor.u32 %v7264_v18, %v6475_v19  ;;  %v7321_v59 = vld [vmem:[%s10863_s2 + $0xcc] sm:$0xf0]  ;;  %v6691_v62 = vld [vmem:[%s10863_s2 + $0xd0] sm:$0xf0]  ;;  %v3593_v18 = vld [vmem:[%s10865_s0 + $0x20] sm:$0x30] }
 0x400   :  { %4127 = vmatpush.bf16.msrb.mxu3 %v6494_v4  ;;  %v6690_v61 = vor.u32 %v7321_v59, %v6689_v58  ;;  %v6694_v1 = vor.u32 %v7319_v60, %v6691_v62  ;;  %v6699_v4 = vld [vmem:[%s10863_s2 + $0xd8] sm:$0xf0]  ;;  %v6657_v19 = vld [vmem:[%s10863_s2 + $0x80] sm:$0xf]  ;;  %v7306_v59 = vld [vmem:[%s10863_s2 + $0x54] sm:$0xf0] }
 0x401   :  { %v3495_v32 = vpop.f32.mrf.mxu0  ;;  %v3508_v33 = vpop.f32.mrf.mxu1  ;;  %3285 = vst [vmem:[#allocation2 - $0x2] sm:$0xc] %v3284_v28  ;;  %v7304_v60 = vld [vmem:[%s10863_s2 + $0x4c] sm:$0xf]  ;;  %v3595_v62 = vld [vmem:[%s10865_s0 + $0x30] sm:$0x30] }
 0x402   :  { %v3542_v37 = vrot.slane %v3495_v32, 4  ;;  %v3543_v38 = vrot.slane %v3508_v33, 4  ;;  %3287 = vst [vmem:[%s10867_s4 + $0x8] sm:$0xc] %v3284_v28  ;;  %4089 = vmatpush.bf16.msrb.mxu0 %v6466_v15  ;;  %v3554_v28 = vld [vmem:[#allocation5] sm:$0x3] }
 0x403   :  { %4102 = vmatpush.bf16.msrb.mxu1 %v6470_v16  ;;  %4115 = vmatpush.bf16.msrb.mxu2 %v6474_v22  ;;  %v3569_v34 = vrot.slane %v3554_v28, 4  ;;  %v7316_v15 = vld [vmem:[%s10863_s2 + $0xac] sm:$0xf]  ;;  %v6683_v16 = vld [vmem:[%s10863_s2 + $0xb8] sm:$0xf0] }
 0x404   :  { %v3550_v44 = vadd.f32 %v3542_v37, %v3288_v29  ;;  %v3551_v45 = vadd.f32 %v3543_v38, %v3289_v30  ;;  %4128 = vmatpush.bf16.msrb.mxu3 %v6478_v23  ;;  %v6686_v17 = vor.u32 %v7316_v15, %v6683_v16  ;;  %v6659_v23 = vld [vmem:[%s10863_s2 + $0x90] sm:$0xf0]  ;;  %v6617_v15 = vld [vmem:[%s10863_s2 + $0x28] sm:$0xf]  ;;  %v7302_v16 = vld [vmem:[%s10863_s2 + $0x34] sm:$0xf0] }
 0x406   :  { %v3555_v54 = vmul.f32 0.5, %v3550_v44  ;;  %v3559_v55 = vmul.f32 0.5, %v3551_v45 }
 0x408   :  { %7470 = vtanh.f32 %v3555_v54  ;;  %v3521_v2 = vpop.f32.mrf.mxu2  ;;  %v3534_v3 = vpop.f32.mrf.mxu3  ;;  %v3597_v12 = vld [vmem:[#allocation2] sm:$0x3]  ;;  %v7324_v54 = vld [vmem:[%s10863_s2 + $0xec] sm:$0xf] }
 0x409   :  { %7472 = vtanh.f32 %v3559_v55  ;;  %v3544_v8 = vrot.slane %v3521_v2, 4  ;;  %v3545_v9 = vrot.slane %v3534_v3, 4  ;;  %v3497_v10 = vpop.f32.mrf.mxu0  ;;  %v3510_v11 = vpop.f32.mrf.mxu1  ;;  %v3598_v14 = vpack.c.bf16 %v3597_v12, %v3597_v12  ;;  %v7320_v3 = vld [vmem:[%s10863_s2 + $0xcc] sm:$0xf]  ;;  %v7318_v12 = vld [vmem:[%s10863_s2 + $0xb4] sm:$0xf0] }
 0x40a   :  { %v6714_v55 = vor.u32 %v7326_v53, %v6713_v52  ;;  %v6698_v2 = vor.u32 %v7322_v0, %v6697_v63  ;;  %v6702_v5 = vor.u32 %v7320_v3, %v6699_v4  ;;  %v6675_v10 = vld [vmem:[%s10863_s2 + $0xb0] sm:$0xf0]  ;;  %v6681_v11 = vld [vmem:[%s10863_s2 + $0xa8] sm:$0xf]  ;;  %v7303_v52 = vld [vmem:[%s10863_s2 + $0x44] sm:$0xf] }
 0x40b   :  { %v3552_v20 = vadd.f32 %v3544_v8, %v3290_v56  ;;  %v3553_v21 = vadd.f32 %v3545_v9, %v3291_v57  ;;  %3799 = vmatmul.bf16.vlgmr.msra.gmra.mxu0 %v3598_v14  ;;  %3812 = vmatmul.bf16.vlgmr.msra.gmra.mxu1 %v3598_v14  ;;  %v6715_v56 = vld [vmem:[%s10863_s2 + $0xf8] sm:$0xf0]  ;;  %v7315_v8 = vld [vmem:[%s10863_s2 + $0xa4] sm:$0xf]  ;;  %v6674_v9 = vor.u32 %v7317_v7, %v6673_v6 }
 0x40c   :  { %3825 = vmatmul.bf16.vlgmr.msra.gmra.mxu2 %v3598_v14  ;;  %3838 = vmatmul.bf16.vlgmr.msra.gmra.mxu3 %v3598_v14  ;;  %v6718_v57 = vor.u32 %v7324_v54, %v6715_v56  ;;  %v6678_v13 = vor.u32 %v7315_v8, %v6675_v10  ;;  %v6682_v14 = vor.u32 %v7318_v12, %v6681_v11  ;;  %v6627_v56 = vld [vmem:[%s10863_s2 + $0x50] sm:$0xf0]  ;;  %v3596_v0 = vld [vmem:[%s10865_s0 + $0x38] sm:$0x30]  ;;  %v6609_v10 = vld [vmem:[%s10863_s2 + $0x20] sm:$0xf] }
 0x40d   :  { %7474 = vtanh.f32 %v3552_v20  ;;  %v3564_v24 = vmul.f32 0.5, %v3553_v21  ;;  %4387 = vmatpush.bf16.msra.mxu0 %v6706_v49  ;;  %4400 = vmatpush.bf16.msra.mxu1 %v6710_v51  ;;  %v7313_v20 = vld [vmem:[%s10863_s2 + $0x8c] sm:$0xf0]  ;;  %v7311_v21 = vld [vmem:[%s10863_s2 + $0x84] sm:$0xf]  ;;  %v6654_v49 = vor.u32 %v7308_v46, %v6651_v47  ;;  %v6630_v58 = vor.u32 %v7303_v52, %v6627_v56 }
 0x40e   :  { %v7471_v25 = vpop.eup %7470  ;;  %4413 = vmatpush.bf16.msra.mxu2 %v6714_v55  ;;  %4426 = vmatpush.bf16.msra.mxu3 %v6718_v57  ;;  %v6658_v22 = vor.u32 %v7313_v20, %v6657_v19  ;;  %v7305_v51 = vld [vmem:[%s10863_s2 + $0x4c] sm:$0xf0]  ;;  %v6633_v57 = vld [vmem:[%s10863_s2 + $0x48] sm:$0xf]  ;;  %v7299_v12 = vld [vmem:[%s10863_s2 + $0x24] sm:$0xf]  ;;  %v6618_v19 = vor.u32 %v7302_v16, %v6617_v15 }
 0x40f   :  { %v7473_v26 = vpop.eup %7472  ;;  %v3557_v27 = vmul.f32 0.5, %v7471_v25  ;;  %7476 = vtanh.f32 %v3564_v24  ;;  %v6665_v24 = vld [vmem:[%s10863_s2 + $0x88] sm:$0xf]  ;;  %v7314_v25 = vld [vmem:[%s10863_s2 + $0x94] sm:$0xf0]  ;;  %v6626_v55 = vor.u32 %v7305_v51, %v6625_v50 }
 0x410   :  { %v3561_v29 = vmul.f32 0.5, %v7473_v26  ;;  %v3523_v30 = vpop.f32.mrf.mxu2  ;;  %v3536_v31 = vpop.f32.mrf.mxu3  ;;  %v7301_v11 = vld [vmem:[%s10863_s2 + $0x2c] sm:$0xf0]  ;;  %v7300_v20 = vld [vmem:[%s10863_s2 + $0x2c] sm:$0xf] }
 0x411   :  { %v3558_v32 = vadd.f32 0.5, %v3557_v27  ;;  %4388 = vmatpush.bf16.msra.mxu0 %v6690_v61  ;;  %4401 = vmatpush.bf16.msra.mxu1 %v6694_v1  ;;  %v3594_v27 = vld [vmem:[%s10865_s0 + $0x28] sm:$0x30]  ;;  %v6666_v30 = vor.u32 %v7314_v25, %v6665_v24  ;;  %v6635_v61 = vld [vmem:[%s10863_s2 + $0x58] sm:$0xf0] }
 0x412   :  { %v3562_v33 = vadd.f32 0.5, %v3561_v29  ;;  %4414 = vmatpush.bf16.msra.mxu2 %v6698_v2  ;;  %4427 = vmatpush.bf16.msra.mxu3 %v6702_v5  ;;  %v6662_v29 = vor.u32 %v7311_v21, %v6659_v23  ;;  %v7312_v31 = vld [vmem:[%s10863_s2 + $0x8c] sm:$0xf]  ;;  %v6634_v2 = vor.u32 %v7306_v59, %v6633_v57  ;;  %v6638_v7 = vor.u32 %v7304_v60, %v6635_v61  ;;  %v6619_v23 = vld [vmem:[%s10863_s2 + $0x38] sm:$0xf0] }
 0x413   :  { %v7475_v35 = vpop.eup %7474  ;;  %v6833_v46 = vld [vmem:[%s10864_s3 + $0xe0] sm:$0xf]  ;;  %v7355_v50 = vld [vmem:[%s10864_s3 + $0xe4] sm:$0xf]  ;;  %v6835_v51 = vld [vmem:[%s10864_s3 + $0xf0] sm:$0xf0] }
 0x414   :  { %v3571_v36 = vmul.f32 %v3569_v34, %v3562_v33  ;;  %v3572_v37 = vmul.f32 %v7475_v35, %v3558_v32  ;;  %v6667_v32 = vld [vmem:[%s10863_s2 + $0x98] sm:$0xf0]  ;;  %v7358_v56 = vld [vmem:[%s10864_s3 + $0xf4] sm:$0xf0]  ;;  %v7356_v57 = vld [vmem:[%s10864_s3 + $0xec] sm:$0xf] }
 0x415   :  { %v7477_v38 = vpop.eup %7476  ;;  %4389 = vmatpush.bf16.msra.mxu0 %v6674_v9  ;;  %4402 = vmatpush.bf16.msra.mxu1 %v6678_v13  ;;  %v6670_v35 = vor.u32 %v7312_v31, %v6667_v32  ;;  %v6610_v13 = vor.u32 %v7301_v11, %v6609_v10  ;;  %v6843_v60 = vld [vmem:[%s10864_s3 + $0xf8] sm:$0xf0]  ;;  %v6817_v61 = vld [vmem:[%s10864_s3 + $0xc0] sm:$0xf]  ;;  %v6803_v15 = vld [vmem:[%s10864_s3 + $0xb0] sm:$0xf0] }
 0x416   :  { %v3573_v39 = vadd.f32 %v3572_v37, %v3571_v36  ;;  %v3566_v40 = vmul.f32 0.5, %v7477_v38  ;;  %4415 = vmatpush.bf16.msra.mxu2 %v6682_v14  ;;  %4428 = vmatpush.bf16.msra.mxu3 %v6686_v17  ;;  %v6641_v36 = vld [vmem:[%s10863_s2 + $0x60] sm:$0xf]  ;;  %v7309_v37 = vld [vmem:[%s10863_s2 + $0x6c] sm:$0xf0] }
 0x417   :  { %v6642_v38 = vor.u32 %v7309_v37, %v6641_v36  ;;  %v6611_v14 = vld [vmem:[%s10863_s2 + $0x30] sm:$0xf0]  ;;  %v6601_v37 = vld [vmem:[%s10863_s2 + $0x8] sm:$0xf]  ;;  %v6801_v11 = vld [vmem:[%s10864_s3 + $0xa0] sm:$0xf] }
 0x418   :  { %7478 = vtanh.f32 %v3573_v39  ;;  %3591 = vst [vmem:[#allocation5 - $0x4] sm:$0x30] %v3573_v39  ;;  %v3567_v41 = vadd.f32 0.5, %v3566_v40  ;;  %v7307_v39 = vld [vmem:[%s10863_s2 + $0x64] sm:$0xf] }
 0x419   :  { %4390 = vmatpush.bf16.msra.mxu0 %v6658_v22  ;;  %4403 = vmatpush.bf16.msra.mxu1 %v6662_v29  ;;  %v6643_v40 = vld [vmem:[%s10863_s2 + $0x70] sm:$0xf0]  ;;  %v3859_v22 = vld [vmem:[#allocation3] sm:$0x3]  ;;  %v6809_v16 = vld [vmem:[%s10864_s3 + $0xa8] sm:$0xf] }
 0x41a   :  { %4416 = vmatpush.bf16.msra.mxu2 %v6666_v30  ;;  %4429 = vmatpush.bf16.msra.mxu3 %v6670_v35 }
 0x41d   :  { %4391 = vmatpush.bf16.msra.mxu0 %v6642_v38  ;;  %v7298_v38 = vld [vmem:[%s10863_s2 + $0x14] sm:$0xf0] }
 0x41e   :  { %v7479_v42 = vpop.eup %7478  ;;  %4430 = vmatpush.bf16.msra.mxu3 %v6654_v49  ;;  %v7357_v49 = vld [vmem:[%s10864_s3 + $0xec] sm:$0xf0] }
 0x41f   :  { %v3575_v43 = vmul.f32 %v7479_v42, %v3567_v41  ;;  %v6649_v41 = vld [vmem:[%s10863_s2 + $0x68] sm:$0xf] }
 0x421   :  { %3585 = vst [vmem:[#allocation4 - $0x4] sm:$0x30] %v3575_v43  ;;  %4392 = vmatpush.bf16.msra.mxu0 %v6626_v55  ;;  %v6841_v55 = vld [vmem:[%s10864_s3 + $0xe8] sm:$0xf] }
 0x422   :  { %3592 = vst [vmem:[%s10868_s5] sm:$0x30] %v3575_v43  ;;  %4431 = vmatpush.bf16.msra.mxu3 %v6638_v7  ;;  %v6842_v59 = vor.u32 %v7358_v56, %v6841_v55  ;;  %v7352_v7 = vld [vmem:[%s10864_s3 + $0xcc] sm:$0xf]  ;;  %v6779_v56 = vld [vmem:[%s10864_s3 + $0x78] sm:$0xf0] }
 0x423   :  { %v7340_v55 = vld [vmem:[%s10864_s3 + $0x6c] sm:$0xf] }
 0x425   :  { %4393 = vmatpush.bf16.msra.mxu0 %v6610_v13  ;;  %v7347_v13 = vld [vmem:[%s10864_s3 + $0xa4] sm:$0xf] }
 0x428   :  { %v3888_v44 = vld [vmem:[#allocation4] sm:$0x3] }
 0x429   :  { %v3889_v45 = vpack.c.bf16 %v3888_v44, %v3888_v44  ;;  %v6646_v44 = vor.u32 %v7307_v39, %v6643_v40  ;;  %v3874_v40 = vrot.slane %v3859_v22, 4 }
 0x42b   :  { %4090 = vmatmul.bf16.vlgmr.msrb.gmra.mxu0 %v3889_v45  ;;  %4103 = vmatmul.bf16.vlgmr.msrb.gmra.mxu1 %v3889_v45 }
 0x42c   :  { %4116 = vmatmul.bf16.vlgmr.msrb.gmra.mxu2 %v3889_v45  ;;  %4129 = vmatmul.bf16.vlgmr.msrb.gmra.mxu3 %v3889_v45  ;;  %v7310_v45 = vld [vmem:[%s10863_s2 + $0x74] sm:$0xf0] }
 0x42d   :  { %v6650_v48 = vor.u32 %v7310_v45, %v6649_v41  ;;  %4404 = vmatpush.bf16.msra.mxu1 %v6646_v44  ;;  %v6602_v41 = vor.u32 %v7298_v38, %v6601_v37 }
 0x42f   :  { %4417 = vmatpush.bf16.msra.mxu2 %v6650_v48 }
 0x431   :  { %4405 = vmatpush.bf16.msra.mxu1 %v6630_v58 }
 0x433   :  { %4418 = vmatpush.bf16.msra.mxu2 %v6634_v2 }
 0x437   :  { %4419 = vmatpush.bf16.msra.mxu2 %v6618_v19 }
 0x43b   :  { %4420 = vmatpush.bf16.msra.mxu2 %v6602_v41 }
 0x43f   :  { %4704 = vmatpush.bf16.msrb.mxu2 %v6842_v59 }
 0x488   :  { %v3800_v26 = vpop.f32.mrf.mxu0  ;;  %v3813_v28 = vpop.f32.mrf.mxu1 }
 0x489   :  { %v3847_v33 = vrot.slane %v3800_v26, 4  ;;  %v3848_v34 = vrot.slane %v3813_v28, 4  ;;  %v6622_v26 = vor.u32 %v7300_v20, %v6619_v23  ;;  %v7297_v28 = vld [vmem:[%s10863_s2 + $0xc] sm:$0xf0]  ;;  %v7348_v20 = vld [vmem:[%s10864_s3 + $0xac] sm:$0xf] }
 0x48b   :  { %v3855_v42 = vadd.f32 %v3847_v33, %v3593_v18  ;;  %v3856_v43 = vadd.f32 %v3848_v34, %v3594_v27  ;;  %v6614_v18 = vor.u32 %v7299_v12, %v6611_v14  ;;  %v6593_v27 = vld [vmem:[%s10863_s2] sm:$0xf]  ;;  %v7295_v33 = vld [vmem:[%s10863_s2 + $0x4] sm:$0xf]  ;;  %v6595_v34 = vld [vmem:[%s10863_s2 + $0x10] sm:$0xf0]  ;;  %4432 = vmatpush.bf16.msra.mxu3 %v6622_v26 }
 0x48c   :  { %v6594_v32 = vor.u32 %v7297_v28, %v6593_v27  ;;  %v6598_v36 = vor.u32 %v7295_v33, %v6595_v34  ;;  %v7349_v12 = vld [vmem:[%s10864_s3 + $0xac] sm:$0xf0]  ;;  %v6785_v26 = vld [vmem:[%s10864_s3 + $0x80] sm:$0xf]  ;;  %v7343_v28 = vld [vmem:[%s10864_s3 + $0x84] sm:$0xf] }
 0x48d   :  { %v3860_v53 = vmul.f32 0.5, %v3855_v42  ;;  %v3864_v54 = vmul.f32 0.5, %v3856_v43  ;;  %4406 = vmatpush.bf16.msra.mxu1 %v6614_v18  ;;  %v7296_v42 = vld [vmem:[%s10863_s2 + $0xc] sm:$0xf]  ;;  %v6603_v43 = vld [vmem:[%s10863_s2 + $0x18] sm:$0xf0]  ;;  %v6802_v14 = vor.u32 %v7349_v12, %v6801_v11  ;;  %v6806_v18 = vor.u32 %v7347_v13, %v6803_v15 }
 0x48e   :  { %4394 = vmatpush.bf16.msra.mxu0 %v6594_v32  ;;  %v6606_v45 = vor.u32 %v7296_v42, %v6603_v43  ;;  %v7345_v27 = vld [vmem:[%s10864_s3 + $0x8c] sm:$0xf0]  ;;  %v6793_v32 = vld [vmem:[%s10864_s3 + $0x88] sm:$0xf]  ;;  %v7346_v33 = vld [vmem:[%s10864_s3 + $0x94] sm:$0xf0] }
 0x48f   :  { %7480 = vtanh.f32 %v3860_v53  ;;  %v3826_v63 = vpop.f32.mrf.mxu2  ;;  %v3839_v1 = vpop.f32.mrf.mxu3  ;;  %v6834_v53 = vor.u32 %v7357_v49, %v6833_v46  ;;  %v6794_v38 = vor.u32 %v7346_v33, %v6793_v32  ;;  %v7339_v46 = vld [vmem:[%s10864_s3 + $0x64] sm:$0xf]  ;;  %v7333_v15 = vld [vmem:[%s10864_s3 + $0x2c] sm:$0xf0] }
 0x490   :  { %7482 = vtanh.f32 %v3864_v54  ;;  %v3849_v3 = vrot.slane %v3826_v63, 4  ;;  %v3850_v4 = vrot.slane %v3839_v1, 4  ;;  %v3802_v5 = vpop.f32.mrf.mxu0  ;;  %v3815_v6 = vpop.f32.mrf.mxu1  ;;  %4433 = vmatpush.bf16.msra.mxu3 %v6606_v45  ;;  %v6838_v54 = vor.u32 %v7355_v50, %v6835_v51  ;;  %v7353_v63 = vld [vmem:[%s10864_s3 + $0xcc] sm:$0xf0]  ;;  %v6819_v1 = vld [vmem:[%s10864_s3 + $0xd0] sm:$0xf0] }
 0x491   :  { %4407 = vmatpush.bf16.msra.mxu1 %v6598_v36  ;;  %v6825_v5 = vld [vmem:[%s10864_s3 + $0xc8] sm:$0xf]  ;;  %v7354_v6 = vld [vmem:[%s10864_s3 + $0xd4] sm:$0xf0]  ;;  %v7341_v45 = vld [vmem:[%s10864_s3 + $0x6c] sm:$0xf0] }
 0x492   :  { %v3857_v8 = vadd.f32 %v3849_v3, %v3595_v62  ;;  %v3858_v9 = vadd.f32 %v3850_v4, %v3596_v0  ;;  %4678 = vmatpush.bf16.msrb.mxu0 %v6834_v53  ;;  %v6846_v62 = vor.u32 %v7356_v57, %v6843_v60  ;;  %v7351_v0 = vld [vmem:[%s10864_s3 + $0xc4] sm:$0xf]  ;;  %v6818_v3 = vor.u32 %v7353_v63, %v6817_v61  ;;  %v6771_v50 = vld [vmem:[%s10864_s3 + $0x70] sm:$0xf0]  ;;  %v6777_v51 = vld [vmem:[%s10864_s3 + $0x68] sm:$0xf] }
 0x493   :  { %v6822_v4 = vor.u32 %v7351_v0, %v6819_v1  ;;  %v6774_v53 = vor.u32 %v7339_v46, %v6771_v50  ;;  %v6753_v57 = vld [vmem:[%s10864_s3 + $0x40] sm:$0xf]  ;;  %v3886_v60 = vld [vmem:[%s10866_s1 + $0x10] sm:$0xc]  ;;  %v3887_v61 = vld [vmem:[%s10866_s1 + $0x18] sm:$0xc] }
 0x494   :  { %7484 = vtanh.f32 %v3857_v8  ;;  %v3869_v17 = vmul.f32 0.5, %v3858_v9  ;;  %4717 = vmatpush.bf16.msrb.mxu3 %v6846_v62  ;;  %v6827_v8 = vld [vmem:[%s10864_s3 + $0xd8] sm:$0xf0]  ;;  %v6826_v9 = vor.u32 %v7354_v6, %v6825_v5  ;;  %v6782_v62 = vor.u32 %v7340_v55, %v6779_v56  ;;  %v7337_v63 = vld [vmem:[%s10864_s3 + $0x4c] sm:$0xf0] }
 0x495   :  { %v7481_v21 = vpop.eup %7480  ;;  %4691 = vmatpush.bf16.msrb.mxu1 %v6838_v54  ;;  %v6830_v10 = vor.u32 %v7352_v7, %v6827_v8  ;;  %v7335_v0 = vld [vmem:[%s10864_s3 + $0x44] sm:$0xf]  ;;  %v6755_v1 = vld [vmem:[%s10864_s3 + $0x50] sm:$0xf0]  ;;  %v6754_v6 = vor.u32 %v7337_v63, %v6753_v57  ;;  %v7336_v8 = vld [vmem:[%s10864_s3 + $0x4c] sm:$0xf] }
 0x496   :  { %v7483_v24 = vpop.eup %7482  ;;  %v3862_v25 = vmul.f32 0.5, %v7481_v21  ;;  %7486 = vtanh.f32 %v3869_v17  ;;  %4679 = vmatpush.bf16.msrb.mxu0 %v6818_v3  ;;  %v7350_v17 = vld [vmem:[%s10864_s3 + $0xb4] sm:$0xf0]  ;;  %4705 = vmatpush.bf16.msrb.mxu2 %v6826_v9  ;;  %v6811_v21 = vld [vmem:[%s10864_s3 + $0xb8] sm:$0xf0]  ;;  %v6758_v7 = vor.u32 %v7335_v0, %v6755_v1 }
 0x497   :  { %v3866_v29 = vmul.f32 0.5, %v7483_v24  ;;  %v3828_v30 = vpop.f32.mrf.mxu2  ;;  %v3841_v31 = vpop.f32.mrf.mxu3  ;;  %v6810_v19 = vor.u32 %v7350_v17, %v6809_v16  ;;  %v6814_v23 = vor.u32 %v7348_v20, %v6811_v21  ;;  %v7338_v3 = vld [vmem:[%s10864_s3 + $0x54] sm:$0xf0]  ;;  %v6763_v9 = vld [vmem:[%s10864_s3 + $0x58] sm:$0xf0] }
 0x498   :  { %v3863_v35 = vadd.f32 0.5, %v3862_v25  ;;  %4718 = vmatpush.bf16.msrb.mxu3 %v6830_v10  ;;  %v3884_v25 = vld [vmem:[%s10866_s1] sm:$0xc]  ;;  %v6786_v30 = vor.u32 %v7345_v27, %v6785_v26  ;;  %v6787_v31 = vld [vmem:[%s10864_s3 + $0x90] sm:$0xf0] }
 0x499   :  { %v3867_v39 = vadd.f32 0.5, %v3866_v29  ;;  %4692 = vmatpush.bf16.msrb.mxu1 %v6822_v4  ;;  %v6790_v37 = vor.u32 %v7343_v28, %v6787_v31  ;;  %v6737_v10 = vld [vmem:[%s10864_s3 + $0x20] sm:$0xf]  ;;  %v7331_v16 = vld [vmem:[%s10864_s3 + $0x24] sm:$0xf] }
 0x49a   :  { %v7485_v44 = vpop.eup %7484  ;;  %4680 = vmatpush.bf16.msrb.mxu0 %v6802_v14  ;;  %4706 = vmatpush.bf16.msrb.mxu2 %v6810_v19  ;;  %v6739_v19 = vld [vmem:[%s10864_s3 + $0x30] sm:$0xf0]  ;;  %v7332_v26 = vld [vmem:[%s10864_s3 + $0x2c] sm:$0xf]  ;;  %v6738_v27 = vor.u32 %v7333_v15, %v6737_v10  ;;  %v7329_v31 = vld [vmem:[%s10864_s3 + $0xc] sm:$0xf0] }
 0x49b   :  { %v3876_v47 = vmul.f32 %v3874_v40, %v3867_v39  ;;  %v3877_v48 = vmul.f32 %v7485_v44, %v3863_v35  ;;  %v3885_v35 = vld [vmem:[%s10866_s1 + $0x8] sm:$0xc]  ;;  %v7344_v39 = vld [vmem:[%s10864_s3 + $0x8c] sm:$0xf]  ;;  %v6795_v40 = vld [vmem:[%s10864_s3 + $0x98] sm:$0xf0]  ;;  %v6742_v28 = vor.u32 %v7331_v16, %v6739_v19 }
 0x49c   :  { %v7487_v52 = vpop.eup %7486  ;;  %4719 = vmatpush.bf16.msrb.mxu3 %v6814_v23  ;;  %v6798_v43 = vor.u32 %v7344_v39, %v6795_v40  ;;  %v6769_v44 = vld [vmem:[%s10864_s3 + $0x60] sm:$0xf]  ;;  %v6766_v23 = vor.u32 %v7336_v8, %v6763_v9  ;;  %v7327_v33 = vld [vmem:[%s10864_s3 + $0x4] sm:$0xf] }
 0x49d   :  { %v3878_v58 = vadd.f32 %v3877_v48, %v3876_v47  ;;  %v3871_v2 = vmul.f32 0.5, %v7487_v52  ;;  %4693 = vmatpush.bf16.msrb.mxu1 %v6806_v18  ;;  %v6770_v49 = vor.u32 %v7341_v45, %v6769_v44  ;;  %v7342_v52 = vld [vmem:[%s10864_s3 + $0x74] sm:$0xf0] }
 0x49e   :  { %4681 = vmatpush.bf16.msrb.mxu0 %v6786_v30  ;;  %4707 = vmatpush.bf16.msrb.mxu2 %v6794_v38  ;;  %v6778_v54 = vor.u32 %v7342_v52, %v6777_v51  ;;  %v6721_v30 = vld [vmem:[%s10864_s3] sm:$0xf] }
 0x49f   :  { %7488 = vtanh.f32 %v3878_v58  ;;  %3882 = vst [vmem:[#allocation3 - $0x4] sm:$0x30] %v3878_v58  ;;  %v3872_v22 = vadd.f32 0.5, %v3871_v2  ;;  %v6761_v2 = vld [vmem:[%s10864_s3 + $0x48] sm:$0xf]  ;;  %v6722_v46 = vor.u32 %v7329_v31, %v6721_v30 }
 0x4a0   :  { %4720 = vmatpush.bf16.msrb.mxu3 %v6798_v43  ;;  %v6762_v18 = vor.u32 %v7338_v3, %v6761_v2  ;;  %v4189_v2 = vld [vmem:[%s10865_s0 + $0x20] sm:$0xc0] }
 0x4a1   :  { %4694 = vmatpush.bf16.msrb.mxu1 %v6790_v37 }
 0x4a2   :  { %4682 = vmatpush.bf16.msrb.mxu0 %v6770_v49  ;;  %4708 = vmatpush.bf16.msrb.mxu2 %v6778_v54  ;;  %v6731_v49 = vld [vmem:[%s10864_s3 + $0x18] sm:$0xf0] }
 0x4a4   :  { %4721 = vmatpush.bf16.msrb.mxu3 %v6782_v62 }
 0x4a5   :  { %v7489_v24 = vpop.eup %7488  ;;  %4695 = vmatpush.bf16.msrb.mxu1 %v6774_v53 }
 0x4a6   :  { %v3880_v29 = vmul.f32 %v7489_v24, %v3872_v22  ;;  %v6745_v24 = vld [vmem:[%s10864_s3 + $0x28] sm:$0xf]  ;;  %4683 = vmatpush.bf16.msrb.mxu0 %v6754_v6  ;;  %4709 = vmatpush.bf16.msrb.mxu2 %v6762_v18 }
 0x4a8   :  { %v4091_v34 = vpop.f32.mrf.mxu0  ;;  %v4104_v36 = vpop.f32.mrf.mxu1  ;;  %3883 = vst [vmem:[%s10867_s4 + $0x8] sm:$0x30] %v3880_v29  ;;  %4722 = vmatpush.bf16.msrb.mxu3 %v6766_v23 }
 0x4a9   :  { %v4138_v41 = vrot.slane %v4091_v34, 6  ;;  %v4139_v42 = vrot.slane %v4104_v36, 6  ;;  %3881 = vst [vmem:[#allocation2 - $0x4] sm:$0x30] %v3880_v29  ;;  %4696 = vmatpush.bf16.msrb.mxu1 %v6758_v7  ;;  %v6747_v29 = vld [vmem:[%s10864_s3 + $0x38] sm:$0xf0] }
 0x4aa   :  { %v6723_v34 = vld [vmem:[%s10864_s3 + $0x10] sm:$0xf0]  ;;  %v4150_v36 = vld [vmem:[#allocation5] sm:$0x3]  ;;  %v6750_v40 = vor.u32 %v7332_v26, %v6747_v29  ;;  %4684 = vmatpush.bf16.msrb.mxu0 %v6738_v27  ;;  %v4455_v26 = vld [vmem:[#allocation3] sm:$0x3] }
 0x4ab   :  { %v4146_v47 = vadd.f32 %v4138_v41, %v3884_v25  ;;  %v4147_v48 = vadd.f32 %v4139_v42, %v3885_v35  ;;  %v7334_v25 = vld [vmem:[%s10864_s3 + $0x34] sm:$0xf0]  ;;  %v6729_v41 = vld [vmem:[%s10864_s3 + $0x8] sm:$0xf]  ;;  %v4165_v52 = vrot.slane %v4150_v36, 6 }
 0x4ac   :  { %v6746_v39 = vor.u32 %v7334_v25, %v6745_v24  ;;  %v7330_v42 = vld [vmem:[%s10864_s3 + $0x14] sm:$0xf0]  ;;  %4723 = vmatpush.bf16.msrb.mxu3 %v6750_v40 }
 0x4ad   :  { %v4151_v58 = vmul.f32 0.5, %v4146_v47  ;;  %v4155_v59 = vmul.f32 0.5, %v4147_v48  ;;  %4697 = vmatpush.bf16.msrb.mxu1 %v6742_v28  ;;  %v6726_v47 = vor.u32 %v7327_v33, %v6723_v34  ;;  %v7328_v48 = vld [vmem:[%s10864_s3 + $0xc] sm:$0xf]  ;;  %v6730_v54 = vor.u32 %v7330_v42, %v6729_v41  ;;  %v4480_v41 = vld [vmem:[%s10866_s1] sm:$0x3] }
 0x4ae   :  { %4710 = vmatpush.bf16.msrb.mxu2 %v6746_v39  ;;  %v6734_v55 = vor.u32 %v7328_v48, %v6731_v49  ;;  %4685 = vmatpush.bf16.msrb.mxu0 %v6722_v46  ;;  %v4481_v42 = vld [vmem:[%s10866_s1 + $0x8] sm:$0x3] }
 0x4af   :  { %7490 = vtanh.f32 %v4151_v58  ;;  %v4117_v4 = vpop.f32.mrf.mxu2  ;;  %v4130_v5 = vpop.f32.mrf.mxu3 }
 0x4b0   :  { %7492 = vtanh.f32 %v4155_v59  ;;  %v4140_v11 = vrot.slane %v4117_v4, 6  ;;  %v4141_v12 = vrot.slane %v4130_v5, 6  ;;  %v4093_v13 = vpop.f32.mrf.mxu0  ;;  %v4106_v14 = vpop.f32.mrf.mxu1  ;;  %v4193_v17 = vld [vmem:[#allocation2] sm:$0x3]  ;;  %4724 = vmatpush.bf16.msrb.mxu3 %v6734_v55  ;;  %v4190_v4 = vld [vmem:[%s10865_s0 + $0x28] sm:$0xc0] }
 0x4b1   :  { %v4194_v22 = vpack.c.bf16 %v4193_v17, %v4193_v17  ;;  %4698 = vmatpush.bf16.msrb.mxu1 %v6726_v47  ;;  %v4192_v14 = vld [vmem:[%s10865_s0 + $0x38] sm:$0xc0] }
 0x4b2   :  { %v4148_v20 = vadd.f32 %v4140_v11, %v3886_v60  ;;  %v4149_v21 = vadd.f32 %v4141_v12, %v3887_v61  ;;  %4711 = vmatpush.bf16.msrb.mxu2 %v6730_v54  ;;  %v4191_v12 = vld [vmem:[%s10865_s0 + $0x30] sm:$0xc0] }
 0x4b3   :  { %4395 = vmatmul.bf16.vlgmr.msra.gmra.mxu0 %v4194_v22  ;;  %4408 = vmatmul.bf16.vlgmr.msra.gmra.mxu1 %v4194_v22 }
 0x4b4   :  { %7494 = vtanh.f32 %v4148_v20  ;;  %v4160_v32 = vmul.f32 0.5, %v4149_v21  ;;  %4421 = vmatmul.bf16.vlgmr.msra.gmra.mxu2 %v4194_v22  ;;  %4434 = vmatmul.bf16.vlgmr.msra.gmra.mxu3 %v4194_v22 }
 0x4b5   :  { %v7491_v35 = vpop.eup %7490 }
 0x4b6   :  { %v7493_v37 = vpop.eup %7492  ;;  %v4153_v38 = vmul.f32 0.5, %v7491_v35  ;;  %7496 = vtanh.f32 %v4160_v32  ;;  %v4470_v32 = vrot.slane %v4455_v26, 2 }
 0x4b7   :  { %v4157_v43 = vmul.f32 0.5, %v7493_v37  ;;  %v4119_v44 = vpop.f32.mrf.mxu2  ;;  %v4132_v45 = vpop.f32.mrf.mxu3 }
 0x4b8   :  { %v4154_v50 = vadd.f32 0.5, %v4153_v38 }
 0x4b9   :  { %v4158_v51 = vadd.f32 0.5, %v4157_v43 }
 0x4ba   :  { %v7495_v53 = vpop.eup %7494 }
 0x4bb   :  { %v4167_v56 = vmul.f32 %v4165_v52, %v4158_v51  ;;  %v4168_v57 = vmul.f32 %v7495_v53, %v4154_v50  ;;  %v4482_v50 = vld [vmem:[%s10866_s1 + $0x10] sm:$0x3]  ;;  %v4483_v51 = vld [vmem:[%s10866_s1 + $0x18] sm:$0x3] }
 0x4bc   :  { %v7497_v58 = vpop.eup %7496 }
 0x4bd   :  { %v4169_v59 = vadd.f32 %v4168_v57, %v4167_v56  ;;  %v4162_v60 = vmul.f32 0.5, %v7497_v58 }
 0x4bf   :  { %7498 = vtanh.f32 %v4169_v59  ;;  %4187 = vst [vmem:[#allocation5 - $0x2] sm:$0xc] %v4169_v59  ;;  %v4163_v61 = vadd.f32 0.5, %v4162_v60 }
 0x4c5   :  { %v7499_v62 = vpop.eup %7498 }
 0x4c6   :  { %v4171_v63 = vmul.f32 %v7499_v62, %v4163_v61 }
 0x4c8   :  { %4188 = vst [vmem:[%s10868_s5] sm:$0xc] %v4171_v63 }
 0x4c9   :  { %4181 = vst [vmem:[#allocation4 - $0x2] sm:$0xc] %v4171_v63 }
 0x4d0   :  { %v4484_v0 = vld [vmem:[#allocation4] sm:$0x3] }
 0x4d1   :  { %v4485_v1 = vpack.c.bf16 %v4484_v0, %v4484_v0 }
 0x4d3   :  { %4686 = vmatmul.bf16.vlgmr.msrb.gmra.mxu0 %v4485_v1  ;;  %4699 = vmatmul.bf16.vlgmr.msrb.gmra.mxu1 %v4485_v1 }
 0x4d4   :  { %4712 = vmatmul.bf16.vlgmr.msrb.gmra.mxu2 %v4485_v1  ;;  %4725 = vmatmul.bf16.vlgmr.msrb.gmra.mxu3 %v4485_v1 }
 0x530   :  { %v4396_v3 = vpop.f32.mrf.mxu0  ;;  %v4409_v5 = vpop.f32.mrf.mxu1 }
 0x531   :  { %v4443_v6 = vrot.slane %v4396_v3, 2  ;;  %v4444_v7 = vrot.slane %v4409_v5, 2 }
 0x533   :  { %v4451_v8 = vadd.f32 %v4443_v6, %v4189_v2  ;;  %v4452_v9 = vadd.f32 %v4444_v7, %v4190_v4  ;;  %v4734_v4 = vld [vmem:[#allocation5] sm:$0x3] }
 0x535   :  { %v4456_v10 = vmul.f32 0.5, %v4451_v8  ;;  %v4460_v11 = vmul.f32 0.5, %v4452_v9 }
 0x537   :  { %7500 = vtanh.f32 %v4456_v10  ;;  %v4422_v13 = vpop.f32.mrf.mxu2  ;;  %v4435_v15 = vpop.f32.mrf.mxu3 }
 0x538   :  { %7502 = vtanh.f32 %v4460_v11  ;;  %v4445_v16 = vrot.slane %v4422_v13, 2  ;;  %v4446_v17 = vrot.slane %v4435_v15, 2  ;;  %v4398_v18 = vpop.f32.mrf.mxu0  ;;  %v4411_v19 = vpop.f32.mrf.mxu1 }
 0x53a   :  { %v4453_v20 = vadd.f32 %v4445_v16, %v4191_v12  ;;  %v4454_v21 = vadd.f32 %v4446_v17, %v4192_v14 }
 0x53c   :  { %7504 = vtanh.f32 %v4453_v20  ;;  %v4465_v22 = vmul.f32 0.5, %v4454_v21 }
 0x53d   :  { %v7501_v23 = vpop.eup %7500 }
 0x53e   :  { %v7503_v24 = vpop.eup %7502  ;;  %v4458_v25 = vmul.f32 0.5, %v7501_v23  ;;  %7506 = vtanh.f32 %v4465_v22 }
 0x53f   :  { %v4462_v27 = vmul.f32 0.5, %v7503_v24  ;;  %v4424_v28 = vpop.f32.mrf.mxu2  ;;  %v4437_v29 = vpop.f32.mrf.mxu3 }
 0x540   :  { %v4459_v30 = vadd.f32 0.5, %v4458_v25 }
 0x541   :  { %v4463_v31 = vadd.f32 0.5, %v4462_v27 }
 0x542   :  { %v7505_v33 = vpop.eup %7504 }
 0x543   :  { %v4472_v34 = vmul.f32 %v4470_v32, %v4463_v31  ;;  %v4473_v35 = vmul.f32 %v7505_v33, %v4459_v30 }
 0x544   :  { %v7507_v36 = vpop.eup %7506 }
 0x545   :  { %v4474_v37 = vadd.f32 %v4473_v35, %v4472_v34  ;;  %v4467_v38 = vmul.f32 0.5, %v7507_v36 }
 0x547   :  { %7508 = vtanh.f32 %v4474_v37  ;;  %4478 = vst [vmem:[#allocation3 - $0x6] sm:$0xc0] %v4474_v37  ;;  %v4468_v39 = vadd.f32 0.5, %v4467_v38 }
 0x54d   :  { %v7509_v40 = vpop.eup %7508 }
 0x54e   :  { %v4476_v43 = vmul.f32 %v7509_v40, %v4468_v39 }
 0x550   :  { %v4687_v44 = vpop.f32.mrf.mxu0  ;;  %v4700_v45 = vpop.f32.mrf.mxu1  ;;  %4477 = vst [vmem:[#allocation2 - $0x6] sm:$0xc0] %v4476_v43 }
 0x551   :  { %v4730_v46 = vadd.f32 %v4687_v44, %v4480_v41  ;;  %v4731_v47 = vadd.f32 %v4700_v45, %v4481_v42  ;;  %4479 = vst [vmem:[%s10867_s4 + $0x8] sm:$0xc0] %v4476_v43 }
 0x553   :  { %v4735_v48 = vmul.f32 0.5, %v4730_v46  ;;  %v4739_v49 = vmul.f32 0.5, %v4731_v47 }
 0x555   :  { %7510 = vtanh.f32 %v4735_v48 }
 0x556   :  { %7512 = vtanh.f32 %v4739_v49 }
 0x557   :  { %v4713_v52 = vpop.f32.mrf.mxu2  ;;  %v4726_v53 = vpop.f32.mrf.mxu3 }
 0x558   :  { %v4732_v54 = vadd.f32 %v4713_v52, %v4482_v50  ;;  %v4733_v55 = vadd.f32 %v4726_v53, %v4483_v51  ;;  %v4689_v56 = vpop.f32.mrf.mxu0  ;;  %v4702_v57 = vpop.f32.mrf.mxu1 }
 0x55a   :  { %7514 = vtanh.f32 %v4732_v54  ;;  %v4744_v58 = vmul.f32 0.5, %v4733_v55 }
 0x55b   :  { %v7511_v59 = vpop.eup %7510 }
 0x55c   :  { %v7513_v60 = vpop.eup %7512  ;;  %v4737_v61 = vmul.f32 0.5, %v7511_v59  ;;  %7516 = vtanh.f32 %v4744_v58 }
 0x55d   :  { %v4741_v62 = vmul.f32 0.5, %v7513_v60 }
 0x55e   :  { %v4738_v63 = vadd.f32 0.5, %v4737_v61 }
 0x55f   :  { %v4742_v0 = vadd.f32 0.5, %v4741_v62  ;;  %v4715_v1 = vpop.f32.mrf.mxu2  ;;  %v4728_v2 = vpop.f32.mrf.mxu3 }
 0x560   :  { %v7515_v3 = vpop.eup %7514 }
 0x561   :  { %v4748_v5 = vmul.f32 %v4742_v0, %v4734_v4  ;;  %v4749_v6 = vmul.f32 %v7515_v3, %v4738_v63 }
 0x562   :  { %v7517_v7 = vpop.eup %7516 }
 0x563   :  { %v4750_v8 = vadd.f32 %v4749_v6, %v4748_v5  ;;  %v4746_v9 = vmul.f32 0.5, %v7517_v7 }
 0x565   :  { %7518 = vtanh.f32 %v4750_v8  ;;  %4761 = vst [vmem:[#allocation5] sm:$0x3] %v4750_v8  ;;  %v4747_v10 = vadd.f32 0.5, %v4746_v9 }
 0x56b   :  { %v7519_v11 = vpop.eup %7518 }
 0x56c   :  { %v4752_v12 = vmul.f32 %v7519_v11, %v4747_v10 }
 0x56e   :  { %4758 = vst [vmem:[#allocation4] sm:$0x3] %v4752_v12 }
 0x56f   :  { %4762 = vst [vmem:[%s10868_s5] sm:$0x3] %v4752_v12 }

</bundles_post_ra>
